<compile_context>
chip_gen: v7x
topology: tpu7x:2x2x1
jax: 0.10.0
libtpu: 0.0.40
codegen_flags: <defaults>
</compile_context>

<pallas_src>
import math

import jax
import jax.numpy as jnp
from jax import lax
from jax.experimental import pallas as pl
from jax.experimental.pallas import tpu as pltpu

# CNN_LSTM(input_size=6, hidden_size=32, output_size=4, num_layers=2)
INPUT_SIZE = 6
HIDDEN = 32               # hidden_size == Conv1d sequence length L
OUTPUT_SIZE = 4
L = HIDDEN
C_FEAT = 64               # conv trunk "real" output channels
IN_PAD = 8                # input features zero-padded 6 -> 8
CPAD = 128                # all conv channels padded to one full lane tile
BN_EPS = 1e-5

_W_ORDER = (
    "fw1", "fb1", "fw2", "fb2", "fw3", "fb3",
    "wres", "bres",
    "w1", "b1", "s1", "t1",
    "w2", "b2", "s2", "t2",
    "w3", "b3", "s3", "t3",
    "s4", "t4",
    "w4", "b4", "s5", "t5",
    "w5", "b5", "s6", "t6",
    "w6", "b6",
    "hw1", "hb1", "hw2", "hb2", "hw3", "hb3",
)


# --------------------------------------------------------------------------
# Fused kernel: fc MLP -> conv trunk (+res) -> backbone2 -> fc2 head
# --------------------------------------------------------------------------
def _fused_kernel(x_ref, *refs):
    assert len(refs) == len(_W_ORDER) + 1
    out_ref = refs[-1]
    w = dict(zip(_W_ORDER, refs[:-1]))

    tb = x_ref.shape[0]                  # batch tile (multiple of 8)
    rows = tb * L                        # position-major rows: r = l*tb + s
    f32 = jnp.float32
    bf16 = jnp.bfloat16

    # ---------------- fc MLP (f32, tiny matmuls) ----------------
    h = jnp.dot(x_ref[...], w["fw1"][...], preferred_element_type=f32) + w["fb1"][...]
    h = jnp.maximum(h, 0.0)
    h = jnp.dot(h, w["fw2"][...], preferred_element_type=f32) + w["fb2"][...]
    h = jnp.maximum(h, 0.0)
    y = jnp.dot(h, w["fw3"][...], preferred_element_type=f32) + w["fb3"][...]   # [tb, L]

    # ---------------- scatter y into position-major rows ----------------
    # y_diag[l*tb + s, k] = y[s, k] if k == l else 0  (so y_diag @ W_tiled == y[s,l]*w)
    rep = jnp.broadcast_to(y[None, :, :], (L, tb, L)).reshape(rows, L)
    lpos = lax.broadcasted_iota(jnp.int32, (L, tb, L), 0).reshape(rows, L)
    lane = lax.broadcasted_iota(jnp.int32, (L, tb, L), 2).reshape(rows, L)
    y_diag = jnp.where(lane == lpos, rep, 0.0)

    def conv1x1(wk, bk):
        # Conv1d(1, C, 1) via the diagonal trick; weight rows are all identical.
        return jnp.dot(y_diag, w[wk][...], preferred_element_type=f32) + w[bk][...]

    def conv3(hin, wk, bk):
        # Conv1d(k=3, padding=1): zero-padded sublane shifts by tb (prev / next
        # position of the same sample), lane-concat into [rows, 3*CPAD], one matmul.
        zpad = jnp.zeros((tb, CPAD), f32)
        hp = jnp.concatenate([zpad, hin, zpad], axis=0)          # [(L+2)*tb, CPAD]
        hc = jnp.concatenate([hp[:rows], hin, hp[2 * tb:]], axis=1)   # [rows, 3*CPAD]
        return jnp.dot(hc.astype(bf16), w[wk][...], preferred_element_type=f32) + w[bk][...]

    def bn(hin, sk, tk):                 # eval-mode BatchNorm folded to scale/shift
        return hin * w[sk][...] + w[tk][...]

    # residual branch: Conv1d(1, 64, 1)
    res = conv1x1("wres", "bres")                                            # [rows, CPAD]

    # backbone_net: Conv(1,16,1)+ReLU+BN, Conv(16,32,3)+ReLU+BN, Conv(32,64,3)+ReLU+BN, Dropout
    hb = bn(jnp.maximum(conv1x1("w1", "b1"), 0.0), "s1", "t1")
    hb = bn(jnp.maximum(conv3(hb, "w2", "b2"), 0.0), "s2", "t2")
    bb = bn(jnp.maximum(conv3(hb, "w3", "b3"), 0.0), "s3", "t3")

    # backbone_net2: ReLU+BN, Conv(64,128,3)+ReLU+BN, Conv(128,128,3)+ReLU+BN, Conv(128,64,3), Dropout
    g = bn(jnp.maximum(bb + res, 0.0), "s4", "t4")
    g = bn(jnp.maximum(conv3(g, "w4", "b4"), 0.0), "s5", "t5")
    g = bn(jnp.maximum(conv3(g, "w5", "b5"), 0.0), "s6", "t6")
    g = conv3(g, "w6", "b6")

    # y + res2 (== bb), dropout = identity, flatten, fc2 (leading ReLU)
    feat = jnp.maximum(g + bb, 0.0)                                          # [rows, CPAD]

    # flatten to a lane-dense [tb, L*CPAD] slab (all slices/offsets 128-aligned)
    acat = jnp.concatenate([feat[l * tb:(l + 1) * tb, :] for l in range(L)], axis=1)
    z = jnp.dot(acat.astype(bf16), w["hw1"][...], preferred_element_type=f32) + w["hb1"][...]
    z = jnp.maximum(z, 0.0)
    z = jnp.dot(z, w["hw2"][...], preferred_element_type=f32) + w["hb2"][...]
    z = jnp.maximum(z, 0.0)
    z = jnp.dot(z, w["hw3"][...], preferred_element_type=f32) + w["hb3"][...]
    out_ref[...] = z.astype(out_ref.dtype)                                   # [tb, CPAD]


# --------------------------------------------------------------------------
# pallas_call wrapper
# --------------------------------------------------------------------------
def _batch_tile(batch):
    """Batch tile: multiple of 8 (sublane constraint), capped, >=2 grid steps when B>=16."""
    b8 = -(-batch // 8) * 8
    if b8 <= 8:
        return 8
    half = -(-(b8 // 2) // 8) * 8
    return max(8, min(32, half))


def _full_spec(arr):
    return pl.BlockSpec(arr.shape, lambda i: (0, 0))       # weights: VMEM-resident, 2D


@jax.jit
def cnn_lstm_forward(x, params):
    B = x.shape[0]
    tb = _batch_tile(B)
    b_pad = -(-B // tb) * tb
    x_pad = jnp.pad(x, ((0, b_pad - B), (0, IN_PAD - INPUT_SIZE)))
    weights = [params[k] for k in _W_ORDER]

    out = pl.pallas_call(
        _fused_kernel,
        out_shape=jax.ShapeDtypeStruct((b_pad, CPAD), jnp.float32),
        grid=(b_pad // tb,),
        in_specs=[pl.BlockSpec((tb, IN_PAD), lambda i: (i, 0))]
                 + [_full_spec(a) for a in weights],
        out_specs=pl.BlockSpec((tb, CPAD), lambda i: (i, 0)),
        compiler_params=pltpu.CompilerParams(
            dimension_semantics=("parallel",),
            vmem_limit_bytes=32 * 1024 * 1024),
    )(x_pad, *weights)
    return out[:B, :OUTPUT_SIZE]


# --------------------------------------------------------------------------
# Parameters (PyTorch layout) + kernel-layout preparation
# --------------------------------------------------------------------------
def init_params(key):
    keys = iter(jax.random.split(key, 64))

    def unif(shape, bound):
        return jax.random.uniform(next(keys), shape, jnp.float32, -bound, bound)

    def linear(fan_in, fan_out):                       # stored as [in, out] / [out]
        b = 1.0 / math.sqrt(fan_in)
        return unif((fan_in, fan_out), b), unif((fan_out,), b)

    def conv1d(cin, cout, k):                          # PyTorch layout [out, in, k]
        b = 1.0 / math.sqrt(cin * k)
        return unif((cout, cin, k), b), unif((cout,), b)

    def bnorm(c):                                      # (gamma, beta, running_mean, running_var)
        gamma = 1.0 + 0.1 * jax.random.normal(next(keys), (c,), jnp.float32)
        beta = 0.1 * jax.random.normal(next(keys), (c,), jnp.float32)
        mean = 0.1 * jax.random.normal(next(keys), (c,), jnp.float32)
        var = jax.random.uniform(next(keys), (c,), jnp.float32, 0.5, 1.5)
        return gamma, beta, mean, var

    p = {}
    p["fc_w1"], p["fc_b1"] = linear(INPUT_SIZE, HIDDEN // 4)
    p["fc_w2"], p["fc_b2"] = linear(HIDDEN // 4, HIDDEN * 4)
    p["fc_w3"], p["fc_b3"] = linear(HIDDEN * 4, HIDDEN)
    p["res_w"], p["res_b"] = conv1d(1, 64, 1)
    p["c1_w"], p["c1_b"] = conv1d(1, 16, 1)
    p["bn1"] = bnorm(16)
    p["c2_w"], p["c2_b"] = conv1d(16, 32, 3)
    p["bn2"] = bnorm(32)
    p["c3_w"], p["c3_b"] = conv1d(32, 64, 3)
    p["bn3"] = bnorm(64)
    p["bn4"] = bnorm(64)
    p["c4_w"], p["c4_b"] = conv1d(64, 128, 3)
    p["bn5"] = bnorm(128)
    p["c5_w"], p["c5_b"] = conv1d(128, 128, 3)
    p["bn6"] = bnorm(128)
    p["c6_w"], p["c6_b"] = conv1d(128, 64, 3)
    p["h_w1"], p["h_b1"] = linear(HIDDEN * C_FEAT, 64)
    p["h_w2"], p["h_b2"] = linear(64, 32)
    p["h_w3"], p["h_b3"] = linear(32, OUTPUT_SIZE)
    return p


def prepare_params(raw):
    """One-time host-side reshaping into the fused kernel's padded, channel-last layouts."""
    bf16 = jnp.bfloat16

    def row(v):
        return v[None, :]

    def row_pad(v, n=CPAD):
        return jnp.pad(v, (0, n - v.shape[0]))[None, :]

    def tiled_1x1(wt, bt):
        # Conv1d(1, C, 1): weight [C,1,1] -> [L, CPAD] (identical rows), bias [1, CPAD]
        vec = jnp.pad(wt[:, 0, 0], (0, CPAD - wt.shape[0]))
        return jnp.tile(vec[None, :], (L, 1)), row_pad(bt)

    def taps_3(wt, bt):
        # Conv1d(cin,cout,3,pad=1): [cout,cin,3] -> stacked [3*CPAD, CPAD] (bf16), zero-padded
        w3 = jnp.transpose(wt, (2, 1, 0))                       # [3, cin, cout]
        w3 = jnp.pad(w3, ((0, 0), (0, CPAD - w3.shape[1]), (0, CPAD - w3.shape[2])))
        return w3.reshape(3 * CPAD, CPAD).astype(bf16), row_pad(bt)

    def fold_bn(bnp):                                           # eval-mode BN -> scale/shift
        gamma, beta, mean, var = bnp
        s = gamma / jnp.sqrt(var + BN_EPS)
        return row_pad(s), row_pad(beta - mean * s)

    p = {}
    p["fw1"] = jnp.pad(raw["fc_w1"], ((0, IN_PAD - INPUT_SIZE), (0, 0)))
    p["fb1"] = row(raw["fc_b1"])
    p["fw2"], p["fb2"] = raw["fc_w2"], row(raw["fc_b2"])
    p["fw3"], p["fb3"] = raw["fc_w3"], row(raw["fc_b3"])

    p["wres"], p["bres"] = tiled_1x1(raw["res_w"], raw["res_b"])
    p["w1"], p["b1"] = tiled_1x1(raw["c1_w"], raw["c1_b"])
    p["s1"], p["t1"] = fold_bn(raw["bn1"])
    p["w2"], p["b2"] = taps_3(raw["c2_w"], raw["c2_b"])
    p["s2"], p["t2"] = fold_bn(raw["bn2"])
    p["w3"], p["b3"] = taps_3(raw["c3_w"], raw["c3_b"])
    p["s3"], p["t3"] = fold_bn(raw["bn3"])
    p["s4"], p["t4"] = fold_bn(raw["bn4"])
    p["w4"], p["b4"] = taps_3(raw["c4_w"], raw["c4_b"])
    p["s5"], p["t5"] = fold_bn(raw["bn5"])
    p["w5"], p["b5"] = taps_3(raw["c5_w"], raw["c5_b"])
    p["s6"], p["t6"] = fold_bn(raw["bn6"])
    p["w6"], p["b6"] = taps_3(raw["c6_w"], raw["c6_b"])

    # fc2's first Linear expects PyTorch flatten order (c*L + l); the kernel builds
    # acat[s, l*CPAD + c], so permute & pad the weight rows once here.
    hw1 = raw["h_w1"].reshape(C_FEAT, L, 64)                    # [c, l, j]
    hw1 = jnp.transpose(hw1, (1, 0, 2))                         # [l, c, j]
    hw1 = jnp.pad(hw1, ((0, 0), (0, CPAD - C_FEAT), (0, 0)))    # [l, CPAD, j]
    p["hw1"] = hw1.reshape(L * CPAD, 64).astype(bf16)
    p["hb1"] = row(raw["h_b1"])
    p["hw2"], p["hb2"] = raw["h_w2"], row(raw["h_b2"])
    p["hw3"] = jnp.pad(raw["h_w3"], ((0, 0), (0, CPAD - OUTPUT_SIZE)))
    p["hb3"] = row_pad(raw["h_b3"])
    return p


# --------------------------------------------------------------------------
# Pure-JAX reference (independent path: lax.conv_general_dilated, un-folded BN)
# --------------------------------------------------------------------------
def reference_forward(x, raw):
    B = x.shape[0]

    def conv1d(z, w, b, pad):
        out = lax.conv_general_dilated(z, w, window_strides=(1,), padding=[(pad, pad)],
                                       dimension_numbers=("NCH", "OIH", "NCH"))
        return out + b[None, :, None]

    def bn(z, params):
        gamma, beta, mean, var = params
        return ((z - mean[None, :, None]) / jnp.sqrt(var[None, :, None] + BN_EPS)
                * gamma[None, :, None] + beta[None, :, None])

    y = jnp.maximum(x @ raw["fc_w1"] + raw["fc_b1"], 0.0)
    y = jnp.maximum(y @ raw["fc_w2"] + raw["fc_b2"], 0.0)
    y = y @ raw["fc_w3"] + raw["fc_b3"]
    y = y[:, None, :]                                        # [B, 1, L]

    res = conv1d(y, raw["res_w"], raw["res_b"], 0)
    h = bn(jnp.maximum(conv1d(y, raw["c1_w"], raw["c1_b"], 0), 0.0), raw["bn1"])
    h = bn(jnp.maximum(conv1d(h, raw["c2_w"], raw["c2_b"], 1), 0.0), raw["bn2"])
    h = bn(jnp.maximum(conv1d(h, raw["c3_w"], raw["c3_b"], 1), 0.0), raw["bn3"])
    res2 = h
    t = h + res
    g = bn(jnp.maximum(t, 0.0), raw["bn4"])
    g = bn(jnp.maximum(conv1d(g, raw["c4_w"], raw["c4_b"], 1), 0.0), raw["bn5"])
    g = bn(jnp.maximum(conv1d(g, raw["c5_w"], raw["c5_b"], 1), 0.0), raw["bn6"])
    g = conv1d(g, raw["c6_w"], raw["c6_b"], 1)
    out = (g + res2).reshape(B, -1)                          # torch .view(B, -1): channel-major flatten

    out = jnp.maximum(out, 0.0)
    out = jnp.maximum(out @ raw["h_w1"] + raw["h_b1"], 0.0)
    out = jnp.maximum(out @ raw["h_w2"] + raw["h_b2"], 0.0)
    out = out @ raw["h_w3"] + raw["h_b3"]
    return out


if __name__ == "__main__":
    key = jax.random.PRNGKey(0)
    kx, kp = jax.random.split(key)

    B = 8
    x = jax.random.normal(kx, (B, INPUT_SIZE), jnp.float32)
    raw = init_params(kp)
    prepared = prepare_params(raw)

    y = cnn_lstm_forward(x, prepared)
    y = jax.block_until_ready(y)

    ref = reference_forward(x, raw)
    assert y.shape == (B, OUTPUT_SIZE), y.shape
    max_err = float(jnp.max(jnp.abs(y - ref)))
    # bf16 MXU operands in the conv trunk / head -> slightly looser tolerance than pure f32.
    assert jnp.allclose(y, ref, atol=3e-2, rtol=3e-2), f"max abs err {max_err}"
    print("KERNEL_OK")
</pallas_src>

<mosaic_0001>
module attributes {stable_mosaic.version = 11 : i64} {
  func.func @_fused_kernel(%arg0: i32, %arg1: memref<8x8xf32, #tpu.memory_space<vmem>>, %arg2: memref<8x8xf32, #tpu.memory_space<vmem>>, %arg3: memref<1x8xf32, #tpu.memory_space<vmem>>, %arg4: memref<8x128xf32, #tpu.memory_space<vmem>>, %arg5: memref<1x128xf32, #tpu.memory_space<vmem>>, %arg6: memref<128x32xf32, #tpu.memory_space<vmem>>, %arg7: memref<1x32xf32, #tpu.memory_space<vmem>>, %arg8: memref<32x128xf32, #tpu.memory_space<vmem>>, %arg9: memref<1x128xf32, #tpu.memory_space<vmem>>, %arg10: memref<32x128xf32, #tpu.memory_space<vmem>>, %arg11: memref<1x128xf32, #tpu.memory_space<vmem>>, %arg12: memref<1x128xf32, #tpu.memory_space<vmem>>, %arg13: memref<1x128xf32, #tpu.memory_space<vmem>>, %arg14: memref<384x128xbf16, #tpu.memory_space<vmem>>, %arg15: memref<1x128xf32, #tpu.memory_space<vmem>>, %arg16: memref<1x128xf32, #tpu.memory_space<vmem>>, %arg17: memref<1x128xf32, #tpu.memory_space<vmem>>, %arg18: memref<384x128xbf16, #tpu.memory_space<vmem>>, %arg19: memref<1x128xf32, #tpu.memory_space<vmem>>, %arg20: memref<1x128xf32, #tpu.memory_space<vmem>>, %arg21: memref<1x128xf32, #tpu.memory_space<vmem>>, %arg22: memref<1x128xf32, #tpu.memory_space<vmem>>, %arg23: memref<1x128xf32, #tpu.memory_space<vmem>>, %arg24: memref<384x128xbf16, #tpu.memory_space<vmem>>, %arg25: memref<1x128xf32, #tpu.memory_space<vmem>>, %arg26: memref<1x128xf32, #tpu.memory_space<vmem>>, %arg27: memref<1x128xf32, #tpu.memory_space<vmem>>, %arg28: memref<384x128xbf16, #tpu.memory_space<vmem>>, %arg29: memref<1x128xf32, #tpu.memory_space<vmem>>, %arg30: memref<1x128xf32, #tpu.memory_space<vmem>>, %arg31: memref<1x128xf32, #tpu.memory_space<vmem>>, %arg32: memref<384x128xbf16, #tpu.memory_space<vmem>>, %arg33: memref<1x128xf32, #tpu.memory_space<vmem>>, %arg34: memref<4096x64xbf16, #tpu.memory_space<vmem>>, %arg35: memref<1x64xf32, #tpu.memory_space<vmem>>, %arg36: memref<64x32xf32, #tpu.memory_space<vmem>>, %arg37: memref<1x32xf32, #tpu.memory_space<vmem>>, %arg38: memref<32x128xf32, #tpu.memory_space<vmem>>, %arg39: memref<1x128xf32, #tpu.memory_space<vmem>>, %arg40: memref<8x128xf32, #tpu.memory_space<vmem>>) attributes {dimension_semantics = [#tpu.dimension_semantics<parallel>], iteration_bounds = array<i64: 1>, scalar_prefetch = 0 : i64, scratch_operands = 0 : i64, tpu.core_type = #tpu.core_type<tc>, window_params = [{transform_indices = @transform_0, window_bounds = array<i64: 8, 8>}, {pipeline_mode = #tpu.pipeline_mode<synchronous>, transform_indices = @transform_1, window_bounds = array<i64: 8, 8>}, {pipeline_mode = #tpu.pipeline_mode<synchronous>, transform_indices = @transform_2, window_bounds = array<i64: 1, 8>}, {pipeline_mode = #tpu.pipeline_mode<synchronous>, transform_indices = @transform_3, window_bounds = array<i64: 8, 128>}, {pipeline_mode = #tpu.pipeline_mode<synchronous>, transform_indices = @transform_4, window_bounds = array<i64: 1, 128>}, {pipeline_mode = #tpu.pipeline_mode<synchronous>, transform_indices = @transform_5, window_bounds = array<i64: 128, 32>}, {pipeline_mode = #tpu.pipeline_mode<synchronous>, transform_indices = @transform_6, window_bounds = array<i64: 1, 32>}, {pipeline_mode = #tpu.pipeline_mode<synchronous>, transform_indices = @transform_7, window_bounds = array<i64: 32, 128>}, {pipeline_mode = #tpu.pipeline_mode<synchronous>, transform_indices = @transform_8, window_bounds = array<i64: 1, 128>}, {pipeline_mode = #tpu.pipeline_mode<synchronous>, transform_indices = @transform_9, window_bounds = array<i64: 32, 128>}, {pipeline_mode = #tpu.pipeline_mode<synchronous>, transform_indices = @transform_10, window_bounds = array<i64: 1, 128>}, {pipeline_mode = #tpu.pipeline_mode<synchronous>, transform_indices = @transform_11, window_bounds = array<i64: 1, 128>}, {pipeline_mode = #tpu.pipeline_mode<synchronous>, transform_indices = @transform_12, window_bounds = array<i64: 1, 128>}, {pipeline_mode = #tpu.pipeline_mode<synchronous>, transform_indices = @transform_13, window_bounds = array<i64: 384, 128>}, {pipeline_mode = #tpu.pipeline_mode<synchronous>, transform_indices = @transform_14, window_bounds = array<i64: 1, 128>}, {pipeline_mode = #tpu.pipeline_mode<synchronous>, transform_indices = @transform_15, window_bounds = array<i64: 1, 128>}, {pipeline_mode = #tpu.pipeline_mode<synchronous>, transform_indices = @transform_16, window_bounds = array<i64: 1, 128>}, {pipeline_mode = #tpu.pipeline_mode<synchronous>, transform_indices = @transform_17, window_bounds = array<i64: 384, 128>}, {pipeline_mode = #tpu.pipeline_mode<synchronous>, transform_indices = @transform_18, window_bounds = array<i64: 1, 128>}, {pipeline_mode = #tpu.pipeline_mode<synchronous>, transform_indices = @transform_19, window_bounds = array<i64: 1, 128>}, {pipeline_mode = #tpu.pipeline_mode<synchronous>, transform_indices = @transform_20, window_bounds = array<i64: 1, 128>}, {pipeline_mode = #tpu.pipeline_mode<synchronous>, transform_indices = @transform_21, window_bounds = array<i64: 1, 128>}, {pipeline_mode = #tpu.pipeline_mode<synchronous>, transform_indices = @transform_22, window_bounds = array<i64: 1, 128>}, {pipeline_mode = #tpu.pipeline_mode<synchronous>, transform_indices = @transform_23, window_bounds = array<i64: 384, 128>}, {pipeline_mode = #tpu.pipeline_mode<synchronous>, transform_indices = @transform_24, window_bounds = array<i64: 1, 128>}, {pipeline_mode = #tpu.pipeline_mode<synchronous>, transform_indices = @transform_25, window_bounds = array<i64: 1, 128>}, {pipeline_mode = #tpu.pipeline_mode<synchronous>, transform_indices = @transform_26, window_bounds = array<i64: 1, 128>}, {pipeline_mode = #tpu.pipeline_mode<synchronous>, transform_indices = @transform_27, window_bounds = array<i64: 384, 128>}, {pipeline_mode = #tpu.pipeline_mode<synchronous>, transform_indices = @transform_28, window_bounds = array<i64: 1, 128>}, {pipeline_mode = #tpu.pipeline_mode<synchronous>, transform_indices = @transform_29, window_bounds = array<i64: 1, 128>}, {pipeline_mode = #tpu.pipeline_mode<synchronous>, transform_indices = @transform_30, window_bounds = array<i64: 1, 128>}, {pipeline_mode = #tpu.pipeline_mode<synchronous>, transform_indices = @transform_31, window_bounds = array<i64: 384, 128>}, {pipeline_mode = #tpu.pipeline_mode<synchronous>, transform_indices = @transform_32, window_bounds = array<i64: 1, 128>}, {pipeline_mode = #tpu.pipeline_mode<synchronous>, transform_indices = @transform_33, window_bounds = array<i64: 4096, 64>}, {pipeline_mode = #tpu.pipeline_mode<synchronous>, transform_indices = @transform_34, window_bounds = array<i64: 1, 64>}, {pipeline_mode = #tpu.pipeline_mode<synchronous>, transform_indices = @transform_35, window_bounds = array<i64: 64, 32>}, {pipeline_mode = #tpu.pipeline_mode<synchronous>, transform_indices = @transform_36, window_bounds = array<i64: 1, 32>}, {pipeline_mode = #tpu.pipeline_mode<synchronous>, transform_indices = @transform_37, window_bounds = array<i64: 32, 128>}, {pipeline_mode = #tpu.pipeline_mode<synchronous>, transform_indices = @transform_38, window_bounds = array<i64: 1, 128>}, {transform_indices = @transform_39, window_bounds = array<i64: 8, 128>}]} {
    %c0 = arith.constant 0 : index
    %c0_0 = arith.constant 0 : index
    %0 = vector.load %arg1[%c0, %c0_0] : memref<8x8xf32, #tpu.memory_space<vmem>>, vector<8x8xf32>
    %c0_1 = arith.constant 0 : index
    %c0_2 = arith.constant 0 : index
    %1 = vector.load %arg2[%c0_1, %c0_2] : memref<8x8xf32, #tpu.memory_space<vmem>>, vector<8x8xf32>
    %cst = arith.constant dense<0.000000e+00> : vector<8x8xf32>
    %2 = tpu.matmul %0, %1, %cst {dimension_numbers = #tpu.dot_dimension_numbers<[1], [0], [0], [1], [0, 0, 1, 1], [], []>} : vector<8x8xf32>, vector<8x8xf32>, vector<8x8xf32> -> vector<8x8xf32>
    %c0_3 = arith.constant 0 : index
    %c0_4 = arith.constant 0 : index
    %3 = vector.load %arg3[%c0_3, %c0_4] : memref<1x8xf32, #tpu.memory_space<vmem>>, vector<1x8xf32>
    %4 = vector.broadcast %3 : vector<1x8xf32> to vector<8x8xf32>
    %5 = arith.addf %2, %4 : vector<8x8xf32>
    %cst_5 = arith.constant 0.000000e+00 : f32
    %6 = vector.broadcast %cst_5 : f32 to vector<8x8xf32>
    %7 = arith.maximumf %5, %6 : vector<8x8xf32>
    %c0_6 = arith.constant 0 : index
    %c0_7 = arith.constant 0 : index
    %8 = vector.load %arg4[%c0_6, %c0_7] : memref<8x128xf32, #tpu.memory_space<vmem>>, vector<8x128xf32>
    %cst_8 = arith.constant dense<0.000000e+00> : vector<8x128xf32>
    %9 = tpu.matmul %7, %8, %cst_8 {dimension_numbers = #tpu.dot_dimension_numbers<[1], [0], [0], [1], [0, 0, 1, 1], [], []>} : vector<8x8xf32>, vector<8x128xf32>, vector<8x128xf32> -> vector<8x128xf32>
    %c0_9 = arith.constant 0 : index
    %c0_10 = arith.constant 0 : index
    %10 = vector.load %arg5[%c0_9, %c0_10] : memref<1x128xf32, #tpu.memory_space<vmem>>, vector<1x128xf32>
    %11 = vector.broadcast %10 : vector<1x128xf32> to vector<8x128xf32>
    %12 = arith.addf %9, %11 : vector<8x128xf32>
    %cst_11 = arith.constant 0.000000e+00 : f32
    %13 = vector.broadcast %cst_11 : f32 to vector<8x128xf32>
    %14 = arith.maximumf %12, %13 : vector<8x128xf32>
    %c0_12 = arith.constant 0 : index
    %c0_13 = arith.constant 0 : index
    %15 = vector.load %arg6[%c0_12, %c0_13] : memref<128x32xf32, #tpu.memory_space<vmem>>, vector<128x32xf32>
    %cst_14 = arith.constant dense<0.000000e+00> : vector<8x32xf32>
    %16 = tpu.matmul %14, %15, %cst_14 {dimension_numbers = #tpu.dot_dimension_numbers<[1], [0], [0], [1], [0, 0, 1, 1], [], []>} : vector<8x128xf32>, vector<128x32xf32>, vector<8x32xf32> -> vector<8x32xf32>
    %c0_15 = arith.constant 0 : index
    %c0_16 = arith.constant 0 : index
    %17 = vector.load %arg7[%c0_15, %c0_16] : memref<1x32xf32, #tpu.memory_space<vmem>>, vector<1x32xf32>
    %18 = vector.broadcast %17 : vector<1x32xf32> to vector<8x32xf32>
    %19 = arith.addf %16, %18 : vector<8x32xf32>
    %20 = vector.shape_cast %19 : vector<8x32xf32> to vector<1x8x32xf32>
    %21 = vector.shape_cast %20 : vector<1x8x32xf32> to vector<1x8x32xf32>
    %22 = vector.broadcast %21 : vector<1x8x32xf32> to vector<32x8x32xf32>
    %23 = vector.shape_cast %22 : vector<32x8x32xf32> to vector<256x32xf32>
    %24 = tpu.iota {dimensions = array<i32: 0>} : vector<32x8x32xi32>
    %25 = vector.shape_cast %24 : vector<32x8x32xi32> to vector<256x32xi32>
    %26 = tpu.iota {dimensions = array<i32: 2>} : vector<32x8x32xi32>
    %27 = vector.shape_cast %26 : vector<32x8x32xi32> to vector<256x32xi32>
    %28 = arith.cmpi eq, %27, %25 : vector<256x32xi32>
    %cst_17 = arith.constant 0.000000e+00 : f32
    %29 = vector.broadcast %cst_17 : f32 to vector<256x32xf32>
    %30 = arith.select %28, %23, %29 : vector<256x32xi1>, vector<256x32xf32>
    %c0_18 = arith.constant 0 : index
    %c0_19 = arith.constant 0 : index
    %31 = vector.load %arg8[%c0_18, %c0_19] : memref<32x128xf32, #tpu.memory_space<vmem>>, vector<32x128xf32>
    %cst_20 = arith.constant dense<0.000000e+00> : vector<256x128xf32>
    %32 = tpu.matmul %30, %31, %cst_20 {dimension_numbers = #tpu.dot_dimension_numbers<[1], [0], [0], [1], [0, 0, 1, 1], [], []>} : vector<256x32xf32>, vector<32x128xf32>, vector<256x128xf32> -> vector<256x128xf32>
    %c0_21 = arith.constant 0 : index
    %c0_22 = arith.constant 0 : index
    %33 = vector.load %arg9[%c0_21, %c0_22] : memref<1x128xf32, #tpu.memory_space<vmem>>, vector<1x128xf32>
    %34 = vector.broadcast %33 : vector<1x128xf32> to vector<256x128xf32>
    %35 = arith.addf %32, %34 : vector<256x128xf32>
    %c0_23 = arith.constant 0 : index
    %c0_24 = arith.constant 0 : index
    %36 = vector.load %arg10[%c0_23, %c0_24] : memref<32x128xf32, #tpu.memory_space<vmem>>, vector<32x128xf32>
    %cst_25 = arith.constant dense<0.000000e+00> : vector<256x128xf32>
    %37 = tpu.matmul %30, %36, %cst_25 {dimension_numbers = #tpu.dot_dimension_numbers<[1], [0], [0], [1], [0, 0, 1, 1], [], []>} : vector<256x32xf32>, vector<32x128xf32>, vector<256x128xf32> -> vector<256x128xf32>
    %c0_26 = arith.constant 0 : index
    %c0_27 = arith.constant 0 : index
    %38 = vector.load %arg11[%c0_26, %c0_27] : memref<1x128xf32, #tpu.memory_space<vmem>>, vector<1x128xf32>
    %39 = vector.broadcast %38 : vector<1x128xf32> to vector<256x128xf32>
    %40 = arith.addf %37, %39 : vector<256x128xf32>
    %cst_28 = arith.constant 0.000000e+00 : f32
    %41 = vector.broadcast %cst_28 : f32 to vector<256x128xf32>
    %42 = arith.maximumf %40, %41 : vector<256x128xf32>
    %c0_29 = arith.constant 0 : index
    %c0_30 = arith.constant 0 : index
    %43 = vector.load %arg12[%c0_29, %c0_30] : memref<1x128xf32, #tpu.memory_space<vmem>>, vector<1x128xf32>
    %44 = vector.broadcast %43 : vector<1x128xf32> to vector<256x128xf32>
    %45 = arith.mulf %42, %44 : vector<256x128xf32>
    %c0_31 = arith.constant 0 : index
    %c0_32 = arith.constant 0 : index
    %46 = vector.load %arg13[%c0_31, %c0_32] : memref<1x128xf32, #tpu.memory_space<vmem>>, vector<1x128xf32>
    %47 = vector.broadcast %46 : vector<1x128xf32> to vector<256x128xf32>
    %48 = arith.addf %45, %47 : vector<256x128xf32>
    %cst_33 = arith.constant 0.000000e+00 : f32
    %49 = vector.broadcast %cst_33 : f32 to vector<8x128xf32>
    %50 = tpu.concatenate %49, %48, %49 in 0 : vector<8x128xf32>, vector<256x128xf32>, vector<8x128xf32> -> vector<272x128xf32>
    %51 = vector.extract_strided_slice %50 {offsets = [0, 0], sizes = [256, 128], strides = [1, 1]} : vector<272x128xf32> to vector<256x128xf32>
    %52 = vector.extract_strided_slice %50 {offsets = [16, 0], sizes = [256, 128], strides = [1, 1]} : vector<272x128xf32> to vector<256x128xf32>
    %53 = tpu.concatenate %51, %48, %52 in 1 : vector<256x128xf32>, vector<256x128xf32>, vector<256x128xf32> -> vector<256x384xf32>
    %54 = arith.truncf %53 : vector<256x384xf32> to vector<256x384xbf16>
    %c0_34 = arith.constant 0 : index
    %c0_35 = arith.constant 0 : index
    %55 = vector.load %arg14[%c0_34, %c0_35] : memref<384x128xbf16, #tpu.memory_space<vmem>>, vector<384x128xbf16>
    %cst_36 = arith.constant dense<0.000000e+00> : vector<256x128xf32>
    %56 = tpu.matmul %54, %55, %cst_36 {dimension_numbers = #tpu.dot_dimension_numbers<[1], [0], [0], [1], [0, 0, 1, 1], [], []>} : vector<256x384xbf16>, vector<384x128xbf16>, vector<256x128xf32> -> vector<256x128xf32>
    %c0_37 = arith.constant 0 : index
    %c0_38 = arith.constant 0 : index
    %57 = vector.load %arg15[%c0_37, %c0_38] : memref<1x128xf32, #tpu.memory_space<vmem>>, vector<1x128xf32>
    %58 = vector.broadcast %57 : vector<1x128xf32> to vector<256x128xf32>
    %59 = arith.addf %56, %58 : vector<256x128xf32>
    %cst_39 = arith.constant 0.000000e+00 : f32
    %60 = vector.broadcast %cst_39 : f32 to vector<256x128xf32>
    %61 = arith.maximumf %59, %60 : vector<256x128xf32>
    %c0_40 = arith.constant 0 : index
    %c0_41 = arith.constant 0 : index
    %62 = vector.load %arg16[%c0_40, %c0_41] : memref<1x128xf32, #tpu.memory_space<vmem>>, vector<1x128xf32>
    %63 = vector.broadcast %62 : vector<1x128xf32> to vector<256x128xf32>
    %64 = arith.mulf %61, %63 : vector<256x128xf32>
    %c0_42 = arith.constant 0 : index
    %c0_43 = arith.constant 0 : index
    %65 = vector.load %arg17[%c0_42, %c0_43] : memref<1x128xf32, #tpu.memory_space<vmem>>, vector<1x128xf32>
    %66 = vector.broadcast %65 : vector<1x128xf32> to vector<256x128xf32>
    %67 = arith.addf %64, %66 : vector<256x128xf32>
    %cst_44 = arith.constant 0.000000e+00 : f32
    %68 = vector.broadcast %cst_44 : f32 to vector<8x128xf32>
    %69 = tpu.concatenate %68, %67, %68 in 0 : vector<8x128xf32>, vector<256x128xf32>, vector<8x128xf32> -> vector<272x128xf32>
    %70 = vector.extract_strided_slice %69 {offsets = [0, 0], sizes = [256, 128], strides = [1, 1]} : vector<272x128xf32> to vector<256x128xf32>
    %71 = vector.extract_strided_slice %69 {offsets = [16, 0], sizes = [256, 128], strides = [1, 1]} : vector<272x128xf32> to vector<256x128xf32>
    %72 = tpu.concatenate %70, %67, %71 in 1 : vector<256x128xf32>, vector<256x128xf32>, vector<256x128xf32> -> vector<256x384xf32>
    %73 = arith.truncf %72 : vector<256x384xf32> to vector<256x384xbf16>
    %c0_45 = arith.constant 0 : index
    %c0_46 = arith.constant 0 : index
    %74 = vector.load %arg18[%c0_45, %c0_46] : memref<384x128xbf16, #tpu.memory_space<vmem>>, vector<384x128xbf16>
    %cst_47 = arith.constant dense<0.000000e+00> : vector<256x128xf32>
    %75 = tpu.matmul %73, %74, %cst_47 {dimension_numbers = #tpu.dot_dimension_numbers<[1], [0], [0], [1], [0, 0, 1, 1], [], []>} : vector<256x384xbf16>, vector<384x128xbf16>, vector<256x128xf32> -> vector<256x128xf32>
    %c0_48 = arith.constant 0 : index
    %c0_49 = arith.constant 0 : index
    %76 = vector.load %arg19[%c0_48, %c0_49] : memref<1x128xf32, #tpu.memory_space<vmem>>, vector<1x128xf32>
    %77 = vector.broadcast %76 : vector<1x128xf32> to vector<256x128xf32>
    %78 = arith.addf %75, %77 : vector<256x128xf32>
    %cst_50 = arith.constant 0.000000e+00 : f32
    %79 = vector.broadcast %cst_50 : f32 to vector<256x128xf32>
    %80 = arith.maximumf %78, %79 : vector<256x128xf32>
    %c0_51 = arith.constant 0 : index
    %c0_52 = arith.constant 0 : index
    %81 = vector.load %arg20[%c0_51, %c0_52] : memref<1x128xf32, #tpu.memory_space<vmem>>, vector<1x128xf32>
    %82 = vector.broadcast %81 : vector<1x128xf32> to vector<256x128xf32>
    %83 = arith.mulf %80, %82 : vector<256x128xf32>
    %c0_53 = arith.constant 0 : index
    %c0_54 = arith.constant 0 : index
    %84 = vector.load %arg21[%c0_53, %c0_54] : memref<1x128xf32, #tpu.memory_space<vmem>>, vector<1x128xf32>
    %85 = vector.broadcast %84 : vector<1x128xf32> to vector<256x128xf32>
    %86 = arith.addf %83, %85 : vector<256x128xf32>
    %87 = arith.addf %86, %35 : vector<256x128xf32>
    %cst_55 = arith.constant 0.000000e+00 : f32
    %88 = vector.broadcast %cst_55 : f32 to vector<256x128xf32>
    %89 = arith.maximumf %87, %88 : vector<256x128xf32>
    %c0_56 = arith.constant 0 : index
    %c0_57 = arith.constant 0 : index
    %90 = vector.load %arg22[%c0_56, %c0_57] : memref<1x128xf32, #tpu.memory_space<vmem>>, vector<1x128xf32>
    %91 = vector.broadcast %90 : vector<1x128xf32> to vector<256x128xf32>
    %92 = arith.mulf %89, %91 : vector<256x128xf32>
    %c0_58 = arith.constant 0 : index
    %c0_59 = arith.constant 0 : index
    %93 = vector.load %arg23[%c0_58, %c0_59] : memref<1x128xf32, #tpu.memory_space<vmem>>, vector<1x128xf32>
    %94 = vector.broadcast %93 : vector<1x128xf32> to vector<256x128xf32>
    %95 = arith.addf %92, %94 : vector<256x128xf32>
    %cst_60 = arith.constant 0.000000e+00 : f32
    %96 = vector.broadcast %cst_60 : f32 to vector<8x128xf32>
    %97 = tpu.concatenate %96, %95, %96 in 0 : vector<8x128xf32>, vector<256x128xf32>, vector<8x128xf32> -> vector<272x128xf32>
    %98 = vector.extract_strided_slice %97 {offsets = [0, 0], sizes = [256, 128], strides = [1, 1]} : vector<272x128xf32> to vector<256x128xf32>
    %99 = vector.extract_strided_slice %97 {offsets = [16, 0], sizes = [256, 128], strides = [1, 1]} : vector<272x128xf32> to vector<256x128xf32>
    %100 = tpu.concatenate %98, %95, %99 in 1 : vector<256x128xf32>, vector<256x128xf32>, vector<256x128xf32> -> vector<256x384xf32>
    %101 = arith.truncf %100 : vector<256x384xf32> to vector<256x384xbf16>
    %c0_61 = arith.constant 0 : index
    %c0_62 = arith.constant 0 : index
    %102 = vector.load %arg24[%c0_61, %c0_62] : memref<384x128xbf16, #tpu.memory_space<vmem>>, vector<384x128xbf16>
    %cst_63 = arith.constant dense<0.000000e+00> : vector<256x128xf32>
    %103 = tpu.matmul %101, %102, %cst_63 {dimension_numbers = #tpu.dot_dimension_numbers<[1], [0], [0], [1], [0, 0, 1, 1], [], []>} : vector<256x384xbf16>, vector<384x128xbf16>, vector<256x128xf32> -> vector<256x128xf32>
    %c0_64 = arith.constant 0 : index
    %c0_65 = arith.constant 0 : index
    %104 = vector.load %arg25[%c0_64, %c0_65] : memref<1x128xf32, #tpu.memory_space<vmem>>, vector<1x128xf32>
    %105 = vector.broadcast %104 : vector<1x128xf32> to vector<256x128xf32>
    %106 = arith.addf %103, %105 : vector<256x128xf32>
    %cst_66 = arith.constant 0.000000e+00 : f32
    %107 = vector.broadcast %cst_66 : f32 to vector<256x128xf32>
    %108 = arith.maximumf %106, %107 : vector<256x128xf32>
    %c0_67 = arith.constant 0 : index
    %c0_68 = arith.constant 0 : index
    %109 = vector.load %arg26[%c0_67, %c0_68] : memref<1x128xf32, #tpu.memory_space<vmem>>, vector<1x128xf32>
    %110 = vector.broadcast %109 : vector<1x128xf32> to vector<256x128xf32>
    %111 = arith.mulf %108, %110 : vector<256x128xf32>
    %c0_69 = arith.constant 0 : index
    %c0_70 = arith.constant 0 : index
    %112 = vector.load %arg27[%c0_69, %c0_70] : memref<1x128xf32, #tpu.memory_space<vmem>>, vector<1x128xf32>
    %113 = vector.broadcast %112 : vector<1x128xf32> to vector<256x128xf32>
    %114 = arith.addf %111, %113 : vector<256x128xf32>
    %cst_71 = arith.constant 0.000000e+00 : f32
    %115 = vector.broadcast %cst_71 : f32 to vector<8x128xf32>
    %116 = tpu.concatenate %115, %114, %115 in 0 : vector<8x128xf32>, vector<256x128xf32>, vector<8x128xf32> -> vector<272x128xf32>
    %117 = vector.extract_strided_slice %116 {offsets = [0, 0], sizes = [256, 128], strides = [1, 1]} : vector<272x128xf32> to vector<256x128xf32>
    %118 = vector.extract_strided_slice %116 {offsets = [16, 0], sizes = [256, 128], strides = [1, 1]} : vector<272x128xf32> to vector<256x128xf32>
    %119 = tpu.concatenate %117, %114, %118 in 1 : vector<256x128xf32>, vector<256x128xf32>, vector<256x128xf32> -> vector<256x384xf32>
    %120 = arith.truncf %119 : vector<256x384xf32> to vector<256x384xbf16>
    %c0_72 = arith.constant 0 : index
    %c0_73 = arith.constant 0 : index
    %121 = vector.load %arg28[%c0_72, %c0_73] : memref<384x128xbf16, #tpu.memory_space<vmem>>, vector<384x128xbf16>
    %cst_74 = arith.constant dense<0.000000e+00> : vector<256x128xf32>
    %122 = tpu.matmul %120, %121, %cst_74 {dimension_numbers = #tpu.dot_dimension_numbers<[1], [0], [0], [1], [0, 0, 1, 1], [], []>} : vector<256x384xbf16>, vector<384x128xbf16>, vector<256x128xf32> -> vector<256x128xf32>
    %c0_75 = arith.constant 0 : index
    %c0_76 = arith.constant 0 : index
    %123 = vector.load %arg29[%c0_75, %c0_76] : memref<1x128xf32, #tpu.memory_space<vmem>>, vector<1x128xf32>
    %124 = vector.broadcast %123 : vector<1x128xf32> to vector<256x128xf32>
    %125 = arith.addf %122, %124 : vector<256x128xf32>
    %cst_77 = arith.constant 0.000000e+00 : f32
    %126 = vector.broadcast %cst_77 : f32 to vector<256x128xf32>
    %127 = arith.maximumf %125, %126 : vector<256x128xf32>
    %c0_78 = arith.constant 0 : index
    %c0_79 = arith.constant 0 : index
    %128 = vector.load %arg30[%c0_78, %c0_79] : memref<1x128xf32, #tpu.memory_space<vmem>>, vector<1x128xf32>
    %129 = vector.broadcast %128 : vector<1x128xf32> to vector<256x128xf32>
    %130 = arith.mulf %127, %129 : vector<256x128xf32>
    %c0_80 = arith.constant 0 : index
    %c0_81 = arith.constant 0 : index
    %131 = vector.load %arg31[%c0_80, %c0_81] : memref<1x128xf32, #tpu.memory_space<vmem>>, vector<1x128xf32>
    %132 = vector.broadcast %131 : vector<1x128xf32> to vector<256x128xf32>
    %133 = arith.addf %130, %132 : vector<256x128xf32>
    %cst_82 = arith.constant 0.000000e+00 : f32
    %134 = vector.broadcast %cst_82 : f32 to vector<8x128xf32>
    %135 = tpu.concatenate %134, %133, %134 in 0 : vector<8x128xf32>, vector<256x128xf32>, vector<8x128xf32> -> vector<272x128xf32>
    %136 = vector.extract_strided_slice %135 {offsets = [0, 0], sizes = [256, 128], strides = [1, 1]} : vector<272x128xf32> to vector<256x128xf32>
    %137 = vector.extract_strided_slice %135 {offsets = [16, 0], sizes = [256, 128], strides = [1, 1]} : vector<272x128xf32> to vector<256x128xf32>
    %138 = tpu.concatenate %136, %133, %137 in 1 : vector<256x128xf32>, vector<256x128xf32>, vector<256x128xf32> -> vector<256x384xf32>
    %139 = arith.truncf %138 : vector<256x384xf32> to vector<256x384xbf16>
    %c0_83 = arith.constant 0 : index
    %c0_84 = arith.constant 0 : index
    %140 = vector.load %arg32[%c0_83, %c0_84] : memref<384x128xbf16, #tpu.memory_space<vmem>>, vector<384x128xbf16>
    %cst_85 = arith.constant dense<0.000000e+00> : vector<256x128xf32>
    %141 = tpu.matmul %139, %140, %cst_85 {dimension_numbers = #tpu.dot_dimension_numbers<[1], [0], [0], [1], [0, 0, 1, 1], [], []>} : vector<256x384xbf16>, vector<384x128xbf16>, vector<256x128xf32> -> vector<256x128xf32>
    %c0_86 = arith.constant 0 : index
    %c0_87 = arith.constant 0 : index
    %142 = vector.load %arg33[%c0_86, %c0_87] : memref<1x128xf32, #tpu.memory_space<vmem>>, vector<1x128xf32>
    %143 = vector.broadcast %142 : vector<1x128xf32> to vector<256x128xf32>
    %144 = arith.addf %141, %143 : vector<256x128xf32>
    %145 = arith.addf %144, %86 : vector<256x128xf32>
    %cst_88 = arith.constant 0.000000e+00 : f32
    %146 = vector.broadcast %cst_88 : f32 to vector<256x128xf32>
    %147 = arith.maximumf %145, %146 : vector<256x128xf32>
    %148 = vector.extract_strided_slice %147 {offsets = [0, 0], sizes = [8, 128], strides = [1, 1]} : vector<256x128xf32> to vector<8x128xf32>
    %149 = vector.extract_strided_slice %147 {offsets = [8, 0], sizes = [8, 128], strides = [1, 1]} : vector<256x128xf32> to vector<8x128xf32>
    %150 = vector.extract_strided_slice %147 {offsets = [16, 0], sizes = [8, 128], strides = [1, 1]} : vector<256x128xf32> to vector<8x128xf32>
    %151 = vector.extract_strided_slice %147 {offsets = [24, 0], sizes = [8, 128], strides = [1, 1]} : vector<256x128xf32> to vector<8x128xf32>
    %152 = vector.extract_strided_slice %147 {offsets = [32, 0], sizes = [8, 128], strides = [1, 1]} : vector<256x128xf32> to vector<8x128xf32>
    %153 = vector.extract_strided_slice %147 {offsets = [40, 0], sizes = [8, 128], strides = [1, 1]} : vector<256x128xf32> to vector<8x128xf32>
    %154 = vector.extract_strided_slice %147 {offsets = [48, 0], sizes = [8, 128], strides = [1, 1]} : vector<256x128xf32> to vector<8x128xf32>
    %155 = vector.extract_strided_slice %147 {offsets = [56, 0], sizes = [8, 128], strides = [1, 1]} : vector<256x128xf32> to vector<8x128xf32>
    %156 = vector.extract_strided_slice %147 {offsets = [64, 0], sizes = [8, 128], strides = [1, 1]} : vector<256x128xf32> to vector<8x128xf32>
    %157 = vector.extract_strided_slice %147 {offsets = [72, 0], sizes = [8, 128], strides = [1, 1]} : vector<256x128xf32> to vector<8x128xf32>
    %158 = vector.extract_strided_slice %147 {offsets = [80, 0], sizes = [8, 128], strides = [1, 1]} : vector<256x128xf32> to vector<8x128xf32>
    %159 = vector.extract_strided_slice %147 {offsets = [88, 0], sizes = [8, 128], strides = [1, 1]} : vector<256x128xf32> to vector<8x128xf32>
    %160 = vector.extract_strided_slice %147 {offsets = [96, 0], sizes = [8, 128], strides = [1, 1]} : vector<256x128xf32> to vector<8x128xf32>
    %161 = vector.extract_strided_slice %147 {offsets = [104, 0], sizes = [8, 128], strides = [1, 1]} : vector<256x128xf32> to vector<8x128xf32>
    %162 = vector.extract_strided_slice %147 {offsets = [112, 0], sizes = [8, 128], strides = [1, 1]} : vector<256x128xf32> to vector<8x128xf32>
    %163 = vector.extract_strided_slice %147 {offsets = [120, 0], sizes = [8, 128], strides = [1, 1]} : vector<256x128xf32> to vector<8x128xf32>
    %164 = vector.extract_strided_slice %147 {offsets = [128, 0], sizes = [8, 128], strides = [1, 1]} : vector<256x128xf32> to vector<8x128xf32>
    %165 = vector.extract_strided_slice %147 {offsets = [136, 0], sizes = [8, 128], strides = [1, 1]} : vector<256x128xf32> to vector<8x128xf32>
    %166 = vector.extract_strided_slice %147 {offsets = [144, 0], sizes = [8, 128], strides = [1, 1]} : vector<256x128xf32> to vector<8x128xf32>
    %167 = vector.extract_strided_slice %147 {offsets = [152, 0], sizes = [8, 128], strides = [1, 1]} : vector<256x128xf32> to vector<8x128xf32>
    %168 = vector.extract_strided_slice %147 {offsets = [160, 0], sizes = [8, 128], strides = [1, 1]} : vector<256x128xf32> to vector<8x128xf32>
    %169 = vector.extract_strided_slice %147 {offsets = [168, 0], sizes = [8, 128], strides = [1, 1]} : vector<256x128xf32> to vector<8x128xf32>
    %170 = vector.extract_strided_slice %147 {offsets = [176, 0], sizes = [8, 128], strides = [1, 1]} : vector<256x128xf32> to vector<8x128xf32>
    %171 = vector.extract_strided_slice %147 {offsets = [184, 0], sizes = [8, 128], strides = [1, 1]} : vector<256x128xf32> to vector<8x128xf32>
    %172 = vector.extract_strided_slice %147 {offsets = [192, 0], sizes = [8, 128], strides = [1, 1]} : vector<256x128xf32> to vector<8x128xf32>
    %173 = vector.extract_strided_slice %147 {offsets = [200, 0], sizes = [8, 128], strides = [1, 1]} : vector<256x128xf32> to vector<8x128xf32>
    %174 = vector.extract_strided_slice %147 {offsets = [208, 0], sizes = [8, 128], strides = [1, 1]} : vector<256x128xf32> to vector<8x128xf32>
    %175 = vector.extract_strided_slice %147 {offsets = [216, 0], sizes = [8, 128], strides = [1, 1]} : vector<256x128xf32> to vector<8x128xf32>
    %176 = vector.extract_strided_slice %147 {offsets = [224, 0], sizes = [8, 128], strides = [1, 1]} : vector<256x128xf32> to vector<8x128xf32>
    %177 = vector.extract_strided_slice %147 {offsets = [232, 0], sizes = [8, 128], strides = [1, 1]} : vector<256x128xf32> to vector<8x128xf32>
    %178 = vector.extract_strided_slice %147 {offsets = [240, 0], sizes = [8, 128], strides = [1, 1]} : vector<256x128xf32> to vector<8x128xf32>
    %179 = vector.extract_strided_slice %147 {offsets = [248, 0], sizes = [8, 128], strides = [1, 1]} : vector<256x128xf32> to vector<8x128xf32>
    %180 = tpu.concatenate %148, %149, %150, %151, %152, %153, %154, %155, %156, %157, %158, %159, %160, %161, %162, %163 in 1 : vector<8x128xf32>, vector<8x128xf32>, vector<8x128xf32>, vector<8x128xf32>, vector<8x128xf32>, vector<8x128xf32>, vector<8x128xf32>, vector<8x128xf32>, vector<8x128xf32>, vector<8x128xf32>, vector<8x128xf32>, vector<8x128xf32>, vector<8x128xf32>, vector<8x128xf32>, vector<8x128xf32>, vector<8x128xf32> -> vector<8x2048xf32>
    %181 = tpu.concatenate %164, %165, %166, %167, %168, %169, %170, %171, %172, %173, %174, %175, %176, %177, %178, %179 in 1 : vector<8x128xf32>, vector<8x128xf32>, vector<8x128xf32>, vector<8x128xf32>, vector<8x128xf32>, vector<8x128xf32>, vector<8x128xf32>, vector<8x128xf32>, vector<8x128xf32>, vector<8x128xf32>, vector<8x128xf32>, vector<8x128xf32>, vector<8x128xf32>, vector<8x128xf32>, vector<8x128xf32>, vector<8x128xf32> -> vector<8x2048xf32>
    %182 = tpu.concatenate %180, %181 in 1 : vector<8x2048xf32>, vector<8x2048xf32> -> vector<8x4096xf32>
    %183 = arith.truncf %182 : vector<8x4096xf32> to vector<8x4096xbf16>
    %c0_89 = arith.constant 0 : index
    %c0_90 = arith.constant 0 : index
    %184 = vector.load %arg34[%c0_89, %c0_90] : memref<4096x64xbf16, #tpu.memory_space<vmem>>, vector<4096x64xbf16>
    %cst_91 = arith.constant dense<0.000000e+00> : vector<8x64xf32>
    %185 = tpu.matmul %183, %184, %cst_91 {dimension_numbers = #tpu.dot_dimension_numbers<[1], [0], [0], [1], [0, 0, 1, 1], [], []>} : vector<8x4096xbf16>, vector<4096x64xbf16>, vector<8x64xf32> -> vector<8x64xf32>
    %c0_92 = arith.constant 0 : index
    %c0_93 = arith.constant 0 : index
    %186 = vector.load %arg35[%c0_92, %c0_93] : memref<1x64xf32, #tpu.memory_space<vmem>>, vector<1x64xf32>
    %187 = vector.broadcast %186 : vector<1x64xf32> to vector<8x64xf32>
    %188 = arith.addf %185, %187 : vector<8x64xf32>
    %cst_94 = arith.constant 0.000000e+00 : f32
    %189 = vector.broadcast %cst_94 : f32 to vector<8x64xf32>
    %190 = arith.maximumf %188, %189 : vector<8x64xf32>
    %c0_95 = arith.constant 0 : index
    %c0_96 = arith.constant 0 : index
    %191 = vector.load %arg36[%c0_95, %c0_96] : memref<64x32xf32, #tpu.memory_space<vmem>>, vector<64x32xf32>
    %cst_97 = arith.constant dense<0.000000e+00> : vector<8x32xf32>
    %192 = tpu.matmul %190, %191, %cst_97 {dimension_numbers = #tpu.dot_dimension_numbers<[1], [0], [0], [1], [0, 0, 1, 1], [], []>} : vector<8x64xf32>, vector<64x32xf32>, vector<8x32xf32> -> vector<8x32xf32>
    %c0_98 = arith.constant 0 : index
    %c0_99 = arith.constant 0 : index
    %193 = vector.load %arg37[%c0_98, %c0_99] : memref<1x32xf32, #tpu.memory_space<vmem>>, vector<1x32xf32>
    %194 = vector.broadcast %193 : vector<1x32xf32> to vector<8x32xf32>
    %195 = arith.addf %192, %194 : vector<8x32xf32>
    %cst_100 = arith.constant 0.000000e+00 : f32
    %196 = vector.broadcast %cst_100 : f32 to vector<8x32xf32>
    %197 = arith.maximumf %195, %196 : vector<8x32xf32>
    %c0_101 = arith.constant 0 : index
    %c0_102 = arith.constant 0 : index
    %198 = vector.load %arg38[%c0_101, %c0_102] : memref<32x128xf32, #tpu.memory_space<vmem>>, vector<32x128xf32>
    %cst_103 = arith.constant dense<0.000000e+00> : vector<8x128xf32>
    %199 = tpu.matmul %197, %198, %cst_103 {dimension_numbers = #tpu.dot_dimension_numbers<[1], [0], [0], [1], [0, 0, 1, 1], [], []>} : vector<8x32xf32>, vector<32x128xf32>, vector<8x128xf32> -> vector<8x128xf32>
    %c0_104 = arith.constant 0 : index
    %c0_105 = arith.constant 0 : index
    %200 = vector.load %arg39[%c0_104, %c0_105] : memref<1x128xf32, #tpu.memory_space<vmem>>, vector<1x128xf32>
    %201 = vector.broadcast %200 : vector<1x128xf32> to vector<8x128xf32>
    %202 = arith.addf %199, %201 : vector<8x128xf32>
    %c0_106 = arith.constant 0 : index
    %c0_107 = arith.constant 0 : index
    %203 = vector.load %arg40[%c0_106, %c0_107] : memref<8x128xf32, #tpu.memory_space<vmem>>, vector<8x128xf32>
    tpu.vector_store %arg40[%c0_106, %c0_107], %202 {strides = array<i32>} : memref<8x128xf32, #tpu.memory_space<vmem>>, vector<8x128xf32>,
    return
  }
  func.func @transform_0(%arg0: i32) -> (i32, i32) {
    %c0_i32 = arith.constant 0 : i32
    %c0_i32_0 = arith.constant 0 : i32
    return %arg0, %c0_i32 : i32, i32
  }
  func.func @transform_1(%arg0: i32) -> (i32, i32) {
    %c0_i32 = arith.constant 0 : i32
    %c0_i32_0 = arith.constant 0 : i32
    %c0_i32_1 = arith.constant 0 : i32
    return %c0_i32, %c0_i32_0 : i32, i32
  }
  func.func @transform_2(%arg0: i32) -> (i32, i32) {
    %c0_i32 = arith.constant 0 : i32
    %c0_i32_0 = arith.constant 0 : i32
    %c0_i32_1 = arith.constant 0 : i32
    return %c0_i32, %c0_i32_0 : i32, i32
  }
  func.func @transform_3(%arg0: i32) -> (i32, i32) {
    %c0_i32 = arith.constant 0 : i32
    %c0_i32_0 = arith.constant 0 : i32
    %c0_i32_1 = arith.constant 0 : i32
    return %c0_i32, %c0_i32_0 : i32, i32
  }
  func.func @transform_4(%arg0: i32) -> (i32, i32) {
    %c0_i32 = arith.constant 0 : i32
    %c0_i32_0 = arith.constant 0 : i32
    %c0_i32_1 = arith.constant 0 : i32
    return %c0_i32, %c0_i32_0 : i32, i32
  }
  func.func @transform_5(%arg0: i32) -> (i32, i32) {
    %c0_i32 = arith.constant 0 : i32
    %c0_i32_0 = arith.constant 0 : i32
    %c0_i32_1 = arith.constant 0 : i32
    return %c0_i32, %c0_i32_0 : i32, i32
  }
  func.func @transform_6(%arg0: i32) -> (i32, i32) {
    %c0_i32 = arith.constant 0 : i32
    %c0_i32_0 = arith.constant 0 : i32
    %c0_i32_1 = arith.constant 0 : i32
    return %c0_i32, %c0_i32_0 : i32, i32
  }
  func.func @transform_7(%arg0: i32) -> (i32, i32) {
    %c0_i32 = arith.constant 0 : i32
    %c0_i32_0 = arith.constant 0 : i32
    %c0_i32_1 = arith.constant 0 : i32
    return %c0_i32, %c0_i32_0 : i32, i32
  }
  func.func @transform_8(%arg0: i32) -> (i32, i32) {
    %c0_i32 = arith.constant 0 : i32
    %c0_i32_0 = arith.constant 0 : i32
    %c0_i32_1 = arith.constant 0 : i32
    return %c0_i32, %c0_i32_0 : i32, i32
  }
  func.func @transform_9(%arg0: i32) -> (i32, i32) {
    %c0_i32 = arith.constant 0 : i32
    %c0_i32_0 = arith.constant 0 : i32
    %c0_i32_1 = arith.constant 0 : i32
    return %c0_i32, %c0_i32_0 : i32, i32
  }
  func.func @transform_10(%arg0: i32) -> (i32, i32) {
    %c0_i32 = arith.constant 0 : i32
    %c0_i32_0 = arith.constant 0 : i32
    %c0_i32_1 = arith.constant 0 : i32
    return %c0_i32, %c0_i32_0 : i32, i32
  }
  func.func @transform_11(%arg0: i32) -> (i32, i32) {
    %c0_i32 = arith.constant 0 : i32
    %c0_i32_0 = arith.constant 0 : i32
    %c0_i32_1 = arith.constant 0 : i32
    return %c0_i32, %c0_i32_0 : i32, i32
  }
  func.func @transform_12(%arg0: i32) -> (i32, i32) {
    %c0_i32 = arith.constant 0 : i32
    %c0_i32_0 = arith.constant 0 : i32
    %c0_i32_1 = arith.constant 0 : i32
    return %c0_i32, %c0_i32_0 : i32, i32
  }
  func.func @transform_13(%arg0: i32) -> (i32, i32) {
    %c0_i32 = arith.constant 0 : i32
    %c0_i32_0 = arith.constant 0 : i32
    %c0_i32_1 = arith.constant 0 : i32
    return %c0_i32, %c0_i32_0 : i32, i32
  }
  func.func @transform_14(%arg0: i32) -> (i32, i32) {
    %c0_i32 = arith.constant 0 : i32
    %c0_i32_0 = arith.constant 0 : i32
    %c0_i32_1 = arith.constant 0 : i32
    return %c0_i32, %c0_i32_0 : i32, i32
  }
  func.func @transform_15(%arg0: i32) -> (i32, i32) {
    %c0_i32 = arith.constant 0 : i32
    %c0_i32_0 = arith.constant 0 : i32
    %c0_i32_1 = arith.constant 0 : i32
    return %c0_i32, %c0_i32_0 : i32, i32
  }
  func.func @transform_16(%arg0: i32) -> (i32, i32) {
    %c0_i32 = arith.constant 0 : i32
    %c0_i32_0 = arith.constant 0 : i32
    %c0_i32_1 = arith.constant 0 : i32
    return %c0_i32, %c0_i32_0 : i32, i32
  }
  func.func @transform_17(%arg0: i32) -> (i32, i32) {
    %c0_i32 = arith.constant 0 : i32
    %c0_i32_0 = arith.constant 0 : i32
    %c0_i32_1 = arith.constant 0 : i32
    return %c0_i32, %c0_i32_0 : i32, i32
  }
  func.func @transform_18(%arg0: i32) -> (i32, i32) {
    %c0_i32 = arith.constant 0 : i32
    %c0_i32_0 = arith.constant 0 : i32
    %c0_i32_1 = arith.constant 0 : i32
    return %c0_i32, %c0_i32_0 : i32, i32
  }
  func.func @transform_19(%arg0: i32) -> (i32, i32) {
    %c0_i32 = arith.constant 0 : i32
    %c0_i32_0 = arith.constant 0 : i32
    %c0_i32_1 = arith.constant 0 : i32
    return %c0_i32, %c0_i32_0 : i32, i32
  }
  func.func @transform_20(%arg0: i32) -> (i32, i32) {
    %c0_i32 = arith.constant 0 : i32
    %c0_i32_0 = arith.constant 0 : i32
    %c0_i32_1 = arith.constant 0 : i32
    return %c0_i32, %c0_i32_0 : i32, i32
  }
  func.func @transform_21(%arg0: i32) -> (i32, i32) {
    %c0_i32 = arith.constant 0 : i32
    %c0_i32_0 = arith.constant 0 : i32
    %c0_i32_1 = arith.constant 0 : i32
    return %c0_i32, %c0_i32_0 : i32, i32
  }
  func.func @transform_22(%arg0: i32) -> (i32, i32) {
    %c0_i32 = arith.constant 0 : i32
    %c0_i32_0 = arith.constant 0 : i32
    %c0_i32_1 = arith.constant 0 : i32
    return %c0_i32, %c0_i32_0 : i32, i32
  }
  func.func @transform_23(%arg0: i32) -> (i32, i32) {
    %c0_i32 = arith.constant 0 : i32
    %c0_i32_0 = arith.constant 0 : i32
    %c0_i32_1 = arith.constant 0 : i32
    return %c0_i32, %c0_i32_0 : i32, i32
  }
  func.func @transform_24(%arg0: i32) -> (i32, i32) {
    %c0_i32 = arith.constant 0 : i32
    %c0_i32_0 = arith.constant 0 : i32
    %c0_i32_1 = arith.constant 0 : i32
    return %c0_i32, %c0_i32_0 : i32, i32
  }
  func.func @transform_25(%arg0: i32) -> (i32, i32) {
    %c0_i32 = arith.constant 0 : i32
    %c0_i32_0 = arith.constant 0 : i32
    %c0_i32_1 = arith.constant 0 : i32
    return %c0_i32, %c0_i32_0 : i32, i32
  }
  func.func @transform_26(%arg0: i32) -> (i32, i32) {
    %c0_i32 = arith.constant 0 : i32
    %c0_i32_0 = arith.constant 0 : i32
    %c0_i32_1 = arith.constant 0 : i32
    return %c0_i32, %c0_i32_0 : i32, i32
  }
  func.func @transform_27(%arg0: i32) -> (i32, i32) {
    %c0_i32 = arith.constant 0 : i32
    %c0_i32_0 = arith.constant 0 : i32
    %c0_i32_1 = arith.constant 0 : i32
    return %c0_i32, %c0_i32_0 : i32, i32
  }
  func.func @transform_28(%arg0: i32) -> (i32, i32) {
    %c0_i32 = arith.constant 0 : i32
    %c0_i32_0 = arith.constant 0 : i32
    %c0_i32_1 = arith.constant 0 : i32
    return %c0_i32, %c0_i32_0 : i32, i32
  }
  func.func @transform_29(%arg0: i32) -> (i32, i32) {
    %c0_i32 = arith.constant 0 : i32
    %c0_i32_0 = arith.constant 0 : i32
    %c0_i32_1 = arith.constant 0 : i32
    return %c0_i32, %c0_i32_0 : i32, i32
  }
  func.func @transform_30(%arg0: i32) -> (i32, i32) {
    %c0_i32 = arith.constant 0 : i32
    %c0_i32_0 = arith.constant 0 : i32
    %c0_i32_1 = arith.constant 0 : i32
    return %c0_i32, %c0_i32_0 : i32, i32
  }
  func.func @transform_31(%arg0: i32) -> (i32, i32) {
    %c0_i32 = arith.constant 0 : i32
    %c0_i32_0 = arith.constant 0 : i32
    %c0_i32_1 = arith.constant 0 : i32
    return %c0_i32, %c0_i32_0 : i32, i32
  }
  func.func @transform_32(%arg0: i32) -> (i32, i32) {
    %c0_i32 = arith.constant 0 : i32
    %c0_i32_0 = arith.constant 0 : i32
    %c0_i32_1 = arith.constant 0 : i32
    return %c0_i32, %c0_i32_0 : i32, i32
  }
  func.func @transform_33(%arg0: i32) -> (i32, i32) {
    %c0_i32 = arith.constant 0 : i32
    %c0_i32_0 = arith.constant 0 : i32
    %c0_i32_1 = arith.constant 0 : i32
    return %c0_i32, %c0_i32_0 : i32, i32
  }
  func.func @transform_34(%arg0: i32) -> (i32, i32) {
    %c0_i32 = arith.constant 0 : i32
    %c0_i32_0 = arith.constant 0 : i32
    %c0_i32_1 = arith.constant 0 : i32
    return %c0_i32, %c0_i32_0 : i32, i32
  }
  func.func @transform_35(%arg0: i32) -> (i32, i32) {
    %c0_i32 = arith.constant 0 : i32
    %c0_i32_0 = arith.constant 0 : i32
    %c0_i32_1 = arith.constant 0 : i32
    return %c0_i32, %c0_i32_0 : i32, i32
  }
  func.func @transform_36(%arg0: i32) -> (i32, i32) {
    %c0_i32 = arith.constant 0 : i32
    %c0_i32_0 = arith.constant 0 : i32
    %c0_i32_1 = arith.constant 0 : i32
    return %c0_i32, %c0_i32_0 : i32, i32
  }
  func.func @transform_37(%arg0: i32) -> (i32, i32) {
    %c0_i32 = arith.constant 0 : i32
    %c0_i32_0 = arith.constant 0 : i32
    %c0_i32_1 = arith.constant 0 : i32
    return %c0_i32, %c0_i32_0 : i32, i32
  }
  func.func @transform_38(%arg0: i32) -> (i32, i32) {
    %c0_i32 = arith.constant 0 : i32
    %c0_i32_0 = arith.constant 0 : i32
    %c0_i32_1 = arith.constant 0 : i32
    return %c0_i32, %c0_i32_0 : i32, i32
  }
  func.func @transform_39(%arg0: i32) -> (i32, i32) {
    %c0_i32 = arith.constant 0 : i32
    %c0_i32_0 = arith.constant 0 : i32
    return %arg0, %c0_i32 : i32, i32
  }
}

</mosaic_0001>

<bundles_post_ra>
// kernel: cnn_lstm_forward.1
= control target key start
LH: loop header
LB: loop body
LE: loop exit
PB: predicated region body
PF: predicated region fallthrough
CT: control target
= control target key end

     0   :  { %v11976_v0 = vmov 0.0   ;;  %s10050_s3 = smov 1   ;;  %vm10051_vm0 = vmmov 0   ;;  %vm172_vm1 = vcmask 64512   ;;  %s10052_s10 = smov 3   ;;  %v11974_v4 = vmov 0.0|0.0   ;;  %s11973_s0 = inlined_call_operand.smem [shape: u32[40], index: -1, kind: input, shape index: {}] }
   0x1   :  { %9137 = vmatprep.subr.mxu1 %v11976_v0  ;;  %s7490_s6 = sld [smem:[%s11973_s0 + %s10050_s3]]   ;;  %9139 = vmatprep.mubr.msk.f32.mxu1 %vm10051_vm0, %v11976_v0  ;;  %s10054_s14 = smov 5   ;;  %v422_v53 = vlaneseq  ;;  %vm499_vm4 = vcmask 261120  }
   0x2   :  { %s1_s9 = sld [smem:[%s11973_s0]]   ;;  %9179 = vmatprep.mubr.msk.f32.mxu0 %vm10051_vm0, %v11976_v0  ;;  %9564 = vmatprep.subr.bf16.mxu0 %v11974_v4  ;;  %s10055_s18 = smov 2  }
   0x3   :  { %s7492_s13 = sld [smem:[%s11973_s0 + %s10052_s10]]   ;;  %s10056_s22 = smov 7   ;;  %v10166_v54 = vand.u32 127, %v422_v53 }
   0x4   :  { %s10118_s17 = sld [smem:[%s11973_s0 + %s10054_s14]]   ;;  %s10057_s26 = smov 9  }
   0x5   :  { %s7491_s21 = sld [smem:[%s11973_s0 + %s10055_s18]]   ;;  %s10058_s30 = smov 4   ;;  %vm424_vm2 = vcmp.eq.s32.totalorder %v10166_v54, 0  ;;  %vm425_vm3 = vcmp.eq.s32.totalorder %v10166_v54, 1  ;;  %vm426_vm5 = vcmp.eq.s32.totalorder %v10166_v54, 2  ;;  %vm427_vm6 = vcmp.eq.s32.totalorder %v10166_v54, 3 }
   0x6   :  { %s7496_s25 = sld [smem:[%s11973_s0 + %s10056_s22]]   ;;  %s10059_s4 = smov 13   ;;  %vm428_vm7 = vcmp.eq.s32.totalorder %v10166_v54, 4  ;;  %vm429_vm8 = vcmp.eq.s32.totalorder %v10166_v54, 5  ;;  %vm430_vm9 = vcmp.eq.s32.totalorder %v10166_v54, 6  ;;  %vm431_vm10 = vcmp.eq.s32.totalorder %v10166_v54, 7 }
   0x7   :  { %v164_v1 = vld [vmem:[%s7490_s6] sm:$0xff]  ;;  %s7498_s29 = sld [smem:[%s11973_s0 + %s10057_s26]]   ;;  %s10060_s8 = smov 6   ;;  %vm432_vm11 = vcmp.eq.s32.totalorder %v10166_v54, 8  ;;  %vm433_vm12 = vcmp.eq.s32.totalorder %v10166_v54, 9  ;;  %vm434_vm13 = vcmp.eq.s32.totalorder %v10166_v54, 10  ;;  %vm435_vm14 = vcmp.eq.s32.totalorder %v10166_v54, 11 }
   0x8   :  { %v163_v2 = vld [vmem:[%s1_s9] sm:$0xff]  ;;  %9138 = vmatpush3.msra.mxu1 %v164_v1  ;;  %s7493_s3 = sld [smem:[%s11973_s0 + %s10058_s30]]   ;;  %vm436_vm15 = vcmp.eq.s32.totalorder %v10166_v54, 12  ;;  %s10061_s12 = smov 10  }
   0x9   :  { %9140 = vmatmul.mubr.msk.f32.vlgmr.msra.gmra.mrb[0].mxu1 %vm172_vm1, %v163_v2  ;;  %9142 = vmatprep.subr.mxu1 %v11976_v0  ;;  %v247_v3 = vld [vmem:[%s7492_s13] sm:$0xff]  ;;  %s10159_s7 = sld [smem:[%s11973_s0 + %s10059_s4]]   ;;  %s10062_s16 = smov 11  }
   0xa   :  { %9144 = vmatprep.mubr.msk.f32.mxu1 %vm10051_vm0, %v11976_v0  ;;  %9143 = vmatpush3.msra.mxu1 %v247_v3  ;;  %v329_v5 = vld [vmem:[%s10118_s17] sm:$0xff]  ;;  %v330_v6 = vld [vmem:[%s10118_s17 + $0x8] sm:$0xff]  ;;  %v331_v7 = vld [vmem:[%s10118_s17 + $0x10] sm:$0xff]  ;;  %s7495_s11 = sld [smem:[%s11973_s0 + %s10060_s8]]   ;;  %s10063_s20 = smov 12  }
   0xb   :  { %v9565_v8 = vpack.c.bf16 %v330_v6, %v329_v5  ;;  %v332_v9 = vld [vmem:[%s10118_s17 + $0x18] sm:$0xff]  ;;  %v333_v11 = vld [vmem:[%s10118_s17 + $0x20] sm:$0xff]  ;;  %v334_v12 = vld [vmem:[%s10118_s17 + $0x28] sm:$0xff]  ;;  %s7499_s15 = sld [smem:[%s11973_s0 + %s10061_s12]]   ;;  %s10064_s24 = smov 17  }
   0xc   :  { %v9568_v10 = vpack.c.bf16 %v332_v9, %v331_v7  ;;  %v9571_v13 = vpack.c.bf16 %v334_v12, %v333_v11  ;;  %v335_v14 = vld [vmem:[%s10118_s17 + $0x30] sm:$0xff]  ;;  %v336_v15 = vld [vmem:[%s10118_s17 + $0x38] sm:$0xff]  ;;  %v337_v17 = vld [vmem:[%s10118_s17 + $0x40] sm:$0xff]  ;;  %s7500_s19 = sld [smem:[%s11973_s0 + %s10062_s16]]   ;;  %s10065_s28 = smov 8  }
   0xd   :  { %9566 = vmatpush3.bf16.msra.mxu0 %v9565_v8  ;;  %v9574_v16 = vpack.c.bf16 %v336_v15, %v335_v14  ;;  %v338_v18 = vld [vmem:[%s10118_s17 + $0x48] sm:$0xff]  ;;  %v339_v20 = vld [vmem:[%s10118_s17 + $0x50] sm:$0xff]  ;;  %v340_v21 = vld [vmem:[%s10118_s17 + $0x58] sm:$0xff]  ;;  %s7501_s23 = sld [smem:[%s11973_s0 + %s10063_s20]]   ;;  %s10066_s2 = smov 14  }
   0xe   :  { %9567 = vmatprep.subr.bf16.mxu0 %v11974_v4  ;;  %v9577_v19 = vpack.c.bf16 %v338_v18, %v337_v17  ;;  %v9580_v22 = vpack.c.bf16 %v340_v21, %v339_v20  ;;  %v341_v23 = vld [vmem:[%s10118_s17 + $0x60] sm:$0xff]  ;;  %v342_v24 = vld [vmem:[%s10118_s17 + $0x68] sm:$0xff]  ;;  %v343_v31 = vld [vmem:[%s10118_s17 + $0x70] sm:$0xff]  ;;  %s10353_s27 = sld [smem:[%s11973_s0 + %s10064_s24]]   ;;  %s10067_s6 = smov 15  }
   0xf   :  { %v9583_v25 = vpack.c.bf16 %v342_v24, %v341_v23  ;;  %v7529_v26 = vld [vmem:[%s7491_s21] ss:$0 sm:$0xff]  ;;  %v344_v32 = vld [vmem:[%s10118_s17 + $0x78] sm:$0xff]  ;;  %v489_v35 = vld [vmem:[%s7496_s25 + $0x8] sm:$0xff]  ;;  %s10410_s1 = sld [smem:[%s11973_s0 + %s10065_s28]]   ;;  %s10068_s10 = smov 16  }
  0x10   :  { %v9586_v33 = vpack.c.bf16 %v344_v32, %v343_v31  ;;  %v488_v34 = vld [vmem:[%s7496_s25] sm:$0xff]  ;;  %v822_v38 = vld [vmem:[%s7498_s29 + $0x8] sm:$0xff]  ;;  %v490_v45 = vld [vmem:[%s7496_s25 + $0x10] sm:$0xff]  ;;  %s7503_s5 = sld [smem:[%s11973_s0 + %s10066_s2]]   ;;  %s10069_s14 = smov 23  }
  0x11   :  { %9569 = vmatpush3.bf16.msra.mxu0 %v9568_v10  ;;  %v821_v36 = vld [vmem:[%s7498_s29] sm:$0xff]  ;;  %v9588_v37 = vpack.c.bf16 %v489_v35, %v488_v34  ;;  %v491_v46 = vld [vmem:[%s7496_s25 + $0x18] sm:$0xff]  ;;  %v823_v47 = vld [vmem:[%s7498_s29 + $0x10] sm:$0xff]  ;;  %s7504_s9 = sld [smem:[%s11973_s0 + %s10067_s6]]   ;;  %s10070_s18 = smov 18  }
  0x12   :  { %9570 = vmatprep.subr.bf16.mxu0 %v11974_v4  ;;  %v9596_v39 = vpack.c.bf16 %v822_v38, %v821_v36  ;;  %v7531_v40 = vld [vmem:[%s7493_s3] ss:$0 sm:$0xff]  ;;  %v9592_v48 = vpack.c.bf16 %v491_v46, %v490_v45  ;;  %v824_v49 = vld [vmem:[%s7498_s29 + $0x18] sm:$0xff]  ;;  %v9666_v62 = vld [vmem:[%s10159_s7 + $0x48] sm:$0xff]   ;;  %s7505_s13 = sld [smem:[%s11973_s0 + %s10068_s10]]   ;;  %s10071_s22 = smov 19  }
  0x13   :  { %9589 = vmatprep.subr.bf16.mxu1 %v9588_v37  ;;  %v9600_v50 = vpack.c.bf16 %v824_v49, %v823_v47  ;;  %v9664_v51 = vld [vmem:[%s10159_s7 + $0x40] sm:$0xff]   ;;  %v9671_v63 = vld [vmem:[%s10159_s7 + $0x88] sm:$0xff]   ;;  %v9669_v5 = vld [vmem:[%s10159_s7 + $0x50] sm:$0xff]   ;;  %s10710_s17 = sld [smem:[%s11973_s0 + %s10069_s14]]   ;;  %s10072_s26 = smov 20  }
  0x14   :  { %v9668_v52 = vld [vmem:[%s10159_s7 + $0x80] sm:$0xff]   ;;  %v9667_v2 = vld [vmem:[%s10159_s7 + $0x8] sm:$0xff]   ;;  %v9674_v6 = vld [vmem:[%s10159_s7 + $0x90] sm:$0xff]   ;;  %s10906_s21 = sld [smem:[%s11973_s0 + %s10070_s18]]   ;;  %s10073_s30 = smov 21  }
  0x15   :  { %9572 = vmatpush3.bf16.msra.mxu0 %v9571_v13  ;;  %v7533_v55 = vld [vmem:[%s7495_s11] ss:$0 sm:$0xff]  ;;  %v9670_v8 = vld [vmem:[%s10159_s7 + $0x10] sm:$0xff]   ;;  %v9672_v10 = vld [vmem:[%s10159_s7 + $0x58] sm:$0xff]   ;;  %s10911_s25 = sld [smem:[%s11973_s0 + %s10071_s22]]   ;;  %s10076_s12 = smov 24  }
  0x16   :  { %9573 = vmatprep.subr.bf16.mxu0 %v11974_v4  ;;  %v9665_v61 = vld [vmem:[%s10159_s7] sm:$0xff]   ;;  %v9677_v11 = vld [vmem:[%s10159_s7 + $0x98] sm:$0xff]   ;;  %v9678_v20 = vld [vmem:[%s10159_s7 + $0x68] sm:$0xff]   ;;  %s10916_s29 = sld [smem:[%s11973_s0 + %s10072_s26]]   ;;  %s10077_s16 = smov 25  }
  0x17   :  { %v9673_v13 = vld [vmem:[%s10159_s7 + $0x18] sm:$0xff]   ;;  %v9675_v15 = vld [vmem:[%s10159_s7 + $0x60] sm:$0xff]   ;;  %v9681_v24 = vld [vmem:[%s10159_s7 + $0x70] sm:$0xff]   ;;  %s10931_s4 = sld [smem:[%s11973_s0 + %s10073_s30]]   ;;  %s10078_s20 = smov 26  }
  0x18   :  { %v9676_v18 = vld [vmem:[%s10159_s7 + $0x20] sm:$0xff]   ;;  %v9683_v46 = vld [vmem:[%s10159_s7 + $0xa8] sm:$0xff]   ;;  %v9684_v47 = vld [vmem:[%s10159_s7 + $0x78] sm:$0xff]   ;;  %s10079_s24 = smov 31   ;;  %s10080_s28 = smov 28  }
  0x19   :  { %9575 = vmatpush3.bf16.msra.mxu0 %v9574_v16  ;;  %v9680_v16 = vld [vmem:[%s10159_s7 + $0xa0] sm:$0xff]   ;;  %v9686_v49 = vld [vmem:[%s10159_s7 + $0xb0] sm:$0xff]   ;;  %s11429_s2 = sld [smem:[%s11973_s0 + %s10080_s28]]   ;;  %s10081_s3 = smov 29  }
  0x1a   :  { %9576 = vmatprep.subr.bf16.mxu0 %v11974_v4  ;;  %s11434_s6 = sld [smem:[%s11973_s0 + %s10081_s3]]   ;;  %s10083_s10 = smov 33  }
  0x1b   :  { %s10084_s14 = smov 32   ;;  %s10085_s18 = smov 34  }
  0x1c   :  { %s10086_s22 = smov 35   ;;  %s10087_s26 = smov 37  }
  0x1d   :  { %9578 = vmatpush3.bf16.msra.mxu0 %v9577_v19  ;;  %s10088_s30 = smov 36  }
  0x1e   :  { %9579 = vmatprep.subr.bf16.mxu0 %v11974_v4 }
  0x21   :  { %9581 = vmatpush3.bf16.msra.mxu0 %v9580_v22  ;;  %v9679_v22 = vld [vmem:[%s10159_s7 + $0x28] sm:$0xff]  }
  0x22   :  { %9582 = vmatprep.subr.bf16.mxu0 %v11974_v4 }
  0x25   :  { %9584 = vmatpush3.bf16.msra.mxu0 %v9583_v25 }
  0x26   :  { %9585 = vmatprep.subr.bf16.mxu0 %v11974_v4 }
  0x29   :  { %9587 = vmatpush3.bf16.msra.mxu0 %v9586_v33 }
  0x2a   :  { %9597 = vmatprep.subr.bf16.mxu0 %v9596_v39 }
  0xdc   :  { %v242_v27 = vpop.f32.mrb[0].mxu1 }
  0xdd   :  { %v243_v28 = vadd.f32 %v7529_v26, %v242_v27  ;;  %v9141_v29 = vpop.f32.mrb[1].mxu1  ;;  %v9682_v26 = vld [vmem:[%s10159_s7 + $0x30] sm:$0xff]  }
  0xdf   :  { %v246_v30 = vmax.f32 %v243_v28, 0.0 }
  0xe1   :  { %9145 = vmatmul.mubr.msk.f32.vlgmr.msra.gmra.mrb[2].mxu1 %vm172_vm1, %v246_v30  ;;  %vm437_vm1 = vcmp.eq.s32.totalorder %v10166_v54, 13 }
  0xe2   :  { %9591 = vmatpush3.bf16.msra.mxu1 %v9588_v37 }
  0xe3   :  { %9593 = vmatprep.subr.bf16.mxu1 %v9592_v48 }
  0xe6   :  { %9595 = vmatpush3.bf16.msra.mxu1 %v9592_v48  ;;  %v9685_v48 = vld [vmem:[%s10159_s7 + $0x38] sm:$0xff]  }
  0xe7   :  { %8091 = vmatprep.subr.bf16.mxu1 %v9664_v51  ;;  %v10329_v51 = vld [vmem:[%s7499_s15] ss:$0 sm:$0xff]  ;;  %s7513_s15 = sld [smem:[%s11973_s0 + %s10076_s12]]  }
 0x1b4   :  { %v324_v41 = vpop.f32.mrb[2].mxu1 }
 0x1b5   :  { %v325_v42 = vadd.f32 %v7531_v40, %v324_v41  ;;  %v9146_v43 = vpop.f32.mrb[3].mxu1 }
 0x1b7   :  { %v328_v44 = vmax.f32 %v325_v42, 0.0 }
 0x1b9   :  { %9180 = vmatmul.mubr.f32.vlgmr.msra.gmra.mrb[0].mxu0 %v328_v44 }
 0x1ba   :  { %9599 = vmatpush3.bf16.msra.mxu0 %v9596_v39 }
 0x1bb   :  { %9601 = vmatprep.subr.bf16.mxu0 %v9600_v50 }
 0x1be   :  { %9603 = vmatpush3.bf16.msra.mxu0 %v9600_v50  ;;  %v9687_v50 = vld [vmem:[%s10159_s7 + $0xb8] sm:$0xff]   ;;  %s10082_s7 = smov 30  }
 0x1bf   :  { %9294 = vmatprep.subr.bf16.mxu0 %v9668_v52 }
 0x28c   :  { %v418_v56 = vpop.f32.mrb[0].mxu0 }
 0x28d   :  { %v10170_v57 = vadd.f32 %v7533_v55, %v418_v56  ;;  %v9181_v58 = vpop.f32.mrb[1].mxu0 }
 0x28f   :  { %v456_v59 = vsel %vm424_vm2, %v10170_v57, 0.0  ;;  %v457_v60 = vsel %vm425_vm3, %v10170_v57, 0.0  ;;  %v458_v1 = vsel %vm426_vm5, %v10170_v57, 0.0  ;;  %v459_v3 = vsel %vm427_vm6, %v10170_v57, 0.0 }
 0x290   :  { %9190 = vmatprep.mubr.msk.f32.mxu1 %vm499_vm4, %v456_v59  ;;  %9246 = vmatprep.mubr.msk.f32.mxu0 %vm499_vm4, %v456_v59  ;;  %v460_v7 = vsel %vm428_vm7, %v10170_v57, 0.0  ;;  %v461_v9 = vsel %vm429_vm8, %v10170_v57, 0.0  ;;  %v462_v12 = vsel %vm430_vm9, %v10170_v57, 0.0  ;;  %v463_v14 = vsel %vm431_vm10, %v10170_v57, 0.0 }
 0x291   :  { %9191 = vmatmul.mubr.msk.f32.vlgmr.msra.gmra.mrb[4].mxu1 %vm499_vm4, %v457_v60  ;;  %9247 = vmatmul.mubr.msk.f32.vlgmr.msra.gmra.mrb[2].mxu0 %vm499_vm4, %v457_v60  ;;  %v464_v17 = vsel %vm432_vm11, %v10170_v57, 0.0  ;;  %v465_v19 = vsel %vm433_vm12, %v10170_v57, 0.0  ;;  %v466_v21 = vsel %vm434_vm13, %v10170_v57, 0.0  ;;  %v467_v23 = vsel %vm435_vm14, %v10170_v57, 0.0 }
 0x292   :  { %9193 = vmatprep.mubr.msk.f32.mxu1 %vm499_vm4, %v458_v1  ;;  %9249 = vmatprep.mubr.msk.f32.mxu0 %vm499_vm4, %v458_v1  ;;  %v468_v25 = vsel %vm436_vm15, %v10170_v57, 0.0  ;;  %vm438_vm2 = vcmp.eq.s32.totalorder %v10166_v54, 14  ;;  %v469_v27 = vsel %vm437_vm1, %v10170_v57, 0.0  ;;  %vm439_vm3 = vcmp.eq.s32.totalorder %v10166_v54, 15 }
 0x293   :  { %8092 = vmatpush3.bf16.msra.mxu1 %v9665_v61  ;;  %9295 = vmatpush3.bf16.msra.mxu0 %v9668_v52  ;;  %v470_v28 = vsel %vm438_vm2, %v10170_v57, 0.0  ;;  %vm440_vm5 = vcmp.eq.s32.totalorder %v10166_v54, 16  ;;  %v471_v29 = vsel %vm439_vm3, %v10170_v57, 0.0  ;;  %vm441_vm6 = vcmp.eq.s32.totalorder %v10166_v54, 17 }
 0x294   :  { %8093 = vmatprep.subr.bf16.mxu1 %v9666_v62  ;;  %9296 = vmatprep.subr.bf16.mxu0 %v9671_v63  ;;  %v472_v30 = vsel %vm440_vm5, %v10170_v57, 0.0  ;;  %vm442_vm7 = vcmp.eq.s32.totalorder %v10166_v54, 18  ;;  %v473_v31 = vsel %vm441_vm6, %v10170_v57, 0.0  ;;  %vm443_vm8 = vcmp.eq.s32.totalorder %v10166_v54, 19 }
 0x295   :  { %9194 = vmatmul.mubr.msk.f32.gmra.mrb[6].mxu1 %vm499_vm4, %v459_v3  ;;  %9250 = vmatmul.mubr.msk.f32.gmra.mrb[4].mxu0 %vm499_vm4, %v459_v3  ;;  %v474_v32 = vsel %vm442_vm7, %v10170_v57, 0.0  ;;  %vm444_vm9 = vcmp.eq.s32.totalorder %v10166_v54, 20  ;;  %v475_v33 = vsel %vm443_vm8, %v10170_v57, 0.0  ;;  %vm445_vm10 = vcmp.eq.s32.totalorder %v10166_v54, 21 }
 0x296   :  { %9196 = vmatprep.mubr.msk.f32.mxu1 %vm499_vm4, %v460_v7  ;;  %9252 = vmatprep.mubr.msk.f32.mxu0 %vm499_vm4, %v460_v7  ;;  %v476_v34 = vsel %vm444_vm9, %v10170_v57, 0.0  ;;  %vm446_vm11 = vcmp.eq.s32.totalorder %v10166_v54, 22  ;;  %v477_v35 = vsel %vm445_vm10, %v10170_v57, 0.0  ;;  %vm447_vm12 = vcmp.eq.s32.totalorder %v10166_v54, 23 }
 0x297   :  { %8094 = vmatpush3.bf16.msra.mxu1 %v9667_v2  ;;  %9297 = vmatpush3.bf16.msra.mxu0 %v9671_v63  ;;  %v478_v36 = vsel %vm446_vm11, %v10170_v57, 0.0  ;;  %vm448_vm13 = vcmp.eq.s32.totalorder %v10166_v54, 24  ;;  %v479_v37 = vsel %vm447_vm12, %v10170_v57, 0.0  ;;  %vm449_vm14 = vcmp.eq.s32.totalorder %v10166_v54, 25  ;;  %v10341_v63 = vld [vmem:[%s7501_s23] ss:$0 sm:$0xff]  ;;  %s7515_s23 = sld [smem:[%s11973_s0 + %s10078_s20]]  }
 0x298   :  { %8095 = vmatprep.subr.bf16.mxu1 %v9669_v5  ;;  %9298 = vmatprep.subr.bf16.mxu0 %v9674_v6  ;;  %v480_v38 = vsel %vm448_vm13, %v10170_v57, 0.0  ;;  %vm450_vm15 = vcmp.eq.s32.totalorder %v10166_v54, 26  ;;  %v481_v39 = vsel %vm449_vm14, %v10170_v57, 0.0  ;;  %vm451_vm1 = vcmp.eq.s32.totalorder %v10166_v54, 27 }
 0x299   :  { %9197 = vmatmul.mubr.msk.f32.gmra.mrb[8].mxu1 %vm499_vm4, %v461_v9  ;;  %9253 = vmatmul.mubr.msk.f32.gmra.mrb[6].mxu0 %vm499_vm4, %v461_v9  ;;  %v482_v40 = vsel %vm450_vm15, %v10170_v57, 0.0  ;;  %vm452_vm2 = vcmp.eq.s32.totalorder %v10166_v54, 28  ;;  %v483_v41 = vsel %vm451_vm1, %v10170_v57, 0.0  ;;  %vm453_vm3 = vcmp.eq.s32.totalorder %v10166_v54, 29 }
 0x29a   :  { %9199 = vmatprep.mubr.msk.f32.mxu1 %vm499_vm4, %v462_v12  ;;  %9255 = vmatprep.mubr.msk.f32.mxu0 %vm499_vm4, %v462_v12  ;;  %v484_v42 = vsel %vm452_vm2, %v10170_v57, 0.0  ;;  %vm454_vm5 = vcmp.eq.s32.totalorder %v10166_v54, 30  ;;  %v485_v43 = vsel %vm453_vm3, %v10170_v57, 0.0  ;;  %vm455_vm6 = vcmp.eq.s32.totalorder %v10166_v54, 31 }
 0x29b   :  { %8096 = vmatpush3.bf16.msra.mxu1 %v9670_v8  ;;  %9299 = vmatpush3.bf16.msra.mxu0 %v9674_v6  ;;  %v486_v44 = vsel %vm454_vm5, %v10170_v57, 0.0  ;;  %v487_v45 = vsel %vm455_vm6, %v10170_v57, 0.0  ;;  %v10336_v57 = vld [vmem:[%s7500_s19] ss:$0 sm:$0xff]  ;;  %s7514_s19 = sld [smem:[%s11973_s0 + %s10077_s16]]   ;;  %vm7326_vm7 = vcmask 523264  }
 0x29c   :  { %8097 = vmatprep.subr.bf16.mxu1 %v9672_v10  ;;  %9300 = vmatprep.subr.bf16.mxu0 %v9677_v11 }
 0x29d   :  { %9200 = vmatmul.mubr.msk.f32.gmra.mrb[10].mxu1 %vm499_vm4, %v463_v14  ;;  %9256 = vmatmul.mubr.msk.f32.gmra.mrb[8].mxu0 %vm499_vm4, %v463_v14 }
 0x29e   :  { %9202 = vmatprep.mubr.msk.f32.mxu1 %vm499_vm4, %v464_v17  ;;  %9258 = vmatprep.mubr.msk.f32.mxu0 %vm499_vm4, %v464_v17 }
 0x29f   :  { %8098 = vmatpush3.bf16.msra.mxu1 %v9673_v13  ;;  %9301 = vmatpush3.bf16.msra.mxu0 %v9677_v11 }
 0x2a0   :  { %8099 = vmatprep.subr.bf16.mxu1 %v9675_v15  ;;  %9302 = vmatprep.subr.bf16.mxu0 %v9680_v16 }
 0x2a1   :  { %9203 = vmatmul.mubr.msk.f32.gmra.mrb[12].mxu1 %vm499_vm4, %v465_v19  ;;  %9259 = vmatmul.mubr.msk.f32.gmra.mrb[10].mxu0 %vm499_vm4, %v465_v19 }
 0x2a2   :  { %9205 = vmatprep.mubr.msk.f32.mxu1 %vm499_vm4, %v466_v21  ;;  %9261 = vmatprep.mubr.msk.f32.mxu0 %vm499_vm4, %v466_v21 }
 0x2a3   :  { %8100 = vmatpush3.bf16.msra.mxu1 %v9676_v18  ;;  %9303 = vmatpush3.bf16.msra.mxu0 %v9680_v16 }
 0x2a4   :  { %8101 = vmatprep.subr.bf16.mxu1 %v9678_v20  ;;  %9304 = vmatprep.subr.bf16.mxu0 %v9683_v46 }
 0x2a5   :  { %9206 = vmatmul.mubr.msk.f32.gmra.mrb[14].mxu1 %vm499_vm4, %v467_v23  ;;  %9262 = vmatmul.mubr.msk.f32.gmra.mrb[12].mxu0 %vm499_vm4, %v467_v23 }
 0x2a6   :  { %9208 = vmatprep.mubr.msk.f32.mxu1 %vm499_vm4, %v468_v25  ;;  %9264 = vmatprep.mubr.msk.f32.mxu0 %vm499_vm4, %v468_v25 }
 0x2a7   :  { %8102 = vmatpush3.bf16.msra.mxu1 %v9679_v22  ;;  %9305 = vmatpush3.bf16.msra.mxu0 %v9683_v46 }
 0x2a8   :  { %8103 = vmatprep.subr.bf16.mxu1 %v9681_v24  ;;  %9306 = vmatprep.subr.bf16.mxu0 %v9686_v49 }
 0x2a9   :  { %9209 = vmatmul.mubr.msk.f32.gmra.mrb[16].mxu1 %vm499_vm4, %v469_v27  ;;  %9265 = vmatmul.mubr.msk.f32.gmra.mrb[14].mxu0 %vm499_vm4, %v469_v27 }
 0x2aa   :  { %9211 = vmatprep.mubr.msk.f32.mxu1 %vm499_vm4, %v470_v28  ;;  %9267 = vmatprep.mubr.msk.f32.mxu0 %vm499_vm4, %v470_v28 }
 0x2ab   :  { %8104 = vmatpush3.bf16.msra.mxu1 %v9682_v26  ;;  %9307 = vmatpush3.bf16.msra.mxu0 %v9686_v49  ;;  %v9692_v49 = vld [vmem:[%s10353_s27 + $0x40] sm:$0xff]  }
 0x2ac   :  { %8105 = vmatprep.subr.bf16.mxu1 %v9684_v47  ;;  %9308 = vmatprep.subr.bf16.mxu0 %v9687_v50 }
 0x2ad   :  { %9212 = vmatmul.mubr.msk.f32.gmra.mrb[18].mxu1 %vm499_vm4, %v471_v29  ;;  %9268 = vmatmul.mubr.msk.f32.gmra.mrb[16].mxu0 %vm499_vm4, %v471_v29 }
 0x2ae   :  { %9214 = vmatprep.mubr.msk.f32.mxu1 %vm499_vm4, %v472_v30  ;;  %9270 = vmatprep.mubr.msk.f32.mxu0 %vm499_vm4, %v472_v30 }
 0x2af   :  { %8106 = vmatpush3.bf16.msra.mxu1 %v9685_v48  ;;  %9309 = vmatpush3.bf16.msra.mxu0 %v9687_v50  ;;  %v9690_v48 = vld [vmem:[%s10353_s27 + $0x90] sm:$0xff]  }
 0x2b0   :  { %8227 = vmatprep.subr.bf16.mxu0 %v9692_v49 }
 0x2b1   :  { %9215 = vmatmul.mubr.msk.f32.gmra.mrb[20].mxu1 %vm499_vm4, %v473_v31  ;;  %9271 = vmatmul.mubr.msk.f32.gmra.mrb[18].mxu0 %vm499_vm4, %v473_v31 }
 0x2b2   :  { %9217 = vmatprep.mubr.msk.f32.mxu1 %vm499_vm4, %v474_v32  ;;  %9273 = vmatprep.mubr.msk.f32.mxu0 %vm499_vm4, %v474_v32 }
 0x2b5   :  { %9218 = vmatmul.mubr.msk.f32.gmra.mrb[22].mxu1 %vm499_vm4, %v475_v33  ;;  %9274 = vmatmul.mubr.msk.f32.gmra.mrb[20].mxu0 %vm499_vm4, %v475_v33 }
 0x2b6   :  { %9220 = vmatprep.mubr.msk.f32.mxu1 %vm499_vm4, %v476_v34  ;;  %9276 = vmatprep.mubr.msk.f32.mxu0 %vm499_vm4, %v476_v34 }
 0x2b9   :  { %9221 = vmatmul.mubr.msk.f32.gmra.mrb[24].mxu1 %vm499_vm4, %v477_v35  ;;  %9277 = vmatmul.mubr.msk.f32.gmra.mrb[22].mxu0 %vm499_vm4, %v477_v35  ;;  %v9688_v35 = vld [vmem:[%s10353_s27 + $0x80] sm:$0xff]  }
 0x2ba   :  { %9223 = vmatprep.mubr.msk.f32.mxu1 %vm499_vm4, %v478_v36  ;;  %9279 = vmatprep.mubr.msk.f32.mxu0 %vm499_vm4, %v478_v36 }
 0x2bb   :  { %9342 = vmatprep.subr.bf16.mxu1 %v9688_v35 }
 0x2bd   :  { %9224 = vmatmul.mubr.msk.f32.gmra.mrb[26].mxu1 %vm499_vm4, %v479_v37  ;;  %9280 = vmatmul.mubr.msk.f32.gmra.mrb[24].mxu0 %vm499_vm4, %v479_v37 }
 0x2be   :  { %9226 = vmatprep.mubr.msk.f32.mxu1 %vm499_vm4, %v480_v38  ;;  %9282 = vmatprep.mubr.msk.f32.mxu0 %vm499_vm4, %v480_v38 }
 0x2c1   :  { %9227 = vmatmul.mubr.msk.f32.gmra.mrb[28].mxu1 %vm499_vm4, %v481_v39  ;;  %9283 = vmatmul.mubr.msk.f32.gmra.mrb[26].mxu0 %vm499_vm4, %v481_v39  ;;  %v9689_v39 = vld [vmem:[%s10353_s27 + $0x88] sm:$0xff]  }
 0x2c2   :  { %9229 = vmatprep.mubr.msk.f32.mxu1 %vm499_vm4, %v482_v40  ;;  %9285 = vmatprep.mubr.msk.f32.mxu0 %vm499_vm4, %v482_v40 }
 0x2c5   :  { %9230 = vmatmul.mubr.msk.f32.gmra.mrb[30].mxu1 %vm499_vm4, %v483_v41  ;;  %9286 = vmatmul.mubr.msk.f32.gmra.mrb[28].mxu0 %vm499_vm4, %v483_v41 }
 0x2c6   :  { %9232 = vmatprep.mubr.msk.f32.mxu1 %vm499_vm4, %v484_v42  ;;  %9288 = vmatprep.mubr.msk.f32.mxu0 %vm499_vm4, %v484_v42 }
 0x2c9   :  { %9233 = vmatmul.mubr.msk.f32.gmra.mrb[32].mxu1 %vm499_vm4, %v485_v43  ;;  %9289 = vmatmul.mubr.msk.f32.gmra.mrb[30].mxu0 %vm499_vm4, %v485_v43 }
 0x2ca   :  { %9235 = vmatprep.mubr.msk.f32.mxu1 %vm499_vm4, %v486_v44  ;;  %9291 = vmatprep.mubr.msk.f32.mxu0 %vm499_vm4, %v486_v44 }
 0x2cd   :  { %9236 = vmatmul.mubr.msk.f32.gmra.mrb[34].mxu1 %vm499_vm4, %v487_v45  ;;  %9292 = vmatmul.mubr.msk.f32.gmra.mrb[32].mxu0 %vm499_vm4, %v487_v45 }
 0x364   :  { %v10331_v52 = vpop.f32.mrb[4].mxu1  ;;  %v9248_v53 = vpop.f32.mrb[2].mxu0 }
 0x365   :  { %v904_v54 = vadd.f32 %v9248_v53, %v10329_v51  ;;  %v10334_v55 = vpop.f32.mrb[5].mxu1  ;;  %v898_v56 = vpop.f32.mrb[3].mxu0 }
 0x366   :  { %v899_v58 = vadd.f32 %v10329_v51, %v898_v56 }
 0x367   :  { %v1058_v59 = vmax.f32 %v904_v54, 0.0 }
 0x368   :  { %v1057_v60 = vmax.f32 %v899_v58, 0.0  ;;  %v10339_v61 = vpop.f32.mrb[6].mxu1  ;;  %v9251_v62 = vpop.f32.mrb[4].mxu0 }
 0x369   :  { %v1097_v1 = vmul.f32 %v10336_v57, %v1058_v59  ;;  %v914_v2 = vadd.f32 %v9251_v62, %v10329_v51  ;;  %v10345_v3 = vpop.f32.mrb[7].mxu1  ;;  %v908_v5 = vpop.f32.mrb[5].mxu0 }
 0x36a   :  { %v1096_v6 = vmul.f32 %v10336_v57, %v1057_v60  ;;  %v909_v7 = vadd.f32 %v10329_v51, %v908_v5  ;;  %v9693_v60 = vld [vmem:[%s10353_s27] sm:$0xff]  }
 0x36b   :  { %v1060_v8 = vmax.f32 %v914_v2, 0.0  ;;  %v1136_v9 = vadd.f32 %v10341_v63, %v1097_v1 }
 0x36c   :  { %v1059_v10 = vmax.f32 %v909_v7, 0.0  ;;  %v10355_v11 = vpop.f32.mrb[8].mxu1  ;;  %v9254_v12 = vpop.f32.mrb[6].mxu0  ;;  %v1135_v13 = vadd.f32 %v10341_v63, %v1096_v6  ;;  %v9691_v6 = vld [vmem:[%s10353_s27 + $0x98] sm:$0xff]   ;;  %v9694_v7 = vld [vmem:[%s10353_s27 + $0x48] sm:$0xff]  }
 0x36d   :  { %v1099_v14 = vmul.f32 %v10336_v57, %v1060_v8  ;;  %v924_v15 = vadd.f32 %v9254_v12, %v10329_v51  ;;  %v10360_v16 = vpop.f32.mrb[9].mxu1  ;;  %v918_v17 = vpop.f32.mrb[7].mxu0 }
 0x36e   :  { %v1098_v18 = vmul.f32 %v10336_v57, %v1059_v10  ;;  %v919_v19 = vadd.f32 %v10329_v51, %v918_v17  ;;  %v1167_v20 = vpack.c.bf16 %v1135_v13, %v11976_v0  ;;  %v1168_v22 = vpack.c.bf16 %v1136_v9, %v1135_v13  ;;  %v9695_v17 = vld [vmem:[%s10353_s27 + $0x8] sm:$0xff]  }
 0x36f   :  { %v1062_v21 = vmax.f32 %v924_v15, 0.0  ;;  %v1138_v23 = vadd.f32 %v10341_v63, %v1099_v14 }
 0x370   :  { %v1061_v24 = vmax.f32 %v919_v19, 0.0  ;;  %v10366_v25 = vpop.f32.mrb[10].mxu1  ;;  %v9257_v26 = vpop.f32.mrb[8].mxu0  ;;  %v1137_v27 = vadd.f32 %v10341_v63, %v1098_v18  ;;  %1431 = vmatprep.mubr.bf16.mxu1 %v1168_v22 }
 0x371   :  { %v1101_v28 = vmul.f32 %v10336_v57, %v1062_v21  ;;  %v934_v29 = vadd.f32 %v9257_v26, %v10329_v51  ;;  %v10371_v30 = vpop.f32.mrb[11].mxu1  ;;  %v928_v31 = vpop.f32.mrb[9].mxu0  ;;  %1432 = vmatmul.mubr.bf16.vlgmr.msra.gmra.mrb[36].mxu1 %v1167_v20  ;;  %v9697_v26 = vld [vmem:[%s10353_s27 + $0x50] sm:$0xff]  }
 0x372   :  { %v1100_v32 = vmul.f32 %v10336_v57, %v1061_v24  ;;  %v929_v33 = vadd.f32 %v10329_v51, %v928_v31  ;;  %v1170_v34 = vpack.c.bf16 %v1138_v23, %v1137_v27  ;;  %v1169_v37 = vpack.c.bf16 %v1137_v27, %v1136_v9  ;;  %9343 = vmatpush3.bf16.msra.mxu1 %v9688_v35 }
 0x373   :  { %v1064_v36 = vmax.f32 %v934_v29, 0.0  ;;  %v1140_v38 = vadd.f32 %v10341_v63, %v1101_v28  ;;  %9344 = vmatprep.subr.bf16.mxu1 %v9689_v39 }
 0x374   :  { %v1139_v40 = vadd.f32 %v10341_v63, %v1100_v32  ;;  %v1063_v41 = vmax.f32 %v929_v33, 0.0  ;;  %v10379_v42 = vpop.f32.mrb[12].mxu1  ;;  %v9260_v43 = vpop.f32.mrb[10].mxu0  ;;  %1439 = vmatprep.mubr.bf16.mxu1 %v1170_v34  ;;  %9310 = vmatprep.mubr.bf16.mxu0 %v1169_v37  ;;  %v9696_v32 = vld [vmem:[%s10353_s27 + $0xa0] sm:$0xff]   ;;  %v9698_v33 = vld [vmem:[%s10353_s27 + $0x10] sm:$0xff]  }
 0x375   :  { %v1103_v44 = vmul.f32 %v10336_v57, %v1064_v36  ;;  %v944_v45 = vadd.f32 %v9260_v43, %v10329_v51  ;;  %v10383_v46 = vpop.f32.mrb[13].mxu1  ;;  %v938_v47 = vpop.f32.mrb[11].mxu0 }
 0x376   :  { %v1102_v50 = vmul.f32 %v10336_v57, %v1063_v41  ;;  %v10388_v53 = vpack.c.bf16 %v1139_v40, %v1138_v23  ;;  %v939_v54 = vadd.f32 %v10329_v51, %v938_v47  ;;  %v1172_v58 = vpack.c.bf16 %v1140_v38, %v1139_v40  ;;  %9345 = vmatpush3.bf16.msra.mxu1 %v9689_v39  ;;  %v9699_v40 = vld [vmem:[%s10353_s27 + $0x58] sm:$0xff]  }
 0x377   :  { %v1066_v56 = vmax.f32 %v944_v45, 0.0  ;;  %v10392_v59 = vadd.f32 %v10341_v63, %v1103_v44  ;;  %9346 = vmatprep.subr.bf16.mxu1 %v9690_v48  ;;  %v9700_v47 = vld [vmem:[%s10353_s27 + $0x18] sm:$0xff]  }
 0x378   :  { %v1065_v62 = vmax.f32 %v939_v54, 0.0  ;;  %v10395_v1 = vpop.f32.mrb[14].mxu1  ;;  %v9263_v2 = vpop.f32.mrb[12].mxu0  ;;  %9311 = vmatmul.mubr.bf16.vlgmr.msra.gmra.mrb[36].mxu0 %v10388_v53  ;;  %v10399_v5 = vadd.f32 %v10341_v63, %v1102_v50 }
 0x379   :  { %v1105_v8 = vmul.f32 %v10336_v57, %v1066_v56  ;;  %v954_v9 = vadd.f32 %v9263_v2, %v10329_v51  ;;  %v10405_v10 = vpop.f32.mrb[15].mxu1  ;;  %v948_v12 = vpop.f32.mrb[13].mxu0  ;;  %8228 = vmatpush3.bf16.msra.mxu0 %v9693_v60  ;;  %1440 = vmatmul.mubr.bf16.gmra.mrb[40].mxu1 %v1169_v37  ;;  %v10460_v56 = vld [vmem:[%s10410_s1] ss:$0 sm:$0xff] }
 0x37a   :  { %v1104_v13 = vmul.f32 %v10336_v57, %v1065_v62  ;;  %v949_v14 = vadd.f32 %v10329_v51, %v948_v12  ;;  %v10415_v15 = vpack.c.bf16 %v10399_v5, %v1140_v38  ;;  %1447 = vmatprep.mubr.bf16.mxu1 %v1172_v58  ;;  %v1174_v19 = vpack.c.bf16 %v10392_v59, %v10399_v5  ;;  %v9701_v62 = vld [vmem:[%s10353_s27 + $0xa8] sm:$0xff]  }
 0x37b   :  { %v1068_v18 = vmax.f32 %v954_v9, 0.0  ;;  %v10421_v20 = vadd.f32 %v10341_v63, %v1105_v8  ;;  %8229 = vmatprep.subr.bf16.mxu0 %v9694_v7  ;;  %9347 = vmatpush3.bf16.msra.mxu1 %v9690_v48  ;;  %v9702_v7 = vld [vmem:[%s10353_s27 + $0x60] sm:$0xff]  }
 0x37c   :  { %v1067_v21 = vmax.f32 %v949_v14, 0.0  ;;  %v10423_v22 = vpop.f32.mrb[16].mxu1  ;;  %v9266_v23 = vpop.f32.mrb[14].mxu0  ;;  %9314 = vmatprep.mubr.bf16.mxu0 %v10415_v15  ;;  %v10427_v24 = vadd.f32 %v10341_v63, %v1104_v13  ;;  %9348 = vmatprep.subr.bf16.mxu1 %v9691_v6  ;;  %v9703_v13 = vld [vmem:[%s10353_s27 + $0x20] sm:$0xff]  }
 0x37d   :  { %v1107_v27 = vmul.f32 %v10336_v57, %v1068_v18  ;;  %v964_v28 = vadd.f32 %v9266_v23, %v10329_v51  ;;  %v10432_v29 = vpop.f32.mrb[17].mxu1  ;;  %v958_v31 = vpop.f32.mrb[15].mxu0  ;;  %8230 = vmatpush3.bf16.msra.mxu0 %v9695_v17 }
 0x37e   :  { %v1106_v34 = vmul.f32 %v10336_v57, %v1067_v21  ;;  %v959_v35 = vadd.f32 %v10329_v51, %v958_v31  ;;  %v10440_v36 = vpack.c.bf16 %v10427_v24, %v10392_v59  ;;  %v1176_v39 = vpack.c.bf16 %v10421_v20, %v10427_v24  ;;  %8231 = vmatprep.subr.bf16.mxu0 %v9697_v26 }
 0x37f   :  { %v1070_v37 = vmax.f32 %v964_v28, 0.0  ;;  %v10443_v38 = vadd.f32 %v10341_v63, %v1107_v27  ;;  %9349 = vmatpush3.bf16.msra.mxu1 %v9691_v6 }
 0x380   :  { %v1069_v41 = vmax.f32 %v959_v35, 0.0  ;;  %v10448_v43 = vpop.f32.mrb[18].mxu1  ;;  %v9269_v44 = vpop.f32.mrb[16].mxu0  ;;  %9315 = vmatmul.mubr.bf16.gmra.mrb[40].mxu0 %v10440_v36  ;;  %v10452_v45 = vadd.f32 %v10341_v63, %v1106_v34  ;;  %9350 = vmatprep.subr.bf16.mxu1 %v9696_v32 }
 0x381   :  { %v1109_v48 = vmul.f32 %v10336_v57, %v1070_v37  ;;  %v974_v49 = vadd.f32 %v9269_v44, %v10329_v51  ;;  %v10457_v50 = vpop.f32.mrb[19].mxu1  ;;  %v968_v54 = vpop.f32.mrb[17].mxu0  ;;  %8232 = vmatpush3.bf16.msra.mxu0 %v9698_v33  ;;  %1448 = vmatmul.mubr.bf16.gmra.mrb[44].mxu1 %v10388_v53 }
 0x382   :  { %v1108_v58 = vmul.f32 %v10336_v57, %v1069_v41  ;;  %v969_v59 = vadd.f32 %v10329_v51, %v968_v54  ;;  %v10467_v60 = vpack.c.bf16 %v10452_v45, %v10421_v20  ;;  %1455 = vmatprep.mubr.bf16.mxu1 %v1174_v19  ;;  %v1178_v6 = vpack.c.bf16 %v10443_v38, %v10452_v45 }
 0x383   :  { %v1072_v2 = vmax.f32 %v974_v49, 0.0  ;;  %v10471_v5 = vadd.f32 %v10341_v63, %v1109_v48  ;;  %8233 = vmatprep.subr.bf16.mxu0 %v9699_v40  ;;  %9351 = vmatpush3.bf16.msra.mxu1 %v9696_v32 }
 0x384   :  { %v1071_v8 = vmax.f32 %v969_v59, 0.0  ;;  %v9216_v9 = vpop.f32.mrb[20].mxu1  ;;  %v9272_v12 = vpop.f32.mrb[18].mxu0  ;;  %9318 = vmatprep.mubr.bf16.mxu0 %v10467_v60  ;;  %v10478_v53 = vadd.f32 %v10341_v63, %v1108_v58  ;;  %9352 = vmatprep.subr.bf16.mxu1 %v9701_v62 }
 0x385   :  { %v1111_v14 = vmul.f32 %v10336_v57, %v1072_v2  ;;  %v10483_v17 = vadd.f32 %v9216_v9, %v10460_v56  ;;  %v984_v18 = vadd.f32 %v9272_v12, %v10329_v51  ;;  %v10486_v19 = vpop.f32.mrb[21].mxu1  ;;  %v978_v21 = vpop.f32.mrb[19].mxu0  ;;  %8234 = vmatpush3.bf16.msra.mxu0 %v9700_v47 }
 0x386   :  { %v1110_v23 = vmul.f32 %v10336_v57, %v1071_v8  ;;  %v979_v26 = vadd.f32 %v10329_v51, %v978_v21  ;;  %v10492_v27 = vpack.c.bf16 %v10478_v53, %v10443_v38  ;;  %v1180_v33 = vpack.c.bf16 %v10471_v5, %v10478_v53  ;;  %8235 = vmatprep.subr.bf16.mxu0 %v9702_v7 }
 0x387   :  { %v1074_v28 = vmax.f32 %v984_v18, 0.0  ;;  %v10495_v31 = vadd.f32 %v10341_v63, %v1111_v14  ;;  %9353 = vmatpush3.bf16.msra.mxu1 %v9701_v62 }
 0x388   :  { %v1073_v34 = vmax.f32 %v979_v26, 0.0  ;;  %v9219_v32 = vpop.f32.mrb[22].mxu1  ;;  %v9275_v35 = vpop.f32.mrb[20].mxu0  ;;  %9319 = vmatmul.mubr.bf16.gmra.mrb[44].mxu0 %v10492_v27  ;;  %v10501_v37 = vadd.f32 %v10341_v63, %v1110_v23 }
 0x389   :  { %v1113_v40 = vmul.f32 %v10336_v57, %v1074_v28  ;;  %v10505_v41 = vadd.f32 %v9219_v32, %v10460_v56  ;;  %v994_v44 = vadd.f32 %v9275_v35, %v10329_v51  ;;  %v752_v47 = vpop.f32.mrb[23].mxu1  ;;  %v988_v48 = vpop.f32.mrb[21].mxu0  ;;  %8236 = vmatpush3.bf16.msra.mxu0 %v9703_v13  ;;  %1456 = vmatmul.mubr.bf16.gmra.mrb[48].mxu1 %v10415_v15 }
 0x38a   :  { %v1112_v49 = vmul.f32 %v10336_v57, %v1073_v34  ;;  %v10510_v54 = vadd.f32 %v10460_v56, %v752_v47  ;;  %v989_v58 = vadd.f32 %v10329_v51, %v988_v48  ;;  %v10516_v59 = vpack.c.bf16 %v10501_v37, %v10471_v5  ;;  %1463 = vmatprep.mubr.bf16.mxu1 %v1176_v39 }
 0x38b   :  { %v1076_v2 = vmax.f32 %v994_v44, 0.0  ;;  %v10522_v62 = vadd.f32 %v10341_v63, %v1113_v40 }
 0x38c   :  { %v1075_v8 = vmax.f32 %v989_v58, 0.0  ;;  %v9222_v9 = vpop.f32.mrb[24].mxu1  ;;  %v9278_v12 = vpop.f32.mrb[22].mxu0  ;;  %9322 = vmatprep.mubr.bf16.mxu0 %v10516_v59  ;;  %v10528_v15 = vadd.f32 %v10341_v63, %v1112_v49 }
 0x38d   :  { %v1115_v13 = vmul.f32 %v10336_v57, %v1076_v2  ;;  %v10532_v14 = vadd.f32 %v9222_v9, %v10460_v56  ;;  %v1004_v20 = vadd.f32 %v9278_v12, %v10329_v51  ;;  %v762_v24 = vpop.f32.mrb[25].mxu1  ;;  %v998_v39 = vpop.f32.mrb[23].mxu0 }
 0x38e   :  { %v1114_v18 = vmul.f32 %v10336_v57, %v1075_v8  ;;  %v10537_v21 = vadd.f32 %v10460_v56, %v762_v24  ;;  %v999_v23 = vadd.f32 %v10329_v51, %v998_v39  ;;  %v10542_v26 = vpack.c.bf16 %v10528_v15, %v10495_v31 }
 0x38f   :  { %v1078_v28 = vmax.f32 %v1004_v20, 0.0  ;;  %v10545_v34 = vadd.f32 %v10341_v63, %v1115_v13 }
 0x390   :  { %v1077_v35 = vmax.f32 %v999_v23, 0.0  ;;  %v9225_v40 = vpop.f32.mrb[26].mxu1  ;;  %v9281_v44 = vpop.f32.mrb[24].mxu0  ;;  %9323 = vmatmul.mubr.bf16.gmra.mrb[48].mxu0 %v10542_v26  ;;  %v10551_v47 = vadd.f32 %v10341_v63, %v1114_v18 }
 0x391   :  { %v1117_v48 = vmul.f32 %v10336_v57, %v1078_v28  ;;  %v10555_v49 = vadd.f32 %v9225_v40, %v10460_v56  ;;  %v1014_v58 = vadd.f32 %v9281_v44, %v10329_v51  ;;  %v772_v2 = vpop.f32.mrb[27].mxu1  ;;  %v1008_v8 = vpop.f32.mrb[25].mxu0  ;;  %1464 = vmatmul.mubr.bf16.gmra.mrb[52].mxu1 %v10440_v36 }
 0x392   :  { %v1116_v9 = vmul.f32 %v10336_v57, %v1077_v35  ;;  %v10560_v12 = vadd.f32 %v10460_v56, %v772_v2  ;;  %v1009_v13 = vadd.f32 %v10329_v51, %v1008_v8  ;;  %v10566_v20 = vpack.c.bf16 %v10551_v47, %v10522_v62  ;;  %1471 = vmatprep.mubr.bf16.mxu1 %v1178_v6 }
 0x393   :  { %v1080_v24 = vmax.f32 %v1014_v58, 0.0  ;;  %v10572_v39 = vadd.f32 %v10341_v63, %v1117_v48 }
 0x394   :  { %v1079_v23 = vmax.f32 %v1009_v13, 0.0  ;;  %v9228_v28 = vpop.f32.mrb[28].mxu1  ;;  %v9284_v35 = vpop.f32.mrb[26].mxu0  ;;  %9326 = vmatprep.mubr.bf16.mxu0 %v10566_v20  ;;  %v10578_v36 = vadd.f32 %v10341_v63, %v1116_v9 }
 0x395   :  { %v1119_v40 = vmul.f32 %v10336_v57, %v1080_v24  ;;  %v10582_v44 = vadd.f32 %v9228_v28, %v10460_v56  ;;  %v1024_v38 = vadd.f32 %v9284_v35, %v10329_v51  ;;  %v782_v45 = vpop.f32.mrb[29].mxu1  ;;  %v1018_v6 = vpop.f32.mrb[27].mxu0 }
 0x396   :  { %v1118_v48 = vmul.f32 %v10336_v57, %v1079_v23  ;;  %v10587_v58 = vadd.f32 %v10460_v56, %v782_v45  ;;  %v1019_v2 = vadd.f32 %v10329_v51, %v1018_v6  ;;  %v10592_v8 = vpack.c.bf16 %v10578_v36, %v10545_v34 }
 0x397   :  { %11978 = vst [vmem:[#allocation2_spill] sm:$0xff] %v10582_v44  ;;  %v1082_v9 = vmax.f32 %v1024_v38, 0.0  ;;  %v10595_v13 = vadd.f32 %v10341_v63, %v1119_v40 }
 0x398   :  { %v1081_v28 = vmax.f32 %v1019_v2, 0.0  ;;  %v9231_v35 = vpop.f32.mrb[30].mxu1  ;;  %v9287_v4 = vpop.f32.mrb[28].mxu0  ;;  %9327 = vmatmul.mubr.bf16.gmra.mrb[52].mxu0 %v10592_v8  ;;  %v10601_v23 = vadd.f32 %v10341_v63, %v1118_v48 }
 0x399   :  { %v1121_v45 = vmul.f32 %v10336_v57, %v1082_v9  ;;  %v10605_v6 = vadd.f32 %v9231_v35, %v10460_v56  ;;  %v1034_v38 = vadd.f32 %v9287_v4, %v10329_v51  ;;  %v792_v40 = vpop.f32.mrb[31].mxu1  ;;  %v1028_v18 = vpop.f32.mrb[29].mxu0  ;;  %1472 = vmatmul.mubr.bf16.gmra.mrb[56].mxu1 %v10467_v60 }
 0x39a   :  { %v1120_v0 = vmul.f32 %v10336_v57, %v1081_v28  ;;  %v10610_v2 = vadd.f32 %v10460_v56, %v792_v40  ;;  %v1029_v24 = vadd.f32 %v10329_v51, %v1028_v18  ;;  %v10616_v48 = vpack.c.bf16 %v10601_v23, %v10572_v39  ;;  %1479 = vmatprep.mubr.bf16.mxu1 %v1180_v33 }
 0x39b   :  { %11979 = vst [vmem:[#allocation3_spill] sm:$0xff] %v10605_v6  ;;  %v1084_v9 = vmax.f32 %v1034_v38, 0.0  ;;  %v10622_v4 = vadd.f32 %v10341_v63, %v1121_v45  ;;  %v1190_v28 = vpack.c.bf16 %v10595_v13, %v10601_v23 }
 0x39c   :  { %11980 = vst [vmem:[#allocation4_spill] sm:$0xff] %v10610_v2  ;;  %v1083_v35 = vmax.f32 %v1029_v24, 0.0  ;;  %v9234_v40 = vpop.f32.mrb[32].mxu1  ;;  %v9290_v18 = vpop.f32.mrb[30].mxu0  ;;  %9330 = vmatprep.mubr.bf16.mxu0 %v10616_v48  ;;  %v1159_v60 = vadd.f32 %v10341_v63, %v1120_v0 }
 0x39d   :  { %v1123_v32 = vmul.f32 %v10336_v57, %v1084_v9  ;;  %v10630_v38 = vadd.f32 %v9234_v40, %v10460_v56  ;;  %v1044_v5 = vadd.f32 %v9290_v18, %v10329_v51  ;;  %v802_v53 = vpop.f32.mrb[33].mxu1  ;;  %v1038_v33 = vpop.f32.mrb[31].mxu0 }
 0x39e   :  { %v1122_v45 = vmul.f32 %v10336_v57, %v1083_v35  ;;  %v10635_v23 = vadd.f32 %v10460_v56, %v802_v53  ;;  %v1039_v24 = vadd.f32 %v10329_v51, %v1038_v33  ;;  %v1191_v7 = vpack.c.bf16 %v1159_v60, %v10595_v13 }
 0x39f   :  { %11981 = vst [vmem:[#allocation5_spill] sm:$0xff] %v10630_v38  ;;  %v1086_v6 = vmax.f32 %v1044_v5, 0.0  ;;  %v1162_v0 = vadd.f32 %v10341_v63, %v1123_v32  ;;  %v1192_v9 = vpack.c.bf16 %v10622_v4, %v1159_v60 }
 0x3a0   :  { %11982 = vst [vmem:[#allocation6_spill] sm:$0xff] %v10635_v23  ;;  %v1085_v40 = vmax.f32 %v1039_v24, 0.0  ;;  %v9237_v38 = vpop.f32.mrb[34].mxu1  ;;  %v9293_v44 = vpop.f32.mrb[32].mxu0  ;;  %9331 = vmatmul.mubr.bf16.gmra.mrb[56].mxu0 %v1191_v7  ;;  %v1161_v18 = vadd.f32 %v10341_v63, %v1122_v45 }
 0x3a1   :  { %v1125_v35 = vmul.f32 %v10336_v57, %v1086_v6  ;;  %v10644_v53 = vadd.f32 %v9237_v38, %v10460_v56  ;;  %v1054_v33 = vadd.f32 %v9293_v44, %v10329_v51  ;;  %v812_v23 = vpop.f32.mrb[35].mxu1  ;;  %v1048_v13 = vpop.f32.mrb[33].mxu0  ;;  %1480 = vmatmul.mubr.bf16.gmra.mrb[60].mxu1 %v10492_v27  ;;  %v11985_v6 = vpack.c.bf16 %v10495_v31, %v10501_v37 }
 0x3a2   :  { %v1124_v5 = vmul.f32 %v10336_v57, %v1085_v40  ;;  %v10649_v32 = vadd.f32 %v10460_v56, %v812_v23  ;;  %v1049_v60 = vadd.f32 %v10329_v51, %v1048_v13  ;;  %v1193_v45 = vpack.c.bf16 %v1161_v18, %v10622_v4 }
 0x3a3   :  { %11983 = vst [vmem:[#allocation7_spill] sm:$0xff] %v10644_v53  ;;  %v1088_v24 = vmax.f32 %v1054_v33, 0.0  ;;  %1487 = vmatprep.mubr.bf16.mxu1 %v11985_v6  ;;  %v1164_v44 = vadd.f32 %v10341_v63, %v1125_v35  ;;  %v1194_v38 = vpack.c.bf16 %v1162_v0, %v1161_v18  ;;  %v11986_v35 = vpack.c.bf16 %v10522_v62, %v10528_v15  ;;  %v9705_v62 = vld [vmem:[%s10353_s27 + $0x28] sm:$0xff]   ;;  %v9706_v15 = vld [vmem:[%s10353_s27 + $0xb0] sm:$0xff]  }
 0x3a4   :  { %11984 = vst [vmem:[#allocation8_spill] sm:$0xff] %v10649_v32  ;;  %v1087_v53 = vmax.f32 %v1049_v60, 0.0  ;;  %9334 = vmatprep.mubr.bf16.mxu0 %v1193_v45  ;;  %v1163_v40 = vadd.f32 %v10341_v63, %v1124_v5  ;;  %9354 = vmatprep.subr.bf16.mxu1 %v9706_v15 }
 0x3a5   :  { %v1127_v56 = vmul.f32 %v10336_v57, %v1088_v24  ;;  %9355 = vmatpush3.bf16.msra.mxu1 %v9706_v15 }
 0x3a6   :  { %v1126_v51 = vmul.f32 %v10336_v57, %v1087_v53  ;;  %v1195_v23 = vpack.c.bf16 %v1163_v40, %v1162_v0  ;;  %v1196_v27 = vpack.c.bf16 %v1164_v44, %v1163_v40  ;;  %v11987_v57 = vmov 0.0  }
 0x3a7   :  { %v1166_v4 = vadd.f32 %v10341_v63, %v1127_v56  ;;  %v11988_v53 = vpack.c.bf16 %v10545_v34, %v10551_v47  ;;  %v9708_v34 = vld [vmem:[%s10353_s27 + $0x30] sm:$0xff]   ;;  %v9709_v47 = vld [vmem:[%s10353_s27 + $0x78] sm:$0xff]  }
 0x3a8   :  { %9335 = vmatmul.mubr.bf16.gmra.mrb[60].mxu0 %v1195_v23  ;;  %v1165_v31 = vadd.f32 %v10341_v63, %v1126_v51  ;;  %v11989_v63 = vpack.c.bf16 %v10572_v39, %v10578_v36  ;;  %v9711_v39 = vld [vmem:[%s10353_s27 + $0xb8] sm:$0xff]  }
 0x3a9   :  { %1488 = vmatmul.mubr.bf16.gmra.mrb[64].mxu1 %v10516_v59  ;;  %v1199_v0 = vpack.c.bf16 %v11987_v57, %v1166_v4  ;;  %v9704_v59 = vld [vmem:[%s10353_s27 + $0x68] sm:$0xff]   ;;  %9356 = vmatprep.subr.bf16.mxu1 %v9711_v39 }
 0x3aa   :  { %v1197_v37 = vpack.c.bf16 %v1165_v31, %v1164_v44  ;;  %v1198_v18 = vpack.c.bf16 %v1166_v4, %v1165_v31  ;;  %1495 = vmatprep.mubr.bf16.mxu1 %v11986_v35  ;;  %8237 = vmatprep.subr.bf16.mxu0 %v9704_v59 }
 0x3ab   :  { %8238 = vmatpush3.bf16.msra.mxu0 %v9705_v62  ;;  %9357 = vmatpush3.bf16.msra.mxu1 %v9711_v39 }
 0x3ac   :  { %9338 = vmatprep.mubr.bf16.mxu0 %v1197_v37 }
 0x3b0   :  { %9339 = vmatmul.mubr.bf16.gmra.mrb[64].mxu0 %v1199_v0 }
 0x3b1   :  { %1496 = vmatmul.mubr.bf16.gmra.mrb[68].mxu1 %v10542_v26  ;;  %v9707_v26 = vld [vmem:[%s10353_s27 + $0x70] sm:$0xff]  }
 0x3b2   :  { %1503 = vmatprep.mubr.bf16.mxu1 %v11988_v53  ;;  %8239 = vmatprep.subr.bf16.mxu0 %v9707_v26  ;;  %v10703_v53 = vld [vmem:[%s7505_s13] ss:$0 sm:$0xff]  ;;  %s11461_s13 = sld [smem:[%s11973_s0 + %s10083_s10]]  }
 0x3b3   :  { %8240 = vmatpush3.bf16.msra.mxu0 %v9708_v34 }
 0x3b4   :  { %8241 = vmatprep.subr.bf16.mxu0 %v9709_v47 }
 0x3b9   :  { %1504 = vmatmul.mubr.bf16.gmra.mrb[72].mxu1 %v10566_v20  ;;  %v9710_v20 = vld [vmem:[%s10353_s27 + $0x38] sm:$0xff]   ;;  %s11306_s27 = sld [smem:[%s11973_s0 + %s10079_s24]]  }
 0x3ba   :  { %1511 = vmatprep.mubr.bf16.mxu1 %v11989_v63  ;;  %8242 = vmatpush3.bf16.msra.mxu0 %v9710_v20 }
 0x3c1   :  { %1512 = vmatmul.mubr.bf16.gmra.mrb[76].mxu1 %v10592_v8 }
 0x3c2   :  { %1519 = vmatprep.mubr.bf16.mxu1 %v1190_v28 }
 0x3c9   :  { %1520 = vmatmul.mubr.bf16.gmra.mrb[80].mxu1 %v10616_v48 }
 0x3ca   :  { %1527 = vmatprep.mubr.bf16.mxu1 %v1192_v9  ;;  %v10692_v9 = vld [vmem:[%s7503_s5] ss:$0 sm:$0xff]  ;;  %s10074_s5 = smov 22  }
 0x3cb   :  { %s10939_s8 = sld [smem:[%s11973_s0 + %s10074_s5]]   ;;  %s10089_s5 = smov 38  }
 0x3d1   :  { %1528 = vmatmul.mubr.bf16.gmra.mrb[84].mxu1 %v1191_v7 }
 0x3d2   :  { %1535 = vmatprep.mubr.bf16.mxu1 %v1194_v38  ;;  %v10699_v38 = vld [vmem:[%s7504_s9] ss:$0 sm:$0xff]  ;;  %s11442_s9 = sld [smem:[%s11973_s0 + %s10082_s7]]  }
 0x3d9   :  { %1536 = vmatmul.mubr.bf16.gmra.mrb[88].mxu1 %v1193_v45 }
 0x3da   :  { %1543 = vmatprep.mubr.bf16.mxu1 %v1196_v27 }
 0x3e1   :  { %1544 = vmatmul.mubr.bf16.gmra.mrb[92].mxu1 %v1195_v23 }
 0x3e2   :  { %1551 = vmatprep.mubr.bf16.mxu1 %v1198_v18 }
 0x3e9   :  { %1552 = vmatmul.mubr.bf16.gmra.mrb[96].mxu1 %v1197_v37 }
 0x444   :  { %v8107_v7 = vpop.f32.mrb[36].mxu1 }
 0x445   :  { %v8108_v36 = vpop.f32.mrb[37].mxu1 }
 0x446   :  { %v8109_v8 = vadd.f32 %v8108_v36, %v8107_v7  ;;  %v8110_v48 = vpop.f32.mrb[38].mxu1 }
 0x447   :  { %v8111_v28 = vpop.f32.mrb[39].mxu1 }
 0x448   :  { %v8112_v33 = vadd.f32 %v8111_v28, %v8110_v48  ;;  %v1434_v5 = vadd.f32 %v8109_v8, %v10692_v9 }
 0x44a   :  { %v1437_v44 = vadd.f32 %v8112_v33, %v10692_v9 }
 0x44b   :  { %v9312_v13 = vpop.f32.mrb[36].mxu0 }
 0x44c   :  { %v1594_v60 = vpop.f32.mrb[37].mxu0  ;;  %v8113_v45 = vpop.f32.mrb[40].mxu1 }
 0x44d   :  { %v1595_v24 = vadd.f32 %v1594_v60, %v1434_v5  ;;  %v9313_v6 = vpop.f32.mrb[38].mxu0  ;;  %v8114_v40 = vpop.f32.mrb[41].mxu1 }
 0x44e   :  { %v1597_v56 = vpop.f32.mrb[39].mxu0  ;;  %v8115_v23 = vadd.f32 %v8114_v40, %v8113_v45  ;;  %v8116_v27 = vpop.f32.mrb[42].mxu1 }
 0x44f   :  { %v1721_v51 = vmax.f32 %v1595_v24, 0.0  ;;  %v1598_v4 = vadd.f32 %v1597_v56, %v1437_v44  ;;  %v8117_v31 = vpop.f32.mrb[43].mxu1 }
 0x450   :  { %v1442_v18 = vadd.f32 %v8115_v23, %v10692_v9  ;;  %v8118_v0 = vadd.f32 %v8117_v31, %v8116_v27  ;;  %v9713_v23 = vld [vmem:[%s10710_s17 + $0x88] sm:$0xff]  }
 0x451   :  { %v1760_v37 = vmul.f32 %v10699_v38, %v1721_v51  ;;  %v1722_v35 = vmax.f32 %v1598_v4, 0.0  ;;  %v9712_v51 = vld [vmem:[%s10710_s17 + $0x80] sm:$0xff]  }
 0x452   :  { %v1603_v63 = vadd.f32 %v9312_v13, %v1442_v18  ;;  %v1445_v62 = vadd.f32 %v8118_v0, %v10692_v9  ;;  %9390 = vmatprep.subr.bf16.mxu0 %v9712_v51  ;;  %v9714_v0 = vld [vmem:[%s10710_s17 + $0x90] sm:$0xff]  }
 0x453   :  { %v1761_v59 = vmul.f32 %v10699_v38, %v1722_v35  ;;  %v9316_v15 = vpop.f32.mrb[40].mxu0  ;;  %v1799_v34 = vadd.f32 %v10703_v53, %v1760_v37 }
 0x454   :  { %v1610_v26 = vpop.f32.mrb[41].mxu0  ;;  %v1723_v47 = vmax.f32 %v1603_v63, 0.0  ;;  %v1606_v20 = vadd.f32 %v9313_v6, %v1445_v62  ;;  %v8119_v39 = vpop.f32.mrb[44].mxu1 }
 0x455   :  { %v10713_v7 = vpop.f32.mrb[42].mxu0  ;;  %v1800_v36 = vadd.f32 %v10703_v53, %v1761_v59  ;;  %v8120_v8 = vpop.f32.mrb[45].mxu1  ;;  %v1831_v24 = vpack.c.bf16 %v1799_v34, %v11987_v57 }
 0x456   :  { %v1613_v48 = vpop.f32.mrb[43].mxu0  ;;  %v1724_v28 = vmax.f32 %v1606_v20, 0.0  ;;  %v8121_v33 = vadd.f32 %v8120_v8, %v8119_v39  ;;  %v8122_v13 = vpop.f32.mrb[46].mxu1  ;;  %v1762_v60 = vmul.f32 %v10699_v38, %v1723_v47  ;;  %v9716_v47 = vld [vmem:[%s10710_s17 + $0x40] sm:$0xff]  }
 0x457   :  { %v1832_v5 = vpack.c.bf16 %v1800_v36, %v1799_v34  ;;  %v8123_v45 = vpop.f32.mrb[47].mxu1  ;;  %8363 = vmatprep.subr.bf16.mxu1 %v9716_v47  ;;  %v9721_v47 = vld [vmem:[%s10710_s17 + $0x50] sm:$0xff]  }
 0x458   :  { %v1450_v6 = vadd.f32 %v8121_v33, %v10692_v9  ;;  %v8124_v44 = vadd.f32 %v8123_v45, %v8122_v13  ;;  %v1801_v40 = vadd.f32 %v10703_v53, %v1762_v60  ;;  %v1763_v56 = vmul.f32 %v10699_v38, %v1724_v28  ;;  %v9715_v13 = vld [vmem:[%s10710_s17 + $0x98] sm:$0xff]  }
 0x459   :  { %2095 = vmatprep.mubr.bf16.mxu0 %v1832_v5 }
 0x45a   :  { %2096 = vmatmul.mubr.bf16.vlgmr.msra.gmra.mrb[68].mxu0 %v1831_v24  ;;  %v1611_v27 = vadd.f32 %v1610_v26, %v1450_v6  ;;  %v1453_v4 = vadd.f32 %v8124_v44, %v10692_v9  ;;  %v1833_v37 = vpack.c.bf16 %v1801_v40, %v1800_v36  ;;  %v1802_v18 = vadd.f32 %v10703_v53, %v1763_v56  ;;  %v9717_v6 = vld [vmem:[%s10710_s17] sm:$0xff]  }
 0x45b   :  { %v10724_v31 = vpop.f32.mrb[44].mxu0  ;;  %9391 = vmatpush3.bf16.msra.mxu0 %v9712_v51 }
 0x45c   :  { %v10727_v35 = vpop.f32.mrb[45].mxu0  ;;  %v1725_v63 = vmax.f32 %v1611_v27, 0.0  ;;  %v1614_v59 = vadd.f32 %v1613_v48, %v1453_v4  ;;  %v8125_v62 = vpop.f32.mrb[48].mxu1  ;;  %9358 = vmatprep.mubr.bf16.mxu1 %v1833_v37  ;;  %v1834_v26 = vpack.c.bf16 %v1802_v18, %v1801_v40  ;;  %9392 = vmatprep.subr.bf16.mxu0 %v9713_v23  ;;  %v9718_v27 = vld [vmem:[%s10710_s17 + $0x48] sm:$0xff]  }
 0x45d   :  { %v10730_v34 = vpop.f32.mrb[46].mxu0  ;;  %v8126_v20 = vpop.f32.mrb[49].mxu1 }
 0x45e   :  { %v10733_v39 = vpop.f32.mrb[47].mxu0  ;;  %v1764_v36 = vmul.f32 %v10699_v38, %v1725_v63  ;;  %v1726_v8 = vmax.f32 %v1614_v59, 0.0  ;;  %v8127_v28 = vadd.f32 %v8126_v20, %v8125_v62  ;;  %v8128_v33 = vpop.f32.mrb[50].mxu1  ;;  %2103 = vmatprep.mubr.bf16.mxu0 %v1834_v26  ;;  %v9719_v63 = vld [vmem:[%s10710_s17 + $0x8] sm:$0xff]   ;;  %v9720_v59 = vld [vmem:[%s10710_s17 + $0xa0] sm:$0xff]  }
 0x45f   :  { %v8129_v48 = vpop.f32.mrb[51].mxu1  ;;  %9393 = vmatpush3.bf16.msra.mxu0 %v9713_v23 }
 0x460   :  { %v1458_v5 = vadd.f32 %v8127_v28, %v10692_v9  ;;  %v1803_v60 = vadd.f32 %v10703_v53, %v1764_v36  ;;  %v8130_v45 = vadd.f32 %v8129_v48, %v8128_v33  ;;  %v1765_v24 = vmul.f32 %v10699_v38, %v1726_v8  ;;  %9394 = vmatprep.subr.bf16.mxu0 %v9714_v0  ;;  %v9722_v48 = vld [vmem:[%s10710_s17 + $0x10] sm:$0xff]  }
 0x462   :  { %2104 = vmatmul.mubr.bf16.gmra.mrb[72].mxu0 %v1833_v37  ;;  %v1619_v44 = vadd.f32 %v9316_v15, %v1458_v5  ;;  %v1835_v40 = vpack.c.bf16 %v1803_v60, %v1802_v18  ;;  %v1461_v56 = vadd.f32 %v8130_v45, %v10692_v9  ;;  %v1804_v23 = vadd.f32 %v10703_v53, %v1765_v24 }
 0x463   :  { %v10742_v51 = vpop.f32.mrb[48].mxu0  ;;  %9395 = vmatpush3.bf16.msra.mxu0 %v9714_v0 }
 0x464   :  { %v10746_v4 = vpop.f32.mrb[49].mxu0  ;;  %v1727_v62 = vmax.f32 %v1619_v44, 0.0  ;;  %v1622_v26 = vadd.f32 %v10713_v7, %v1461_v56  ;;  %v8131_v37 = vpop.f32.mrb[52].mxu1  ;;  %9359 = vmatmul.mubr.bf16.vlgmr.msra.gmra.mrb[100].mxu1 %v1835_v40  ;;  %v1836_v18 = vpack.c.bf16 %v1804_v23, %v1803_v60  ;;  %9396 = vmatprep.subr.bf16.mxu0 %v9715_v13 }
 0x465   :  { %v10751_v15 = vpop.f32.mrb[50].mxu0  ;;  %v8132_v20 = vpop.f32.mrb[53].mxu1  ;;  %8364 = vmatpush3.bf16.msra.mxu1 %v9717_v6 }
 0x466   :  { %v10754_v36 = vpop.f32.mrb[51].mxu0  ;;  %v1728_v8 = vmax.f32 %v1622_v26, 0.0  ;;  %v8133_v28 = vadd.f32 %v8132_v20, %v8131_v37  ;;  %v8134_v0 = vpop.f32.mrb[54].mxu1  ;;  %2111 = vmatprep.mubr.bf16.mxu0 %v1836_v18  ;;  %v1766_v33 = vmul.f32 %v10699_v38, %v1727_v62  ;;  %8365 = vmatprep.subr.bf16.mxu1 %v9718_v27 }
 0x467   :  { %v8135_v7 = vpop.f32.mrb[55].mxu1  ;;  %9397 = vmatpush3.bf16.msra.mxu0 %v9715_v13 }
 0x468   :  { %v1466_v5 = vadd.f32 %v8133_v28, %v10692_v9  ;;  %v8136_v45 = vadd.f32 %v8135_v7, %v8134_v0  ;;  %v1805_v60 = vadd.f32 %v10703_v53, %v1766_v33  ;;  %v1767_v24 = vmul.f32 %v10699_v38, %v1728_v8  ;;  %9398 = vmatprep.subr.bf16.mxu0 %v9720_v59 }
 0x469   :  { %8366 = vmatpush3.bf16.msra.mxu1 %v9719_v63 }
 0x46a   :  { %2112 = vmatmul.mubr.bf16.gmra.mrb[76].mxu0 %v1835_v40  ;;  %v1627_v6 = vadd.f32 %v10727_v35, %v1466_v5  ;;  %v1469_v44 = vadd.f32 %v8136_v45, %v10692_v9  ;;  %v1837_v27 = vpack.c.bf16 %v1805_v60, %v1804_v23  ;;  %v1806_v13 = vadd.f32 %v10703_v53, %v1767_v24 }
 0x46b   :  { %v10763_v56 = vpop.f32.mrb[52].mxu0  ;;  %8367 = vmatprep.subr.bf16.mxu1 %v9721_v47  ;;  %9399 = vmatpush3.bf16.msra.mxu0 %v9720_v59 }
 0x46c   :  { %v10766_v62 = vpop.f32.mrb[53].mxu0  ;;  %v1729_v26 = vmax.f32 %v1627_v6, 0.0  ;;  %v1630_v37 = vadd.f32 %v10733_v39, %v1469_v44  ;;  %v8137_v18 = vpop.f32.mrb[56].mxu1  ;;  %9362 = vmatprep.mubr.bf16.mxu1 %v1837_v27  ;;  %v1838_v63 = vpack.c.bf16 %v1806_v13, %v1805_v60 }
 0x46d   :  { %v10769_v40 = vpop.f32.mrb[54].mxu0  ;;  %v8138_v35 = vpop.f32.mrb[57].mxu1  ;;  %8368 = vmatpush3.bf16.msra.mxu1 %v9722_v48 }
 0x46e   :  { %v10771_v20 = vpop.f32.mrb[55].mxu0  ;;  %v1730_v8 = vmax.f32 %v1630_v37, 0.0  ;;  %v8139_v23 = vadd.f32 %v8138_v35, %v8137_v18  ;;  %v8140_v28 = vpop.f32.mrb[58].mxu1  ;;  %2119 = vmatprep.mubr.bf16.mxu0 %v1838_v63  ;;  %v1768_v47 = vmul.f32 %v10699_v38, %v1729_v26 }
 0x46f   :  { %v8141_v0 = vpop.f32.mrb[59].mxu1 }
 0x470   :  { %v1474_v59 = vadd.f32 %v8139_v23, %v10692_v9  ;;  %v8142_v33 = vadd.f32 %v8141_v0, %v8140_v28  ;;  %v1807_v39 = vadd.f32 %v10703_v53, %v1768_v47  ;;  %v1769_v7 = vmul.f32 %v10699_v38, %v1730_v8 }
 0x472   :  { %2120 = vmatmul.mubr.bf16.gmra.mrb[80].mxu0 %v1837_v27  ;;  %v1635_v5 = vadd.f32 %v10724_v31, %v1474_v59  ;;  %v1477_v45 = vadd.f32 %v8142_v33, %v10692_v9  ;;  %v1839_v60 = vpack.c.bf16 %v1807_v39, %v1806_v13  ;;  %v1808_v24 = vadd.f32 %v10703_v53, %v1769_v7 }
 0x473   :  { %v10779_v48 = vpop.f32.mrb[56].mxu0 }
 0x474   :  { %v10782_v6 = vpop.f32.mrb[57].mxu0  ;;  %v1731_v44 = vmax.f32 %v1635_v5, 0.0  ;;  %v1638_v26 = vadd.f32 %v10730_v34, %v1477_v45  ;;  %v8143_v37 = vpop.f32.mrb[60].mxu1  ;;  %9363 = vmatmul.mubr.bf16.gmra.mrb[104].mxu1 %v1839_v60  ;;  %v1840_v63 = vpack.c.bf16 %v1808_v24, %v1807_v39 }
 0x475   :  { %v10785_v18 = vpop.f32.mrb[58].mxu0  ;;  %v8144_v27 = vpop.f32.mrb[61].mxu1 }
 0x476   :  { %v10787_v35 = vpop.f32.mrb[59].mxu0  ;;  %v1732_v31 = vmax.f32 %v1638_v26, 0.0  ;;  %v8145_v8 = vadd.f32 %v8144_v27, %v8143_v37  ;;  %v8146_v23 = vpop.f32.mrb[62].mxu1  ;;  %2127 = vmatprep.mubr.bf16.mxu0 %v1840_v63  ;;  %v1770_v13 = vmul.f32 %v10699_v38, %v1731_v44 }
 0x477   :  { %v8147_v28 = vpop.f32.mrb[63].mxu1 }
 0x478   :  { %v1482_v47 = vadd.f32 %v8145_v8, %v10692_v9  ;;  %v8148_v0 = vadd.f32 %v8147_v28, %v8146_v23  ;;  %v1809_v34 = vadd.f32 %v10703_v53, %v1770_v13  ;;  %v1771_v59 = vmul.f32 %v10699_v38, %v1732_v31 }
 0x47a   :  { %2128 = vmatmul.mubr.bf16.gmra.mrb[84].mxu0 %v1839_v60  ;;  %v1643_v33 = vadd.f32 %v10746_v4, %v1482_v47  ;;  %v1485_v39 = vadd.f32 %v8148_v0, %v10692_v9  ;;  %v1841_v5 = vpack.c.bf16 %v1809_v34, %v1808_v24  ;;  %v1810_v45 = vadd.f32 %v10703_v53, %v1771_v59 }
 0x47b   :  { %v10795_v7 = vpop.f32.mrb[60].mxu0 }
 0x47c   :  { %v10798_v26 = vpop.f32.mrb[61].mxu0  ;;  %v1733_v44 = vmax.f32 %v1643_v33, 0.0  ;;  %v1646_v37 = vadd.f32 %v10754_v36, %v1485_v39  ;;  %v8149_v63 = vpop.f32.mrb[64].mxu1  ;;  %9366 = vmatprep.mubr.bf16.mxu1 %v1841_v5  ;;  %v1842_v31 = vpack.c.bf16 %v1810_v45, %v1809_v34 }
 0x47d   :  { %v10801_v27 = vpop.f32.mrb[62].mxu0  ;;  %v8150_v60 = vpop.f32.mrb[65].mxu1 }
 0x47e   :  { %v10803_v8 = vpop.f32.mrb[63].mxu0  ;;  %v1734_v4 = vmax.f32 %v1646_v37, 0.0  ;;  %v8151_v23 = vadd.f32 %v8150_v60, %v8149_v63  ;;  %v8152_v13 = vpop.f32.mrb[66].mxu1  ;;  %2135 = vmatprep.mubr.bf16.mxu0 %v1842_v31  ;;  %v1772_v24 = vmul.f32 %v10699_v38, %v1733_v44 }
 0x47f   :  { %v8153_v28 = vpop.f32.mrb[67].mxu1 }
 0x480   :  { %v1490_v47 = vadd.f32 %v8151_v23, %v10692_v9  ;;  %v8154_v0 = vadd.f32 %v8153_v28, %v8152_v13  ;;  %v1811_v36 = vadd.f32 %v10703_v53, %v1772_v24  ;;  %v1773_v59 = vmul.f32 %v10699_v38, %v1734_v4 }
 0x482   :  { %2136 = vmatmul.mubr.bf16.gmra.mrb[88].mxu0 %v1841_v5  ;;  %v1651_v34 = vadd.f32 %v10742_v51, %v1490_v47  ;;  %v1493_v33 = vadd.f32 %v8154_v0, %v10692_v9  ;;  %v1843_v37 = vpack.c.bf16 %v1811_v36, %v1810_v45  ;;  %v1812_v63 = vadd.f32 %v10703_v53, %v1773_v59 }
 0x483   :  { %v10811_v39 = vpop.f32.mrb[64].mxu0 }
 0x484   :  { %v10814_v31 = vpop.f32.mrb[65].mxu0  ;;  %v1735_v44 = vmax.f32 %v1651_v34, 0.0  ;;  %v1654_v60 = vadd.f32 %v10751_v15, %v1493_v33  ;;  %v8155_v23 = vpop.f32.mrb[68].mxu1  ;;  %9367 = vmatmul.mubr.bf16.gmra.mrb[108].mxu1 %v1843_v37  ;;  %v1844_v4 = vpack.c.bf16 %v1812_v63, %v1811_v36 }
 0x485   :  { %v10817_v13 = vpop.f32.mrb[66].mxu0  ;;  %v8156_v5 = vpop.f32.mrb[69].mxu1 }
 0x486   :  { %v10819_v24 = vpop.f32.mrb[67].mxu0  ;;  %v1736_v51 = vmax.f32 %v1654_v60, 0.0  ;;  %v8157_v28 = vadd.f32 %v8156_v5, %v8155_v23  ;;  %v8158_v47 = vpop.f32.mrb[70].mxu1  ;;  %2143 = vmatprep.mubr.bf16.mxu0 %v1844_v4  ;;  %v1774_v45 = vmul.f32 %v10699_v38, %v1735_v44 }
 0x487   :  { %v8159_v0 = vpop.f32.mrb[71].mxu1 }
 0x488   :  { %v1498_v59 = vadd.f32 %v8157_v28, %v10692_v9  ;;  %v8160_v34 = vadd.f32 %v8159_v0, %v8158_v47  ;;  %v1813_v15 = vadd.f32 %v10703_v53, %v1774_v45  ;;  %v1775_v33 = vmul.f32 %v10699_v38, %v1736_v51 }
 0x48a   :  { %2144 = vmatmul.mubr.bf16.gmra.mrb[92].mxu0 %v1843_v37  ;;  %v1659_v36 = vadd.f32 %v10766_v62, %v1498_v59  ;;  %v1501_v32 = vadd.f32 %v8160_v34, %v10692_v9  ;;  %v1845_v2 = vpack.c.bf16 %v1813_v15, %v1812_v63  ;;  %v1814_v60 = vadd.f32 %v10703_v53, %v1775_v33 }
 0x48c   :  { %v1737_v23 = vmax.f32 %v1659_v36, 0.0  ;;  %v1662_v4 = vadd.f32 %v10771_v20, %v1501_v32  ;;  %v8161_v44 = vpop.f32.mrb[72].mxu1  ;;  %9370 = vmatprep.mubr.bf16.mxu1 %v1845_v2  ;;  %v1846_v5 = vpack.c.bf16 %v1814_v60, %v1813_v15 }
 0x48d   :  { %v8162_v28 = vpop.f32.mrb[73].mxu1 }
 0x48e   :  { %v1776_v47 = vmul.f32 %v10699_v38, %v1737_v23  ;;  %v1738_v45 = vmax.f32 %v1662_v4, 0.0  ;;  %v8163_v0 = vadd.f32 %v8162_v28, %v8161_v44  ;;  %v8164_v51 = vpop.f32.mrb[74].mxu1  ;;  %2151 = vmatprep.mubr.bf16.mxu0 %v1846_v5 }
 0x48f   :  { %v8165_v37 = vpop.f32.mrb[75].mxu1 }
 0x490   :  { %v1777_v62 = vmul.f32 %v10699_v38, %v1738_v45  ;;  %v1506_v63 = vadd.f32 %v8163_v0, %v10692_v9  ;;  %v8166_v59 = vadd.f32 %v8165_v37, %v8164_v51  ;;  %v1815_v34 = vadd.f32 %v10703_v53, %v1776_v47 }
 0x492   :  { %2152 = vmatmul.mubr.bf16.gmra.mrb[96].mxu0 %v1845_v2  ;;  %v1667_v32 = vadd.f32 %v10763_v56, %v1506_v63  ;;  %v1509_v20 = vadd.f32 %v8166_v59, %v10692_v9  ;;  %v1847_v15 = vpack.c.bf16 %v1815_v34, %v1814_v60  ;;  %v1816_v33 = vadd.f32 %v10703_v53, %v1777_v62 }
 0x494   :  { %v1739_v36 = vmax.f32 %v1667_v32, 0.0  ;;  %v1670_v23 = vadd.f32 %v10769_v40, %v1509_v20  ;;  %v8167_v4 = vpop.f32.mrb[76].mxu1  ;;  %9371 = vmatmul.mubr.bf16.gmra.mrb[112].mxu1 %v1847_v15  ;;  %v1848_v44 = vpack.c.bf16 %v1816_v33, %v1815_v34 }
 0x495   :  { %v8168_v5 = vpop.f32.mrb[77].mxu1 }
 0x496   :  { %v1778_v28 = vmul.f32 %v10699_v38, %v1739_v36  ;;  %v1740_v45 = vmax.f32 %v1670_v23, 0.0  ;;  %v8169_v0 = vadd.f32 %v8168_v5, %v8167_v4  ;;  %v8170_v47 = vpop.f32.mrb[78].mxu1  ;;  %2159 = vmatprep.mubr.bf16.mxu0 %v1848_v44 }
 0x497   :  { %v8171_v2 = vpop.f32.mrb[79].mxu1 }
 0x498   :  { %v1779_v56 = vmul.f32 %v10699_v38, %v1740_v45  ;;  %v1514_v60 = vadd.f32 %v8169_v0, %v10692_v9  ;;  %v8172_v51 = vadd.f32 %v8171_v2, %v8170_v47  ;;  %v1817_v37 = vadd.f32 %v10703_v53, %v1778_v28 }
 0x49a   :  { %2160 = vmatmul.mubr.bf16.gmra.mrb[100].mxu0 %v1847_v15  ;;  %v1675_v40 = vadd.f32 %v10782_v6, %v1514_v60  ;;  %v1517_v62 = vadd.f32 %v8172_v51, %v10692_v9  ;;  %v1849_v63 = vpack.c.bf16 %v1817_v37, %v1816_v33  ;;  %v1818_v59 = vadd.f32 %v10703_v53, %v1779_v56 }
 0x49c   :  { %v1741_v34 = vmax.f32 %v1675_v40, 0.0  ;;  %v1678_v32 = vadd.f32 %v10787_v35, %v1517_v62  ;;  %v8173_v20 = vpop.f32.mrb[80].mxu1  ;;  %9374 = vmatprep.mubr.bf16.mxu1 %v1849_v63  ;;  %v1850_v36 = vpack.c.bf16 %v1818_v59, %v1817_v37 }
 0x49d   :  { %v8174_v23 = vpop.f32.mrb[81].mxu1 }
 0x49e   :  { %v1780_v4 = vmul.f32 %v10699_v38, %v1741_v34  ;;  %v1742_v44 = vmax.f32 %v1678_v32, 0.0  ;;  %v8175_v5 = vadd.f32 %v8174_v23, %v8173_v20  ;;  %v8176_v28 = vpop.f32.mrb[82].mxu1  ;;  %2167 = vmatprep.mubr.bf16.mxu0 %v1850_v36 }
 0x49f   :  { %v8177_v15 = vpop.f32.mrb[83].mxu1 }
 0x4a0   :  { %v1781_v6 = vmul.f32 %v10699_v38, %v1742_v44  ;;  %v1522_v33 = vadd.f32 %v8175_v5, %v10692_v9  ;;  %v8178_v45 = vadd.f32 %v8177_v15, %v8176_v28  ;;  %v1819_v0 = vadd.f32 %v10703_v53, %v1780_v4 }
 0x4a2   :  { %2168 = vmatmul.mubr.bf16.gmra.mrb[104].mxu0 %v1849_v63  ;;  %v1683_v35 = vadd.f32 %v10779_v48, %v1522_v33  ;;  %v1525_v47 = vadd.f32 %v8178_v45, %v10692_v9  ;;  %v1851_v2 = vpack.c.bf16 %v1819_v0, %v1818_v59  ;;  %v1820_v56 = vadd.f32 %v10703_v53, %v1781_v6 }
 0x4a4   :  { %v1743_v60 = vmax.f32 %v1683_v35, 0.0  ;;  %v1686_v51 = vadd.f32 %v10785_v18, %v1525_v47  ;;  %v8179_v37 = vpop.f32.mrb[84].mxu1  ;;  %9375 = vmatmul.mubr.bf16.gmra.mrb[116].mxu1 %v1851_v2  ;;  %v1852_v40 = vpack.c.bf16 %v1820_v56, %v1819_v0 }
 0x4a5   :  { %v8180_v62 = vpop.f32.mrb[85].mxu1 }
 0x4a6   :  { %v1782_v34 = vmul.f32 %v10699_v38, %v1743_v60  ;;  %v1744_v32 = vmax.f32 %v1686_v51, 0.0  ;;  %v8181_v20 = vadd.f32 %v8180_v62, %v8179_v37  ;;  %v8182_v36 = vpop.f32.mrb[86].mxu1  ;;  %2175 = vmatprep.mubr.bf16.mxu0 %v1852_v40  ;;  %v9724_v51 = vld [vmem:[%s10710_s17 + $0x18] sm:$0xff]  }
 0x4a7   :  { %v8183_v63 = vpop.f32.mrb[87].mxu1 }
 0x4a8   :  { %v1783_v48 = vmul.f32 %v10699_v38, %v1744_v32  ;;  %v1530_v59 = vadd.f32 %v8181_v20, %v10692_v9  ;;  %v8184_v23 = vadd.f32 %v8183_v63, %v8182_v36  ;;  %v1821_v4 = vadd.f32 %v10703_v53, %v1782_v34  ;;  %v9725_v34 = vld [vmem:[%s10710_s17 + $0xa8] sm:$0xff]  }
 0x4a9   :  { %9400 = vmatprep.subr.bf16.mxu0 %v9725_v34 }
 0x4aa   :  { %2176 = vmatmul.mubr.bf16.gmra.mrb[108].mxu0 %v1851_v2  ;;  %v1691_v18 = vadd.f32 %v10798_v26, %v1530_v59  ;;  %v1533_v44 = vadd.f32 %v8184_v23, %v10692_v9  ;;  %v1853_v5 = vpack.c.bf16 %v1821_v4, %v1820_v56  ;;  %v1822_v28 = vadd.f32 %v10703_v53, %v1783_v48  ;;  %v9723_v26 = vld [vmem:[%s10710_s17 + $0x58] sm:$0xff]  }
 0x4ab   :  { %8369 = vmatprep.subr.bf16.mxu1 %v9723_v26  ;;  %9401 = vmatpush3.bf16.msra.mxu0 %v9725_v34 }
 0x4ac   :  { %v1745_v15 = vmax.f32 %v1691_v18, 0.0  ;;  %v1694_v6 = vadd.f32 %v10803_v8, %v1533_v44  ;;  %v8185_v33 = vpop.f32.mrb[88].mxu1  ;;  %9378 = vmatprep.mubr.bf16.mxu1 %v1853_v5  ;;  %v1854_v45 = vpack.c.bf16 %v1822_v28, %v1821_v4  ;;  %8370 = vmatpush3.bf16.msra.mxu1 %v9724_v51 }
 0x4ad   :  { %v8186_v0 = vpop.f32.mrb[89].mxu1 }
 0x4ae   :  { %v1784_v35 = vmul.f32 %v10699_v38, %v1745_v15  ;;  %v1746_v47 = vmax.f32 %v1694_v6, 0.0  ;;  %v8187_v2 = vadd.f32 %v8186_v0, %v8185_v33  ;;  %v8188_v60 = vpop.f32.mrb[90].mxu1  ;;  %2183 = vmatprep.mubr.bf16.mxu0 %v1854_v45  ;;  %v9726_v6 = vld [vmem:[%s10710_s17 + $0x60] sm:$0xff]  }
 0x4af   :  { %v8189_v37 = vpop.f32.mrb[91].mxu1  ;;  %8371 = vmatprep.subr.bf16.mxu1 %v9726_v6 }
 0x4b0   :  { %v1785_v56 = vmul.f32 %v10699_v38, %v1746_v47  ;;  %v1538_v40 = vadd.f32 %v8187_v2, %v10692_v9  ;;  %v8190_v62 = vadd.f32 %v8189_v37, %v8188_v60  ;;  %v1823_v8 = vadd.f32 %v10703_v53, %v1784_v35 }
 0x4b2   :  { %2184 = vmatmul.mubr.bf16.gmra.mrb[112].mxu0 %v1853_v5  ;;  %v1699_v32 = vadd.f32 %v10795_v7, %v1538_v40  ;;  %v1541_v20 = vadd.f32 %v8190_v62, %v10692_v9  ;;  %v1855_v36 = vpack.c.bf16 %v1823_v8, %v1822_v28  ;;  %v1824_v63 = vadd.f32 %v10703_v53, %v1785_v56 }
 0x4b4   :  { %v1747_v48 = vmax.f32 %v1699_v32, 0.0  ;;  %v1702_v59 = vadd.f32 %v10801_v27, %v1541_v20  ;;  %v8191_v23 = vpop.f32.mrb[92].mxu1  ;;  %9379 = vmatmul.mubr.bf16.gmra.mrb[120].mxu1 %v1855_v36  ;;  %v1856_v4 = vpack.c.bf16 %v1824_v63, %v1823_v8 }
 0x4b5   :  { %v8192_v18 = vpop.f32.mrb[93].mxu1 }
 0x4b6   :  { %v1786_v44 = vmul.f32 %v10699_v38, %v1747_v48  ;;  %v1748_v5 = vmax.f32 %v1702_v59, 0.0  ;;  %v8193_v15 = vadd.f32 %v8192_v18, %v8191_v23  ;;  %v8194_v7 = vpop.f32.mrb[94].mxu1  ;;  %2191 = vmatprep.mubr.bf16.mxu0 %v1856_v4  ;;  %v9727_v18 = vld [vmem:[%s10710_s17 + $0x20] sm:$0xff]  }
 0x4b7   :  { %v8195_v33 = vpop.f32.mrb[95].mxu1  ;;  %8372 = vmatpush3.bf16.msra.mxu1 %v9727_v18 }
 0x4b8   :  { %v1787_v28 = vmul.f32 %v10699_v38, %v1748_v5  ;;  %v1546_v45 = vadd.f32 %v8193_v15, %v10692_v9  ;;  %v8196_v0 = vadd.f32 %v8195_v33, %v8194_v7  ;;  %v1825_v35 = vadd.f32 %v10703_v53, %v1786_v44  ;;  %v9728_v33 = vld [vmem:[%s10710_s17 + $0x68] sm:$0xff]  }
 0x4b9   :  { %8373 = vmatprep.subr.bf16.mxu1 %v9728_v33 }
 0x4ba   :  { %2192 = vmatmul.mubr.bf16.gmra.mrb[116].mxu0 %v1855_v36  ;;  %v1707_v27 = vadd.f32 %v10814_v31, %v1546_v45  ;;  %v1549_v47 = vadd.f32 %v8196_v0, %v10692_v9  ;;  %v1857_v2 = vpack.c.bf16 %v1825_v35, %v1824_v63  ;;  %v1826_v60 = vadd.f32 %v10703_v53, %v1787_v28  ;;  %v9730_v28 = vld [vmem:[%s10710_s17 + $0xb0] sm:$0xff]  }
 0x4bb   :  { %v9731_v45 = vld [vmem:[%s10710_s17 + $0x70] sm:$0xff]   ;;  %9402 = vmatprep.subr.bf16.mxu0 %v9730_v28 }
 0x4bc   :  { %v1749_v26 = vmax.f32 %v1707_v27, 0.0  ;;  %v1710_v51 = vadd.f32 %v10819_v24, %v1549_v47  ;;  %v8197_v37 = vpop.f32.mrb[96].mxu1  ;;  %9382 = vmatprep.mubr.bf16.mxu1 %v1857_v2  ;;  %v1858_v56 = vpack.c.bf16 %v1826_v60, %v1825_v35  ;;  %9403 = vmatpush3.bf16.msra.mxu0 %v9730_v28  ;;  %v9732_v27 = vld [vmem:[%s10710_s17 + $0x30] sm:$0xff]  }
 0x4bd   :  { %v8198_v40 = vpop.f32.mrb[97].mxu1 }
 0x4be   :  { %v1788_v62 = vmul.f32 %v10699_v38, %v1749_v26  ;;  %v1750_v8 = vmax.f32 %v1710_v51, 0.0  ;;  %v8199_v34 = vadd.f32 %v8198_v40, %v8197_v37  ;;  %v8200_v32 = vpop.f32.mrb[98].mxu1  ;;  %2199 = vmatprep.mubr.bf16.mxu0 %v1858_v56  ;;  %v9735_v26 = vld [vmem:[%s10710_s17 + $0xb8] sm:$0xff]  }
 0x4bf   :  { %v8201_v31 = vpop.f32.mrb[99].mxu1  ;;  %9404 = vmatprep.subr.bf16.mxu0 %v9735_v26 }
 0x4c0   :  { %v1789_v20 = vmul.f32 %v10699_v38, %v1750_v8  ;;  %v1554_v36 = vadd.f32 %v8199_v34, %v10692_v9  ;;  %v8202_v63 = vadd.f32 %v8201_v31, %v8200_v32  ;;  %v1827_v24 = vadd.f32 %v10703_v53, %v1788_v62  ;;  %9405 = vmatpush3.bf16.msra.mxu0 %v9735_v26  ;;  %v10919_v34 = vld [vmem:[%s10906_s21] ss:$0 sm:$0xff] }
 0x4c1   :  { %v10944_v26 = vld [vmem:[%s10410_s1] ss:$0 sm:$0xff]  ;;  %s10075_s1 = smov 27  }
 0x4c2   :  { %2200 = vmatmul.mubr.bf16.gmra.mrb[120].mxu0 %v1857_v2  ;;  %v1715_v48 = vadd.f32 %v10811_v39, %v1554_v36  ;;  %v1557_v59 = vadd.f32 %v8202_v63, %v10692_v9  ;;  %v1859_v23 = vpack.c.bf16 %v1827_v24, %v1826_v60  ;;  %v1828_v4 = vadd.f32 %v10703_v53, %v1789_v20  ;;  %v9729_v39 = vld [vmem:[%s10710_s17 + $0x28] sm:$0xff]   ;;  %v9734_v60 = vld [vmem:[%s10710_s17 + $0x38] sm:$0xff]   ;;  %s10986_s11 = sld [smem:[%s11973_s0 + %s10075_s1]]   ;;  %s10090_s1 = smov 39  }
 0x4c3   :  { %8374 = vmatpush3.bf16.msra.mxu1 %v9729_v39 }
 0x4c4   :  { %v1751_v44 = vmax.f32 %v1715_v48, 0.0  ;;  %v1718_v5 = vadd.f32 %v10817_v13, %v1557_v59  ;;  %9383 = vmatmul.mubr.bf16.gmra.mrb[124].mxu1 %v1859_v23  ;;  %v1860_v15 = vpack.c.bf16 %v1828_v4, %v1827_v24  ;;  %8375 = vmatprep.subr.bf16.mxu1 %v9731_v45  ;;  %v10934_v45 = vld [vmem:[%s10916_s29] ss:$0 sm:$0xff] }
 0x4c6   :  { %v1790_v7 = vmul.f32 %v10699_v38, %v1751_v44  ;;  %v1752_v6 = vmax.f32 %v1718_v5, 0.0  ;;  %2207 = vmatprep.mubr.bf16.mxu0 %v1860_v15  ;;  %v10925_v15 = vld [vmem:[%s10911_s25] ss:$0 sm:$0xff] }
 0x4c7   :  { %8376 = vmatpush3.bf16.msra.mxu1 %v9732_v27 }
 0x4c8   :  { %v1791_v9 = vmul.f32 %v10699_v38, %v1752_v6  ;;  %v1829_v0 = vadd.f32 %v10703_v53, %v1790_v7  ;;  %v9733_v38 = vld [vmem:[%s10710_s17 + $0x78] sm:$0xff]   ;;  %s7521_s17 = sld [smem:[%s11973_s0 + %s10084_s14]]  }
 0x4c9   :  { %8377 = vmatprep.subr.bf16.mxu1 %v9733_v38 }
 0x4ca   :  { %2208 = vmatmul.mubr.bf16.gmra.mrb[124].mxu0 %v1859_v23  ;;  %v1861_v13 = vpack.c.bf16 %v1829_v0, %v1828_v4  ;;  %v1830_v35 = vadd.f32 %v10703_v53, %v1791_v9 }
 0x4cb   :  { %8378 = vmatpush3.bf16.msra.mxu1 %v9734_v60 }
 0x4cc   :  { %9386 = vmatprep.mubr.bf16.mxu1 %v1861_v13  ;;  %v1862_v47 = vpack.c.bf16 %v1830_v35, %v1829_v0  ;;  %v1863_v2 = vpack.c.bf16 %v11987_v57, %v1830_v35 }
 0x4ce   :  { %2215 = vmatprep.mubr.bf16.mxu0 %v1862_v47  ;;  %9387 = vmatmul.mubr.bf16.gmra.mrb[128].mxu1 %v1863_v2 }
 0x4d2   :  { %2216 = vmatmul.mubr.bf16.gmra.mrb[128].mxu0 %v1861_v13 }
 0x52d   :  { %v8243_v51 = vpop.f32.mrb[68].mxu0 }
 0x52e   :  { %v8244_v53 = vpop.f32.mrb[69].mxu0 }
 0x52f   :  { %v8245_v37 = vadd.f32 %v8244_v53, %v8243_v51  ;;  %v8246_v56 = vpop.f32.mrb[70].mxu0  ;;  %v663_v51 = vadd.f32 %v10944_v26, %v10334_v55 }
 0x530   :  { %v8247_v40 = vpop.f32.mrb[71].mxu0 }
 0x531   :  { %v8248_v62 = vadd.f32 %v8247_v40, %v8246_v56  ;;  %v2098_v24 = vadd.f32 %v8245_v37, %v10919_v34  ;;  %v673_v40 = vadd.f32 %v10944_v26, %v10345_v3 }
 0x533   :  { %v2101_v44 = vadd.f32 %v8248_v62, %v10919_v34 }
 0x535   :  { %v8249_v8 = vpop.f32.mrb[72].mxu0 }
 0x536   :  { %v8250_v32 = vpop.f32.mrb[73].mxu0 }
 0x537   :  { %v8251_v31 = vadd.f32 %v8250_v32, %v8249_v8  ;;  %v8252_v20 = vpop.f32.mrb[74].mxu0  ;;  %v9360_v36 = vpop.f32.mrb[100].mxu1 }
 0x538   :  { %v8253_v63 = vpop.f32.mrb[75].mxu0  ;;  %v2258_v23 = vpop.f32.mrb[101].mxu1 }
 0x539   :  { %v2106_v48 = vadd.f32 %v8251_v31, %v10919_v34  ;;  %v8254_v59 = vadd.f32 %v8253_v63, %v8252_v20  ;;  %v2259_v4 = vadd.f32 %v2258_v23, %v2098_v24  ;;  %v9361_v18 = vpop.f32.mrb[102].mxu1  ;;  %v668_v31 = vadd.f32 %v10944_v26, %v10331_v52  ;;  %v10971_v24 = vld [vmem:[%s10931_s4] ss:$0 sm:$0xff] }
 0x53a   :  { %v2261_v6 = vpop.f32.mrb[103].mxu1 }
 0x53b   :  { %v2267_v5 = vadd.f32 %v9360_v36, %v2106_v48  ;;  %v2109_v7 = vadd.f32 %v8254_v59, %v10919_v34  ;;  %v2385_v33 = vmax.f32 %v2259_v4, 0.0  ;;  %v2262_v39 = vadd.f32 %v2261_v6, %v2101_v44 }
 0x53c   :  { %v678_v36 = vadd.f32 %v10944_v26, %v10339_v61 }
 0x53d   :  { %v2387_v28 = vmax.f32 %v2267_v5, 0.0  ;;  %v2270_v9 = vadd.f32 %v9361_v18, %v2109_v7  ;;  %v8255_v0 = vpop.f32.mrb[76].mxu0  ;;  %v2424_v13 = vmul.f32 %v10925_v15, %v2385_v33  ;;  %v2386_v35 = vmax.f32 %v2262_v39, 0.0  ;;  %v10976_v18 = vld [vmem:[%s10939_s8] ss:$0 sm:$0xff] }
 0x53e   :  { %v8256_v27 = vpop.f32.mrb[77].mxu0 }
 0x53f   :  { %v2426_v47 = vmul.f32 %v10925_v15, %v2387_v28  ;;  %v2388_v2 = vmax.f32 %v2270_v9, 0.0  ;;  %v8257_v38 = vadd.f32 %v8256_v27, %v8255_v0  ;;  %v8258_v60 = vpop.f32.mrb[78].mxu0  ;;  %v10949_v53 = vadd.f32 %v10934_v45, %v2424_v13 }
 0x540   :  { %v2425_v37 = vmul.f32 %v10925_v15, %v2386_v35  ;;  %v8259_v56 = vpop.f32.mrb[79].mxu0 }
 0x541   :  { %v10955_v62 = vadd.f32 %v10934_v45, %v2426_v47  ;;  %v2427_v8 = vmul.f32 %v10925_v15, %v2388_v2  ;;  %v8260_v32 = vadd.f32 %v8259_v56, %v8258_v60  ;;  %v2495_v55 = vadd.f32 %v10949_v53, %v663_v51 }
 0x542   :  { %v10962_v20 = vadd.f32 %v10934_v45, %v2425_v37  ;;  %v2114_v0 = vadd.f32 %v8257_v38, %v10919_v34 }
 0x543   :  { %v2497_v3 = vadd.f32 %v10955_v62, %v673_v40  ;;  %v10968_v63 = vadd.f32 %v10934_v45, %v2427_v8  ;;  %v2527_v48 = vmax.f32 %v2495_v55, 0.0  ;;  %v2117_v56 = vadd.f32 %v8260_v32, %v10919_v34 }
 0x544   :  { %v2496_v59 = vadd.f32 %v10962_v20, %v668_v31 }
 0x545   :  { %v2529_v23 = vmax.f32 %v2497_v3, 0.0  ;;  %v2498_v52 = vadd.f32 %v10968_v63, %v678_v36  ;;  %v8261_v4 = vpop.f32.mrb[80].mxu0  ;;  %v2566_v61 = vmul.f32 %v10971_v24, %v2527_v48 }
 0x546   :  { %v2528_v44 = vmax.f32 %v2496_v59, 0.0  ;;  %v8262_v5 = vpop.f32.mrb[81].mxu0 }
 0x547   :  { %v2530_v7 = vmax.f32 %v2498_v52, 0.0  ;;  %v8263_v6 = vadd.f32 %v8262_v5, %v8261_v4  ;;  %v8264_v33 = vpop.f32.mrb[82].mxu0  ;;  %v2568_v39 = vmul.f32 %v10971_v24, %v2529_v23  ;;  %v9364_v28 = vpop.f32.mrb[104].mxu1  ;;  %v2605_v35 = vadd.f32 %v10976_v18, %v2566_v61 }
 0x548   :  { %v8265_v9 = vpop.f32.mrb[83].mxu0  ;;  %v2567_v13 = vmul.f32 %v10971_v24, %v2528_v44  ;;  %v2274_v2 = vpop.f32.mrb[105].mxu1 }
 0x549   :  { %v2122_v27 = vadd.f32 %v8263_v6, %v10919_v34  ;;  %v8266_v47 = vadd.f32 %v8265_v9, %v8264_v33  ;;  %v2607_v60 = vadd.f32 %v10976_v18, %v2568_v39  ;;  %v2569_v51 = vmul.f32 %v10971_v24, %v2530_v7  ;;  %v9365_v38 = vpop.f32.mrb[106].mxu1 }
 0x54a   :  { %v2275_v37 = vadd.f32 %v2274_v2, %v2114_v0  ;;  %v2606_v40 = vadd.f32 %v10976_v18, %v2567_v13  ;;  %v2277_v55 = vpop.f32.mrb[107].mxu1  ;;  %v2637_v32 = vpack.c.bf16 %v2605_v35, %v11987_v57  ;;  %v9736_v0 = vld [vmem:[%s10986_s11 + $0x80] sm:$0xff]   ;;  %v9737_v13 = vld [vmem:[%s10986_s11 + $0x88] sm:$0xff]  }
 0x54b   :  { %v2283_v8 = vadd.f32 %v9364_v28, %v2122_v27  ;;  %v2125_v31 = vadd.f32 %v8266_v47, %v10919_v34  ;;  %v10995_v36 = vadd.f32 %v10976_v18, %v2569_v51  ;;  %v2278_v48 = vadd.f32 %v2277_v55, %v2117_v56  ;;  %9438 = vmatprep.subr.bf16.mxu1 %v9736_v0 }
 0x54c   :  { %v2389_v3 = vmax.f32 %v2275_v37, 0.0  ;;  %v2638_v59 = vpack.c.bf16 %v2606_v40, %v2605_v35  ;;  %v2639_v23 = vpack.c.bf16 %v2607_v60, %v2606_v40  ;;  %v683_v35 = vadd.f32 %v10944_v26, %v10360_v16 }
 0x54d   :  { %v2391_v52 = vmax.f32 %v2283_v8, 0.0  ;;  %v2286_v4 = vadd.f32 %v9365_v38, %v2125_v31  ;;  %v8267_v44 = vpop.f32.mrb[84].mxu0  ;;  %v2640_v5 = vpack.c.bf16 %v10995_v36, %v2607_v60  ;;  %v2390_v7 = vmax.f32 %v2278_v48, 0.0  ;;  %v9738_v8 = vld [vmem:[%s10986_s11 + $0x90] sm:$0xff]  }
 0x54e   :  { %v2428_v61 = vmul.f32 %v10925_v15, %v2389_v3  ;;  %2901 = vmatprep.mubr.bf16.mxu1 %v2638_v59  ;;  %9406 = vmatprep.mubr.bf16.mxu0 %v2639_v23  ;;  %v8268_v6 = vpop.f32.mrb[85].mxu0  ;;  %v693_v60 = vadd.f32 %v10944_v26, %v10371_v30  ;;  %v688_v16 = vadd.f32 %v10944_v26, %v10355_v11  ;;  %v9740_v3 = vld [vmem:[%s10986_s11 + $0x40] sm:$0xff]  }
 0x54f   :  { %v2430_v33 = vmul.f32 %v10925_v15, %v2391_v52  ;;  %v2392_v39 = vmax.f32 %v2286_v4, 0.0  ;;  %v8269_v28 = vadd.f32 %v8268_v6, %v8267_v44  ;;  %2902 = vmatmul.mubr.bf16.vlgmr.msra.gmra.mrb[132].mxu1 %v2637_v32  ;;  %v8270_v9 = vpop.f32.mrb[86].mxu0  ;;  %v2429_v47 = vmul.f32 %v10925_v15, %v2390_v7  ;;  %8499 = vmatprep.subr.bf16.mxu0 %v9740_v3 }
 0x550   :  { %v11006_v27 = vadd.f32 %v10934_v45, %v2428_v61  ;;  %2909 = vmatprep.mubr.bf16.mxu1 %v2640_v5  ;;  %v8271_v2 = vpop.f32.mrb[87].mxu0  ;;  %9439 = vmatpush3.bf16.msra.mxu1 %v9736_v0  ;;  %v698_v30 = vadd.f32 %v10944_v26, %v10366_v25 }
 0x551   :  { %v11012_v51 = vadd.f32 %v10934_v45, %v2430_v33  ;;  %v2431_v37 = vmul.f32 %v10925_v15, %v2392_v39  ;;  %v8272_v38 = vadd.f32 %v8271_v2, %v8270_v9  ;;  %v11019_v40 = vadd.f32 %v10934_v45, %v2429_v47  ;;  %9440 = vmatprep.subr.bf16.mxu1 %v9737_v13  ;;  %v9739_v33 = vld [vmem:[%s10986_s11 + $0x98] sm:$0xff]  }
 0x552   :  { %v2499_v56 = vadd.f32 %v11006_v27, %v683_v35  ;;  %v2130_v35 = vadd.f32 %v8269_v28, %v10919_v34 }
 0x553   :  { %v2501_v31 = vadd.f32 %v11012_v51, %v693_v60  ;;  %v11026_v55 = vadd.f32 %v10934_v45, %v2431_v37  ;;  %v2500_v11 = vadd.f32 %v11019_v40, %v688_v16  ;;  %v9741_v16 = vld [vmem:[%s10986_s11] sm:$0xff]   ;;  %v2133_v3 = vadd.f32 %v8272_v38, %v10919_v34 }
 0x554   :  { %v2531_v48 = vmax.f32 %v2499_v56, 0.0  ;;  %9441 = vmatpush3.bf16.msra.mxu1 %v9737_v13  ;;  %v9744_v38 = vld [vmem:[%s10986_s11 + $0xa0] sm:$0xff]  }
 0x555   :  { %v2533_v59 = vmax.f32 %v2501_v31, 0.0  ;;  %v2502_v52 = vadd.f32 %v11026_v55, %v698_v30  ;;  %v8273_v4 = vpop.f32.mrb[88].mxu0  ;;  %v2532_v32 = vmax.f32 %v2500_v11, 0.0  ;;  %9442 = vmatprep.subr.bf16.mxu1 %v9738_v8 }
 0x556   :  { %v2570_v44 = vmul.f32 %v10971_v24, %v2531_v48  ;;  %v8274_v25 = vpop.f32.mrb[89].mxu0  ;;  %v9742_v48 = vld [vmem:[%s10986_s11 + $0x48] sm:$0xff]  }
 0x557   :  { %v2534_v5 = vmax.f32 %v2502_v52, 0.0  ;;  %v8275_v61 = vadd.f32 %v8274_v25, %v8273_v4  ;;  %2910 = vmatmul.mubr.bf16.gmra.mrb[136].mxu1 %v2639_v23  ;;  %v8276_v7 = vpop.f32.mrb[90].mxu0  ;;  %v2572_v6 = vmul.f32 %v10971_v24, %v2533_v59  ;;  %v9368_v9 = vpop.f32.mrb[108].mxu1  ;;  %v2571_v47 = vmul.f32 %v10971_v24, %v2532_v32 }
 0x558   :  { %v2609_v39 = vadd.f32 %v10976_v18, %v2570_v44  ;;  %v8277_v0 = vpop.f32.mrb[91].mxu0  ;;  %v2290_v60 = vpop.f32.mrb[109].mxu1  ;;  %9443 = vmatpush3.bf16.msra.mxu1 %v9738_v8  ;;  %v9743_v44 = vld [vmem:[%s10986_s11 + $0x8] sm:$0xff]  }
 0x559   :  { %v2138_v13 = vadd.f32 %v8275_v61, %v10919_v34  ;;  %v8278_v2 = vadd.f32 %v8277_v0, %v8276_v7  ;;  %v2611_v23 = vadd.f32 %v10976_v18, %v2572_v6  ;;  %v2573_v37 = vmul.f32 %v10971_v24, %v2534_v5  ;;  %v9369_v31 = vpop.f32.mrb[110].mxu1  ;;  %9444 = vmatprep.subr.bf16.mxu1 %v9739_v33  ;;  %v9745_v61 = vld [vmem:[%s10986_s11 + $0x50] sm:$0xff]  }
 0x55a   :  { %v2641_v56 = vpack.c.bf16 %v2609_v39, %v10995_v36  ;;  %v2291_v30 = vadd.f32 %v2290_v60, %v2130_v35  ;;  %v2610_v28 = vadd.f32 %v10976_v18, %v2571_v47  ;;  %v2293_v52 = vpop.f32.mrb[111].mxu1 }
 0x55b   :  { %v2299_v11 = vadd.f32 %v9368_v9, %v2138_v13  ;;  %v2141_v59 = vadd.f32 %v8278_v2, %v10919_v34  ;;  %v11047_v4 = vadd.f32 %v10976_v18, %v2573_v37  ;;  %v2294_v32 = vadd.f32 %v2293_v52, %v2133_v3  ;;  %v9746_v37 = vld [vmem:[%s10986_s11 + $0x10] sm:$0xff]   ;;  %v9747_v3 = vld [vmem:[%s10986_s11 + $0x58] sm:$0xff]  }
 0x55c   :  { %v2393_v36 = vmax.f32 %v2291_v30, 0.0  ;;  %9407 = vmatmul.mubr.bf16.vlgmr.msra.gmra.mrb[132].mxu0 %v2641_v56  ;;  %v2642_v25 = vpack.c.bf16 %v2610_v28, %v2609_v39  ;;  %v2643_v5 = vpack.c.bf16 %v2611_v23, %v2610_v28  ;;  %v703_v30 = vadd.f32 %v10944_v26, %v10383_v46  ;;  %9445 = vmatpush3.bf16.msra.mxu1 %v9739_v33 }
 0x55d   :  { %v2395_v7 = vmax.f32 %v2299_v11, 0.0  ;;  %v2302_v8 = vadd.f32 %v9369_v31, %v2141_v59  ;;  %v8279_v6 = vpop.f32.mrb[92].mxu0  ;;  %v2644_v9 = vpack.c.bf16 %v11047_v4, %v2611_v23  ;;  %8500 = vmatpush3.bf16.msra.mxu0 %v9741_v16  ;;  %v2394_v35 = vmax.f32 %v2294_v32, 0.0  ;;  %9446 = vmatprep.subr.bf16.mxu1 %v9744_v38 }
 0x55e   :  { %v2432_v0 = vmul.f32 %v10925_v15, %v2393_v36  ;;  %2917 = vmatprep.mubr.bf16.mxu1 %v2642_v25  ;;  %9410 = vmatprep.mubr.bf16.mxu0 %v2643_v5  ;;  %v8280_v47 = vpop.f32.mrb[93].mxu0  ;;  %v713_v28 = vadd.f32 %v10944_v26, %v10405_v10  ;;  %v708_v46 = vadd.f32 %v10944_v26, %v10379_v42 }
 0x55f   :  { %v2434_v13 = vmul.f32 %v10925_v15, %v2395_v7  ;;  %v2396_v39 = vmax.f32 %v2302_v8, 0.0  ;;  %v8281_v2 = vadd.f32 %v8280_v47, %v8279_v6  ;;  %2918 = vmatmul.mubr.bf16.gmra.mrb[140].mxu1 %v2641_v56  ;;  %v8282_v60 = vpop.f32.mrb[94].mxu0  ;;  %8501 = vmatprep.subr.bf16.mxu0 %v9742_v48  ;;  %v2433_v16 = vmul.f32 %v10925_v15, %v2394_v35  ;;  %v9748_v8 = vld [vmem:[%s10986_s11 + $0x18] sm:$0xff]  }
 0x560   :  { %v11059_v23 = vadd.f32 %v10934_v45, %v2432_v0  ;;  %2925 = vmatprep.mubr.bf16.mxu1 %v2644_v9  ;;  %v8283_v31 = vpop.f32.mrb[95].mxu0  ;;  %v718_v10 = vadd.f32 %v10944_v26, %v10395_v1  ;;  %9447 = vmatpush3.bf16.msra.mxu1 %v9744_v38 }
 0x561   :  { %v11066_v56 = vadd.f32 %v10934_v45, %v2434_v13  ;;  %v2435_v48 = vmul.f32 %v10925_v15, %v2396_v39  ;;  %v8284_v11 = vadd.f32 %v8283_v31, %v8282_v60  ;;  %8502 = vmatpush3.bf16.msra.mxu0 %v9743_v44  ;;  %v11073_v52 = vadd.f32 %v10934_v45, %v2433_v16 }
 0x562   :  { %v2503_v59 = vadd.f32 %v11059_v23, %v703_v30  ;;  %8503 = vmatprep.subr.bf16.mxu0 %v9745_v61  ;;  %v2146_v38 = vadd.f32 %v8281_v2, %v10919_v34 }
 0x563   :  { %v2505_v33 = vadd.f32 %v11066_v56, %v713_v28  ;;  %v11079_v36 = vadd.f32 %v10934_v45, %v2435_v48  ;;  %v2504_v32 = vadd.f32 %v11073_v52, %v708_v46  ;;  %v2149_v46 = vadd.f32 %v8284_v11, %v10919_v34 }
 0x564   :  { %v2535_v44 = vmax.f32 %v2503_v59, 0.0 }
 0x565   :  { %v2537_v42 = vmax.f32 %v2505_v33, 0.0  ;;  %v2506_v25 = vadd.f32 %v11079_v36, %v718_v10  ;;  %v8285_v7 = vpop.f32.mrb[96].mxu0  ;;  %8504 = vmatpush3.bf16.msra.mxu0 %v9746_v37  ;;  %v2536_v6 = vmax.f32 %v2504_v32, 0.0 }
 0x566   :  { %v8286_v61 = vpop.f32.mrb[97].mxu0  ;;  %v2574_v9 = vmul.f32 %v10971_v24, %v2535_v44  ;;  %8505 = vmatprep.subr.bf16.mxu0 %v9747_v3 }
 0x567   :  { %v2538_v1 = vmax.f32 %v2506_v25, 0.0  ;;  %v8287_v0 = vadd.f32 %v8286_v61, %v8285_v7  ;;  %2926 = vmatmul.mubr.bf16.gmra.mrb[144].mxu1 %v2643_v5  ;;  %v8288_v35 = vpop.f32.mrb[98].mxu0  ;;  %v2576_v47 = vmul.f32 %v10971_v24, %v2537_v42  ;;  %v9372_v13 = vpop.f32.mrb[112].mxu1  ;;  %v2575_v37 = vmul.f32 %v10971_v24, %v2536_v6 }
 0x568   :  { %v8289_v39 = vpop.f32.mrb[99].mxu0  ;;  %v2613_v60 = vadd.f32 %v10976_v18, %v2574_v9  ;;  %v2306_v31 = vpop.f32.mrb[113].mxu1 }
 0x569   :  { %v2154_v30 = vadd.f32 %v8287_v0, %v10919_v34  ;;  %v8290_v16 = vadd.f32 %v8289_v39, %v8288_v35  ;;  %v2615_v3 = vadd.f32 %v10976_v18, %v2576_v47  ;;  %v2577_v28 = vmul.f32 %v10971_v24, %v2538_v1  ;;  %8506 = vmatpush3.bf16.msra.mxu0 %v9748_v8  ;;  %v9373_v48 = vpop.f32.mrb[114].mxu1 }
 0x56a   :  { %v2307_v5 = vadd.f32 %v2306_v31, %v2146_v38  ;;  %v2645_v59 = vpack.c.bf16 %v2613_v60, %v11047_v4  ;;  %v2614_v2 = vadd.f32 %v10976_v18, %v2575_v37  ;;  %v2309_v44 = vpop.f32.mrb[115].mxu1  ;;  %v723_v38 = vadd.f32 %v10944_v26, %v10432_v29 }
 0x56b   :  { %v2315_v10 = vadd.f32 %v9372_v13, %v2154_v30  ;;  %v2157_v33 = vadd.f32 %v8290_v16, %v10919_v34  ;;  %v2616_v32 = vadd.f32 %v10976_v18, %v2577_v28  ;;  %v2310_v25 = vadd.f32 %v2309_v44, %v2149_v46 }
 0x56c   :  { %v2397_v42 = vmax.f32 %v2307_v5, 0.0  ;;  %9411 = vmatmul.mubr.bf16.gmra.mrb[136].mxu0 %v2645_v59  ;;  %v2646_v7 = vpack.c.bf16 %v2614_v2, %v2613_v60  ;;  %v2647_v6 = vpack.c.bf16 %v2615_v3, %v2614_v2  ;;  %v733_v16 = vadd.f32 %v10944_v26, %v10457_v50 }
 0x56d   :  { %v2399_v8 = vmax.f32 %v2315_v10, 0.0  ;;  %v2318_v61 = vadd.f32 %v9373_v48, %v2157_v33  ;;  %v8291_v9 = vpop.f32.mrb[100].mxu0  ;;  %v2648_v1 = vpack.c.bf16 %v2616_v32, %v2615_v3  ;;  %v2398_v4 = vmax.f32 %v2310_v25, 0.0 }
 0x56e   :  { %v2436_v11 = vmul.f32 %v10925_v15, %v2397_v42  ;;  %2933 = vmatprep.mubr.bf16.mxu1 %v2646_v7  ;;  %9414 = vmatprep.mubr.bf16.mxu0 %v2647_v6  ;;  %v8292_v0 = vpop.f32.mrb[101].mxu0  ;;  %v728_v5 = vadd.f32 %v10944_v26, %v10423_v22  ;;  %v738_v46 = vadd.f32 %v10944_v26, %v10448_v43 }
 0x56f   :  { %v2438_v35 = vmul.f32 %v10925_v15, %v2399_v8  ;;  %v2400_v47 = vmax.f32 %v2318_v61, 0.0  ;;  %v8293_v13 = vadd.f32 %v8292_v0, %v8291_v9  ;;  %2934 = vmatmul.mubr.bf16.gmra.mrb[148].mxu1 %v2645_v59  ;;  %v8294_v39 = vpop.f32.mrb[102].mxu0  ;;  %v2437_v37 = vmul.f32 %v10925_v15, %v2398_v4 }
 0x570   :  { %v11102_v60 = vadd.f32 %v10934_v45, %v2436_v11  ;;  %2941 = vmatprep.mubr.bf16.mxu1 %v2648_v1  ;;  %v8295_v30 = vpop.f32.mrb[103].mxu0 }
 0x571   :  { %v11108_v31 = vadd.f32 %v10934_v45, %v2438_v35  ;;  %v2439_v3 = vmul.f32 %v10925_v15, %v2400_v47  ;;  %v8296_v28 = vadd.f32 %v8295_v30, %v8294_v39  ;;  %v11115_v48 = vadd.f32 %v10934_v45, %v2437_v37 }
 0x572   :  { %v2507_v29 = vadd.f32 %v11102_v60, %v723_v38  ;;  %v2162_v4 = vadd.f32 %v8293_v13, %v10919_v34 }
 0x573   :  { %v2509_v59 = vadd.f32 %v11108_v31, %v733_v16  ;;  %v11121_v50 = vadd.f32 %v10934_v45, %v2439_v3  ;;  %v2508_v10 = vadd.f32 %v11115_v48, %v728_v5  ;;  %v2165_v3 = vadd.f32 %v8296_v28, %v10919_v34 }
 0x574   :  { %v2539_v2 = vmax.f32 %v2507_v29, 0.0 }
 0x575   :  { %v2541_v33 = vmax.f32 %v2509_v59, 0.0  ;;  %v2510_v44 = vadd.f32 %v11121_v50, %v738_v46  ;;  %v8297_v22 = vpop.f32.mrb[104].mxu0  ;;  %v2540_v42 = vmax.f32 %v2508_v10, 0.0 }
 0x576   :  { %v8298_v25 = vpop.f32.mrb[105].mxu0  ;;  %v2578_v7 = vmul.f32 %v10971_v24, %v2539_v2 }
 0x577   :  { %v2542_v8 = vmax.f32 %v2510_v44, 0.0  ;;  %v8299_v61 = vadd.f32 %v8298_v25, %v8297_v22  ;;  %2942 = vmatmul.mubr.bf16.gmra.mrb[152].mxu1 %v2647_v6  ;;  %v8300_v43 = vpop.f32.mrb[106].mxu0  ;;  %v2580_v9 = vmul.f32 %v10971_v24, %v2541_v33  ;;  %v9376_v1 = vpop.f32.mrb[116].mxu1  ;;  %v2579_v35 = vmul.f32 %v10971_v24, %v2540_v42 }
 0x578   :  { %v8301_v11 = vpop.f32.mrb[107].mxu0  ;;  %v2617_v0 = vadd.f32 %v10976_v18, %v2578_v7  ;;  %v2322_v38 = vpop.f32.mrb[117].mxu1 }
 0x579   :  { %v2170_v47 = vadd.f32 %v8299_v61, %v10919_v34  ;;  %v8302_v39 = vadd.f32 %v8301_v11, %v8300_v43  ;;  %v2619_v37 = vadd.f32 %v10976_v18, %v2580_v9  ;;  %v2581_v30 = vmul.f32 %v10971_v24, %v2542_v8  ;;  %v9377_v16 = vpop.f32.mrb[118].mxu1 }
 0x57a   :  { %v2323_v6 = vadd.f32 %v2322_v38, %v2162_v4  ;;  %v2649_v5 = vpack.c.bf16 %v2617_v0, %v2616_v32  ;;  %v2618_v29 = vadd.f32 %v10976_v18, %v2579_v35  ;;  %v2325_v59 = vpop.f32.mrb[119].mxu1  ;;  %v743_v4 = vadd.f32 %v10944_v26, %v10486_v19 }
 0x57b   :  { %v2331_v13 = vadd.f32 %v9376_v1, %v2170_v47  ;;  %v2173_v46 = vadd.f32 %v8302_v39, %v10919_v34  ;;  %v2620_v2 = vadd.f32 %v10976_v18, %v2581_v30  ;;  %v2326_v33 = vadd.f32 %v2325_v59, %v2165_v3 }
 0x57c   :  { %v2401_v10 = vmax.f32 %v2323_v6, 0.0  ;;  %9415 = vmatmul.mubr.bf16.gmra.mrb[140].mxu0 %v2649_v5  ;;  %v2650_v44 = vpack.c.bf16 %v2618_v29, %v2617_v0  ;;  %v2651_v22 = vpack.c.bf16 %v2619_v37, %v2618_v29 }
 0x57d   :  { %v2403_v42 = vmax.f32 %v2331_v13, 0.0  ;;  %v2334_v25 = vadd.f32 %v9377_v16, %v2173_v46  ;;  %v8303_v7 = vpop.f32.mrb[108].mxu0  ;;  %v2652_v8 = vpack.c.bf16 %v2620_v2, %v2619_v37  ;;  %v2402_v32 = vmax.f32 %v2326_v33, 0.0 }
 0x57e   :  { %v2440_v28 = vmul.f32 %v10925_v15, %v2401_v10  ;;  %2949 = vmatprep.mubr.bf16.mxu1 %v2650_v44  ;;  %9418 = vmatprep.mubr.bf16.mxu0 %v2651_v22  ;;  %v8304_v61 = vpop.f32.mrb[109].mxu0 }
 0x57f   :  { %v2442_v43 = vmul.f32 %v10925_v15, %v2403_v42  ;;  %v2404_v9 = vmax.f32 %v2334_v25, 0.0  ;;  %v8305_v1 = vadd.f32 %v8304_v61, %v8303_v7  ;;  %2950 = vmatmul.mubr.bf16.gmra.mrb[156].mxu1 %v2649_v5  ;;  %v8306_v11 = vpop.f32.mrb[110].mxu0  ;;  %v2441_v35 = vmul.f32 %v10925_v15, %v2402_v32 }
 0x580   :  { %v11142_v0 = vadd.f32 %v10934_v45, %v2440_v28  ;;  %2957 = vmatprep.mubr.bf16.mxu1 %v2652_v8  ;;  %v8307_v47 = vpop.f32.mrb[111].mxu0 }
 0x581   :  { %v11146_v39 = vadd.f32 %v10934_v45, %v2442_v43  ;;  %v2443_v38 = vmul.f32 %v10925_v15, %v2404_v9  ;;  %v8308_v37 = vadd.f32 %v8307_v47, %v8306_v11  ;;  %v11151_v6 = vadd.f32 %v10934_v45, %v2441_v35 }
 0x582   :  { %v2511_v30 = vadd.f32 %v11142_v0, %v743_v4  ;;  %v2178_v8 = vadd.f32 %v8305_v1, %v10919_v34 }
 0x583   :  { %v2513_v19 = vadd.f32 %v11146_v39, %v10510_v54  ;;  %v11156_v26 = vadd.f32 %v10934_v45, %v2443_v38  ;;  %v2512_v3 = vadd.f32 %v11151_v6, %v10483_v17  ;;  %v2181_v4 = vadd.f32 %v8308_v37, %v10919_v34 }
 0x584   :  { %v2543_v16 = vmax.f32 %v2511_v30, 0.0 }
 0x585   :  { %v2545_v5 = vmax.f32 %v2513_v19, 0.0  ;;  %v2514_v29 = vadd.f32 %v11156_v26, %v10505_v41  ;;  %v8309_v13 = vpop.f32.mrb[112].mxu0  ;;  %v2544_v46 = vmax.f32 %v2512_v3, 0.0 }
 0x586   :  { %v8310_v59 = vpop.f32.mrb[113].mxu0  ;;  %v2582_v10 = vmul.f32 %v10971_v24, %v2543_v16 }
 0x587   :  { %v2546_v33 = vmax.f32 %v2514_v29, 0.0  ;;  %v8311_v44 = vadd.f32 %v8310_v59, %v8309_v13  ;;  %2958 = vmatmul.mubr.bf16.gmra.mrb[160].mxu1 %v2651_v22  ;;  %v8312_v54 = vpop.f32.mrb[114].mxu0  ;;  %v2584_v42 = vmul.f32 %v10971_v24, %v2545_v5  ;;  %v9380_v25 = vpop.f32.mrb[120].mxu1  ;;  %v2583_v28 = vmul.f32 %v10971_v24, %v2544_v46 }
 0x588   :  { %v8313_v7 = vpop.f32.mrb[115].mxu0  ;;  %v2621_v17 = vadd.f32 %v10976_v18, %v2582_v10  ;;  %v2338_v61 = vpop.f32.mrb[121].mxu1 }
 0x589   :  { %v2186_v41 = vadd.f32 %v8311_v44, %v10919_v34  ;;  %v8314_v32 = vadd.f32 %v8313_v7, %v8312_v54  ;;  %v2623_v43 = vadd.f32 %v10976_v18, %v2584_v42  ;;  %v2585_v9 = vmul.f32 %v10971_v24, %v2546_v33  ;;  %v9381_v11 = vpop.f32.mrb[122].mxu1 }
 0x58a   :  { %v2339_v22 = vadd.f32 %v2338_v61, %v2178_v8  ;;  %v2653_v35 = vpack.c.bf16 %v2621_v17, %v2620_v2  ;;  %v2622_v47 = vadd.f32 %v10976_v18, %v2583_v28  ;;  %v2341_v30 = vpop.f32.mrb[123].mxu1 }
 0x58b   :  { %v2347_v1 = vadd.f32 %v9380_v25, %v2186_v41  ;;  %v2189_v38 = vadd.f32 %v8314_v32, %v10919_v34  ;;  %v2624_v19 = vadd.f32 %v10976_v18, %v2585_v9  ;;  %v2342_v3 = vadd.f32 %v2341_v30, %v2181_v4 }
 0x58c   :  { %v2405_v16 = vmax.f32 %v2339_v22, 0.0  ;;  %9419 = vmatmul.mubr.bf16.gmra.mrb[144].mxu0 %v2653_v35  ;;  %v2654_v5 = vpack.c.bf16 %v2622_v47, %v2621_v17  ;;  %v2655_v29 = vpack.c.bf16 %v2623_v43, %v2622_v47 }
 0x58d   :  { %v2407_v13 = vmax.f32 %v2347_v1, 0.0  ;;  %v2350_v46 = vadd.f32 %v9381_v11, %v2189_v38  ;;  %v8315_v59 = vpop.f32.mrb[116].mxu0  ;;  %v2656_v10 = vpack.c.bf16 %v2624_v19, %v2623_v43  ;;  %v2406_v2 = vmax.f32 %v2342_v3, 0.0 }
 0x58e   :  { %v2444_v37 = vmul.f32 %v10925_v15, %v2405_v16  ;;  %2965 = vmatprep.mubr.bf16.mxu1 %v2654_v5  ;;  %9422 = vmatprep.mubr.bf16.mxu0 %v2655_v29  ;;  %v8316_v33 = vpop.f32.mrb[117].mxu0 }
 0x58f   :  { %v2446_v44 = vmul.f32 %v10925_v15, %v2407_v13  ;;  %v2408_v54 = vmax.f32 %v2350_v46, 0.0  ;;  %v8317_v42 = vadd.f32 %v8316_v33, %v8315_v59  ;;  %2966 = vmatmul.mubr.bf16.gmra.mrb[164].mxu1 %v2653_v35  ;;  %v8318_v25 = vpop.f32.mrb[118].mxu0  ;;  %v2445_v8 = vmul.f32 %v10925_v15, %v2406_v2 }
 0x590   :  { %v11177_v7 = vadd.f32 %v10934_v45, %v2444_v37  ;;  %2973 = vmatprep.mubr.bf16.mxu1 %v2656_v10  ;;  %v8319_v17 = vpop.f32.mrb[119].mxu0 }
 0x591   :  { %v11181_v28 = vadd.f32 %v10934_v45, %v2446_v44  ;;  %v2447_v41 = vmul.f32 %v10925_v15, %v2408_v54  ;;  %v8320_v32 = vadd.f32 %v8319_v17, %v8318_v25  ;;  %v11187_v43 = vadd.f32 %v10934_v45, %v2445_v8 }
 0x592   :  { %v2515_v61 = vadd.f32 %v11177_v7, %v10537_v21  ;;  %v2194_v59 = vadd.f32 %v8317_v42, %v10919_v34 }
 0x593   :  { %v2517_v9 = vadd.f32 %v11181_v28, %v10560_v12  ;;  %v11192_v22 = vadd.f32 %v10934_v45, %v2447_v41  ;;  %v2516_v4 = vadd.f32 %v11187_v43, %v10532_v14  ;;  %v2197_v25 = vadd.f32 %v8320_v32, %v10919_v34 }
 0x594   :  { %v2547_v11 = vmax.f32 %v2515_v61, 0.0 }
 0x595   :  { %v2549_v35 = vmax.f32 %v2517_v9, 0.0  ;;  %v2518_v47 = vadd.f32 %v11192_v22, %v10555_v49  ;;  %v8321_v1 = vpop.f32.mrb[120].mxu0  ;;  %v2548_v38 = vmax.f32 %v2516_v4, 0.0 }
 0x596   :  { %v8322_v21 = vpop.f32.mrb[121].mxu0  ;;  %v2586_v30 = vmul.f32 %v10971_v24, %v2547_v11 }
 0x597   :  { %v2550_v16 = vmax.f32 %v2518_v47, 0.0  ;;  %v8323_v3 = vadd.f32 %v8322_v21, %v8321_v1  ;;  %2974 = vmatmul.mubr.bf16.gmra.mrb[168].mxu1 %v2655_v29  ;;  %v8324_v12 = vpop.f32.mrb[122].mxu0  ;;  %v2588_v5 = vmul.f32 %v10971_v24, %v2549_v35  ;;  %v9384_v13 = vpop.f32.mrb[124].mxu1  ;;  %v2587_v10 = vmul.f32 %v10971_v24, %v2548_v38 }
 0x598   :  { %v8325_v46 = vpop.f32.mrb[123].mxu0  ;;  %v2625_v14 = vadd.f32 %v10976_v18, %v2586_v30  ;;  %v2354_v2 = vpop.f32.mrb[125].mxu1 }
 0x599   :  { %v2202_v49 = vadd.f32 %v8323_v3, %v10919_v34  ;;  %v8326_v37 = vadd.f32 %v8325_v46, %v8324_v12  ;;  %v2627_v33 = vadd.f32 %v10976_v18, %v2588_v5  ;;  %v2589_v44 = vmul.f32 %v10971_v24, %v2550_v16  ;;  %v9385_v54 = vpop.f32.mrb[126].mxu1 }
 0x59a   :  { %v2355_v29 = vadd.f32 %v2354_v2, %v2194_v59  ;;  %v2657_v8 = vpack.c.bf16 %v2625_v14, %v2624_v19  ;;  %v2626_v17 = vadd.f32 %v10976_v18, %v2587_v10  ;;  %v2357_v61 = vpop.f32.mrb[127].mxu1 }
 0x59b   :  { %v2363_v42 = vadd.f32 %v9384_v13, %v2202_v49  ;;  %v2205_v41 = vadd.f32 %v8326_v37, %v10919_v34  ;;  %v11210_v9 = vadd.f32 %v10976_v18, %v2589_v44  ;;  %v2358_v4 = vadd.f32 %v2357_v61, %v2197_v25  ;;  %v11990_v25 = vld [vmem:[#allocation4_spill] sm:$0xff] }
 0x59c   :  { %v2409_v11 = vmax.f32 %v2355_v29, 0.0  ;;  %9423 = vmatmul.mubr.bf16.gmra.mrb[148].mxu0 %v2657_v8  ;;  %v2658_v35 = vpack.c.bf16 %v2626_v17, %v2625_v14  ;;  %v2659_v47 = vpack.c.bf16 %v2627_v33, %v2626_v17 }
 0x59d   :  { %v2411_v1 = vmax.f32 %v2363_v42, 0.0  ;;  %v2366_v38 = vadd.f32 %v9385_v54, %v2205_v41  ;;  %v8327_v21 = vpop.f32.mrb[124].mxu0  ;;  %v2660_v32 = vpack.c.bf16 %v11210_v9, %v2627_v33  ;;  %v2410_v30 = vmax.f32 %v2358_v4, 0.0  ;;  %v9749_v54 = vld [vmem:[%s10986_s11 + $0xa8] sm:$0xff]   ;;  %v10041_v41 = vld [vmem:[%s10906_s21] ss:$0 sm:$0xff]  ;;  %s7523_s21 = sld [smem:[%s11973_s0 + %s10085_s18]]  }
 0x59e   :  { %v2448_v19 = vmul.f32 %v10925_v15, %v2409_v11  ;;  %2981 = vmatprep.mubr.bf16.mxu1 %v2658_v35  ;;  %9426 = vmatprep.mubr.bf16.mxu0 %v2659_v47  ;;  %v8328_v16 = vpop.f32.mrb[125].mxu0 }
 0x59f   :  { %v2450_v3 = vmul.f32 %v10925_v15, %v2411_v1  ;;  %v2412_v12 = vmax.f32 %v2366_v38, 0.0  ;;  %v8329_v5 = vadd.f32 %v8328_v16, %v8327_v21  ;;  %2982 = vmatmul.mubr.bf16.gmra.mrb[172].mxu1 %v2657_v8  ;;  %v8330_v13 = vpop.f32.mrb[126].mxu0  ;;  %v2449_v59 = vmul.f32 %v10925_v15, %v2410_v30  ;;  %9448 = vmatprep.subr.bf16.mxu1 %v9749_v54  ;;  %v11992_v1 = vld [vmem:[#allocation3_spill] sm:$0xff] }
 0x5a0   :  { %v11216_v46 = vadd.f32 %v10934_v45, %v2448_v19  ;;  %2989 = vmatprep.mubr.bf16.mxu1 %v2660_v32  ;;  %v8331_v14 = vpop.f32.mrb[127].mxu0  ;;  %9449 = vmatpush3.bf16.msra.mxu1 %v9749_v54 }
 0x5a1   :  { %v11220_v10 = vadd.f32 %v10934_v45, %v2450_v3  ;;  %v2451_v49 = vmul.f32 %v10925_v15, %v2412_v12  ;;  %v8332_v37 = vadd.f32 %v8331_v14, %v8330_v13  ;;  %v2210_v2 = vadd.f32 %v8329_v5, %v10919_v34  ;;  %v9388_v29 = vpop.f32.mrb[128].mxu1  ;;  %v11991_v34 = vld [vmem:[#allocation2_spill] sm:$0xff] }
 0x5a2   :  { %v2519_v33 = vadd.f32 %v11216_v46, %v10587_v58  ;;  %v11227_v44 = vadd.f32 %v10934_v45, %v2449_v59  ;;  %v2370_v42 = vpop.f32.mrb[129].mxu1  ;;  %v9750_v12 = vld [vmem:[%s10986_s11 + $0x60] sm:$0xff]  }
 0x5a3   :  { %v2521_v8 = vadd.f32 %v11220_v10, %v11990_v25  ;;  %v11233_v17 = vadd.f32 %v10934_v45, %v2451_v49  ;;  %v2213_v15 = vadd.f32 %v10041_v41, %v8332_v37  ;;  %v2371_v11 = vadd.f32 %v2370_v42, %v2210_v2  ;;  %v9389_v4 = vpop.f32.mrb[130].mxu1  ;;  %v9751_v5 = vld [vmem:[%s10986_s11 + $0x20] sm:$0xff]   ;;  %8507 = vmatprep.subr.bf16.mxu0 %v9750_v12 }
 0x5a4   :  { %v2551_v61 = vmax.f32 %v2519_v33, 0.0  ;;  %v2520_v58 = vadd.f32 %v11227_v44, %v11991_v34  ;;  %v2373_v21 = vpop.f32.mrb[131].mxu1  ;;  %v10042_v37 = vld [vmem:[%s10911_s25] ss:$0 sm:$0xff]  ;;  %8508 = vmatpush3.bf16.msra.mxu0 %v9751_v5  ;;  %s7524_s25 = sld [smem:[%s11973_s0 + %s10086_s22]]  }
 0x5a5   :  { %v2553_v35 = vmax.f32 %v2521_v8, 0.0  ;;  %v2522_v38 = vadd.f32 %v11233_v17, %v11992_v1  ;;  %v8333_v45 = vpop.f32.mrb[128].mxu0  ;;  %v2413_v19 = vmax.f32 %v2371_v11, 0.0  ;;  %v2374_v30 = vadd.f32 %v2373_v21, %v2213_v15 }
 0x5a6   :  { %v2552_v32 = vmax.f32 %v2520_v58, 0.0  ;;  %v8334_v16 = vpop.f32.mrb[129].mxu0  ;;  %v2590_v3 = vmul.f32 %v10971_v24, %v2551_v61 }
 0x5a7   :  { %v2554_v13 = vmax.f32 %v2522_v38, 0.0  ;;  %v8335_v59 = vadd.f32 %v8334_v16, %v8333_v45  ;;  %2990 = vmatmul.mubr.bf16.gmra.mrb[176].mxu1 %v2659_v47  ;;  %v8336_v14 = vpop.f32.mrb[130].mxu0  ;;  %v2592_v49 = vmul.f32 %v10971_v24, %v2553_v35  ;;  %v2452_v2 = vmul.f32 %v10042_v37, %v2413_v19  ;;  %v10043_v47 = vld [vmem:[%s10916_s29] ss:$0 sm:$0xff]  ;;  %s7526_s29 = sld [smem:[%s11973_s0 + %s10087_s26]]  }
 0x5a8   :  { %v2414_v33 = vmax.f32 %v2374_v30, 0.0  ;;  %v8337_v25 = vpop.f32.mrb[131].mxu0  ;;  %v2629_v54 = vadd.f32 %v10976_v18, %v2590_v3  ;;  %v2591_v8 = vmul.f32 %v10971_v24, %v2552_v32  ;;  %v11993_v32 = vld [vmem:[#allocation6_spill] sm:$0xff] }
 0x5a9   :  { %v2218_v42 = vadd.f32 %v10041_v41, %v8335_v59  ;;  %v8338_v15 = vadd.f32 %v8337_v25, %v8336_v14  ;;  %v2631_v61 = vadd.f32 %v10976_v18, %v2592_v49  ;;  %v2593_v34 = vmul.f32 %v10971_v24, %v2554_v13  ;;  %v11994_v13 = vld [vmem:[#allocation5_spill] sm:$0xff]  ;;  %v10044_v49 = vld [vmem:[%s10931_s4] ss:$0 sm:$0xff]  ;;  %s7525_s4 = sld [smem:[%s11973_s0 + %s10088_s30]]  }
 0x5aa   :  { %v11250_v58 = vadd.f32 %v10043_v47, %v2452_v2  ;;  %v2453_v11 = vmul.f32 %v10042_v37, %v2414_v33  ;;  %v2661_v35 = vpack.c.bf16 %v2629_v54, %v11210_v9  ;;  %v2630_v1 = vadd.f32 %v10976_v18, %v2591_v8  ;;  %v10045_v25 = vld [vmem:[%s10939_s8] ss:$0 sm:$0xff]  ;;  %s7527_s8 = sld [smem:[%s11973_s0 + %s10089_s5]]  }
 0x5ab   :  { %v2379_v38 = vadd.f32 %v9388_v29, %v2218_v42  ;;  %v2221_v21 = vadd.f32 %v10041_v41, %v8338_v15  ;;  %v2632_v45 = vadd.f32 %v10976_v18, %v2593_v34  ;;  %v9752_v18 = vld [vmem:[%s10986_s11 + $0x68] sm:$0xff]   ;;  %v11995_v15 = vld [vmem:[#allocation8_spill] sm:$0xff] }
 0x5ac   :  { %v2523_v19 = vadd.f32 %v11250_v58, %v11993_v32  ;;  %v11257_v30 = vadd.f32 %v10043_v47, %v2453_v11  ;;  %9427 = vmatmul.mubr.bf16.gmra.mrb[152].mxu0 %v2661_v35  ;;  %v2662_v24 = vpack.c.bf16 %v2630_v1, %v2629_v54  ;;  %v2663_v16 = vpack.c.bf16 %v2631_v61, %v2630_v1  ;;  %v11996_v1 = vld [vmem:[#allocation7_spill] sm:$0xff] }
 0x5ad   :  { %v2415_v3 = vmax.f32 %v2379_v38, 0.0  ;;  %v2382_v12 = vadd.f32 %v9389_v4, %v2221_v21  ;;  %v2664_v5 = vpack.c.bf16 %v2632_v45, %v2631_v61  ;;  %8509 = vmatprep.subr.bf16.mxu0 %v9752_v18  ;;  %v9753_v21 = vld [vmem:[%s10986_s11 + $0x28] sm:$0xff]  }
 0x5ae   :  { %v2555_v9 = vmax.f32 %v2523_v19, 0.0  ;;  %v2524_v29 = vadd.f32 %v11257_v30, %v11994_v13  ;;  %2997 = vmatprep.mubr.bf16.mxu1 %v2662_v24  ;;  %9430 = vmatprep.mubr.bf16.mxu0 %v2663_v16 }
 0x5af   :  { %v2454_v41 = vmul.f32 %v10042_v37, %v2415_v3  ;;  %v2416_v59 = vmax.f32 %v2382_v12, 0.0  ;;  %2998 = vmatmul.mubr.bf16.gmra.mrb[180].mxu1 %v2661_v35  ;;  %8510 = vmatpush3.bf16.msra.mxu0 %v9753_v21  ;;  %v9754_v3 = vld [vmem:[%s10986_s11 + $0xb0] sm:$0xff]  }
 0x5b0   :  { %v2556_v14 = vmax.f32 %v2524_v29, 0.0  ;;  %3005 = vmatprep.mubr.bf16.mxu1 %v2664_v5  ;;  %v2594_v2 = vmul.f32 %v10044_v49, %v2555_v9  ;;  %v9756_v12 = vld [vmem:[%s10986_s11 + $0x30] sm:$0xff]   ;;  %v9757_v5 = vld [vmem:[%s10986_s11 + $0x78] sm:$0xff]   ;;  %9450 = vmatprep.subr.bf16.mxu1 %v9754_v3 }
 0x5b1   :  { %v11263_v33 = vadd.f32 %v10043_v47, %v2454_v41  ;;  %v2455_v4 = vmul.f32 %v10042_v37, %v2416_v59  ;;  %9451 = vmatpush3.bf16.msra.mxu1 %v9754_v3  ;;  %v9758_v29 = vld [vmem:[%s10986_s11 + $0x38] sm:$0xff]  }
 0x5b2   :  { %v2633_v54 = vadd.f32 %v10045_v25, %v2594_v2  ;;  %v2595_v8 = vmul.f32 %v10044_v49, %v2556_v14  ;;  %v9759_v41 = vld [vmem:[%s10986_s11 + $0xb8] sm:$0xff]  }
 0x5b3   :  { %v11266_v42 = vadd.f32 %v10043_v47, %v2455_v4  ;;  %v2525_v61 = vadd.f32 %v11263_v33, %v11995_v15  ;;  %9452 = vmatprep.subr.bf16.mxu1 %v9759_v41 }
 0x5b4   :  { %v2665_v34 = vpack.c.bf16 %v2633_v54, %v2632_v45  ;;  %v2634_v11 = vadd.f32 %v10045_v25, %v2595_v8  ;;  %v9755_v45 = vld [vmem:[%s10986_s11 + $0x70] sm:$0xff]   ;;  %s7528_s11 = sld [smem:[%s11973_s0 + %s10090_s1]]  }
 0x5b5   :  { %v2557_v35 = vmax.f32 %v2525_v61, 0.0  ;;  %v2526_v38 = vadd.f32 %v11266_v42, %v11996_v1  ;;  %8511 = vmatprep.subr.bf16.mxu0 %v9755_v45  ;;  %9453 = vmatpush3.bf16.msra.mxu1 %v9759_v41 }
 0x5b6   :  { %9431 = vmatmul.mubr.bf16.gmra.mrb[156].mxu0 %v2665_v34  ;;  %v2666_v37 = vpack.c.bf16 %v2634_v11, %v2633_v54 }
 0x5b7   :  { %3006 = vmatmul.mubr.bf16.gmra.mrb[184].mxu1 %v2663_v16  ;;  %v2596_v32 = vmul.f32 %v10044_v49, %v2557_v35  ;;  %v2558_v47 = vmax.f32 %v2526_v38, 0.0  ;;  %8512 = vmatpush3.bf16.msra.mxu0 %v9756_v12 }
 0x5b8   :  { %3013 = vmatprep.mubr.bf16.mxu1 %v2666_v37  ;;  %8513 = vmatprep.subr.bf16.mxu0 %v9757_v5 }
 0x5b9   :  { %v2635_v19 = vadd.f32 %v10045_v25, %v2596_v32  ;;  %v2597_v24 = vmul.f32 %v10044_v49, %v2558_v47 }
 0x5bb   :  { %v2667_v9 = vpack.c.bf16 %v2635_v19, %v2634_v11  ;;  %v2636_v13 = vadd.f32 %v10045_v25, %v2597_v24  ;;  %8514 = vmatpush3.bf16.msra.mxu0 %v9758_v29 }
 0x5bd   :  { %9434 = vmatprep.mubr.bf16.mxu0 %v2667_v9  ;;  %v2668_v16 = vpack.c.bf16 %v2636_v13, %v2635_v19  ;;  %v2669_v18 = vpack.c.bf16 %v11987_v57, %v2636_v13  ;;  %v11294_v19 = vld [vmem:[%s7514_s19] ss:$0 sm:$0xff] }
 0x5bf   :  { %3014 = vmatmul.mubr.bf16.gmra.mrb[188].mxu1 %v2665_v34  ;;  %9435 = vmatmul.mubr.bf16.gmra.mrb[160].mxu0 %v2669_v18  ;;  %v11286_v34 = vld [vmem:[%s7513_s15] ss:$0 sm:$0xff] }
 0x5c0   :  { %3021 = vmatprep.mubr.bf16.mxu1 %v2668_v16 }
 0x5c7   :  { %3022 = vmatmul.mubr.bf16.gmra.mrb[192].mxu1 %v2667_v9 }
 0x622   :  { %v8379_v59 = vpop.f32.mrb[132].mxu1 }
 0x623   :  { %v8380_v14 = vpop.f32.mrb[133].mxu1 }
 0x624   :  { %v8381_v49 = vadd.f32 %v8380_v14, %v8379_v59  ;;  %v8382_v2 = vpop.f32.mrb[134].mxu1 }
 0x625   :  { %v8383_v4 = vpop.f32.mrb[135].mxu1 }
 0x626   :  { %v8384_v25 = vadd.f32 %v8383_v4, %v8382_v2  ;;  %v2904_v37 = vadd.f32 %v8381_v49, %v11286_v34  ;;  %v11298_v2 = vld [vmem:[%s7515_s23] ss:$0 sm:$0xff] }
 0x628   :  { %v2907_v45 = vadd.f32 %v8384_v25, %v11286_v34 }
 0x62a   :  { %v8385_v54 = vpop.f32.mrb[136].mxu1 }
 0x62b   :  { %v8386_v8 = vpop.f32.mrb[137].mxu1 }
 0x62c   :  { %v8387_v15 = vadd.f32 %v8386_v8, %v8385_v54  ;;  %v8388_v61 = vpop.f32.mrb[138].mxu1 }
 0x62d   :  { %v8389_v11 = vpop.f32.mrb[139].mxu1 }
 0x62e   :  { %v8390_v35 = vadd.f32 %v8389_v11, %v8388_v61  ;;  %v2912_v1 = vadd.f32 %v8387_v15, %v11286_v34 }
 0x62f   :  { %v9408_v38 = vpop.f32.mrb[132].mxu0 }
 0x630   :  { %v3073_v21 = vadd.f32 %v9408_v38, %v2912_v1  ;;  %v3064_v32 = vpop.f32.mrb[133].mxu0  ;;  %v2915_v47 = vadd.f32 %v8390_v35, %v11286_v34 }
 0x631   :  { %v3065_v24 = vadd.f32 %v3064_v32, %v2904_v37  ;;  %v9409_v3 = vpop.f32.mrb[134].mxu0 }
 0x632   :  { %v3193_v12 = vmax.f32 %v3073_v21, 0.0  ;;  %v3076_v5 = vadd.f32 %v9409_v3, %v2915_v47  ;;  %v8391_v9 = vpop.f32.mrb[140].mxu1  ;;  %v3067_v13 = vpop.f32.mrb[135].mxu0 }
 0x633   :  { %v3191_v29 = vmax.f32 %v3065_v24, 0.0  ;;  %v3068_v16 = vadd.f32 %v3067_v13, %v2907_v45  ;;  %v8392_v18 = vpop.f32.mrb[141].mxu1 }
 0x634   :  { %v3232_v41 = vmul.f32 %v11294_v19, %v3193_v12  ;;  %v3194_v59 = vmax.f32 %v3076_v5, 0.0  ;;  %v8393_v14 = vadd.f32 %v8392_v18, %v8391_v9  ;;  %v8394_v49 = vpop.f32.mrb[142].mxu1  ;;  %v9760_v9 = vld [vmem:[%s11306_s27 + $0x80] sm:$0xff]  }
 0x635   :  { %v3230_v4 = vmul.f32 %v11294_v19, %v3191_v29  ;;  %v3192_v54 = vmax.f32 %v3068_v16, 0.0  ;;  %v8395_v8 = vpop.f32.mrb[143].mxu1  ;;  %v9761_v16 = vld [vmem:[%s11306_s27 + $0x88] sm:$0xff]   ;;  %9486 = vmatprep.subr.bf16.mxu0 %v9760_v9 }
 0x636   :  { %v3233_v25 = vmul.f32 %v11294_v19, %v3194_v59  ;;  %v8396_v15 = vadd.f32 %v8395_v8, %v8394_v49  ;;  %v3271_v11 = vadd.f32 %v11298_v2, %v3232_v41  ;;  %v2920_v41 = vadd.f32 %v8393_v14, %v11286_v34 }
 0x637   :  { %v3231_v61 = vmul.f32 %v11294_v19, %v3192_v54  ;;  %v3269_v35 = vadd.f32 %v11298_v2, %v3230_v4  ;;  %v9762_v54 = vld [vmem:[%s11306_s27 + $0x90] sm:$0xff]  }
 0x638   :  { %v3272_v1 = vadd.f32 %v11298_v2, %v3233_v25 }
 0x639   :  { %v3270_v38 = vadd.f32 %v11298_v2, %v3231_v61  ;;  %v3301_v3 = vpack.c.bf16 %v3269_v35, %v11987_v57  ;;  %v2923_v61 = vadd.f32 %v8396_v15, %v11286_v34 }
 0x63a   :  { %v8397_v37 = vpop.f32.mrb[144].mxu1  ;;  %v3304_v21 = vpack.c.bf16 %v3272_v1, %v3271_v11 }
 0x63b   :  { %v8398_v32 = vpop.f32.mrb[145].mxu1  ;;  %v3302_v47 = vpack.c.bf16 %v3270_v38, %v3269_v35  ;;  %v3303_v24 = vpack.c.bf16 %v3271_v11, %v3270_v38  ;;  %v9764_v11 = vld [vmem:[%s11306_s27 + $0x40] sm:$0xff]  }
 0x63c   :  { %v8399_v45 = vadd.f32 %v8398_v32, %v8397_v37  ;;  %v8400_v12 = vpop.f32.mrb[146].mxu1  ;;  %8635 = vmatprep.subr.bf16.mxu1 %v9764_v11  ;;  %v9766_v11 = vld [vmem:[%s11306_s27 + $0xa0] sm:$0xff]  }
 0x63d   :  { %v8401_v5 = vpop.f32.mrb[147].mxu1  ;;  %3565 = vmatprep.mubr.bf16.mxu0 %v3302_v47  ;;  %9454 = vmatprep.mubr.bf16.mxu1 %v3303_v24 }
 0x63e   :  { %v8402_v13 = vadd.f32 %v8401_v5, %v8400_v12  ;;  %3566 = vmatmul.mubr.bf16.vlgmr.msra.gmra.mrb[164].mxu0 %v3301_v3  ;;  %v2928_v29 = vadd.f32 %v8399_v45, %v11286_v34 }
 0x63f   :  { %v9412_v18 = vpop.f32.mrb[136].mxu0  ;;  %3573 = vmatprep.mubr.bf16.mxu0 %v3304_v21  ;;  %9487 = vmatpush3.bf16.msra.mxu0 %v9760_v9  ;;  %v9763_v9 = vld [vmem:[%s11306_s27 + $0x98] sm:$0xff]  }
 0x640   :  { %v3089_v59 = vadd.f32 %v9412_v18, %v2928_v29  ;;  %v3080_v49 = vpop.f32.mrb[137].mxu0  ;;  %v2931_v4 = vadd.f32 %v8402_v13, %v11286_v34  ;;  %9488 = vmatprep.subr.bf16.mxu0 %v9761_v16 }
 0x641   :  { %v3081_v8 = vadd.f32 %v3080_v49, %v2920_v41  ;;  %v9413_v25 = vpop.f32.mrb[138].mxu0 }
 0x642   :  { %v3197_v35 = vmax.f32 %v3089_v59, 0.0  ;;  %v3092_v38 = vadd.f32 %v9413_v25, %v2931_v4  ;;  %v8403_v37 = vpop.f32.mrb[148].mxu1  ;;  %v3083_v21 = vpop.f32.mrb[139].mxu0 }
 0x643   :  { %v3195_v32 = vmax.f32 %v3081_v8, 0.0  ;;  %v3084_v14 = vadd.f32 %v3083_v21, %v2923_v61  ;;  %v8404_v47 = vpop.f32.mrb[149].mxu1  ;;  %9489 = vmatpush3.bf16.msra.mxu0 %v9761_v16  ;;  %v9765_v8 = vld [vmem:[%s11306_s27] sm:$0xff]  }
 0x644   :  { %v3236_v3 = vmul.f32 %v11294_v19, %v3197_v35  ;;  %v3198_v45 = vmax.f32 %v3092_v38, 0.0  ;;  %v8405_v12 = vadd.f32 %v8404_v47, %v8403_v37  ;;  %v8406_v5 = vpop.f32.mrb[150].mxu1  ;;  %9490 = vmatprep.subr.bf16.mxu0 %v9762_v54  ;;  %v9767_v38 = vld [vmem:[%s11306_s27 + $0x48] sm:$0xff]  }
 0x645   :  { %v3234_v15 = vmul.f32 %v11294_v19, %v3195_v32  ;;  %v3196_v13 = vmax.f32 %v3084_v14, 0.0  ;;  %v8407_v29 = vpop.f32.mrb[151].mxu1  ;;  %v9768_v14 = vld [vmem:[%s11306_s27 + $0x8] sm:$0xff]  }
 0x646   :  { %v3237_v18 = vmul.f32 %v11294_v19, %v3198_v45  ;;  %v8408_v41 = vadd.f32 %v8407_v29, %v8406_v5  ;;  %3574 = vmatmul.mubr.bf16.gmra.mrb[168].mxu0 %v3303_v24  ;;  %v3275_v4 = vadd.f32 %v11298_v2, %v3236_v3  ;;  %v9771_v45 = vld [vmem:[%s11306_s27 + $0xa8] sm:$0xff]   ;;  %v2936_v29 = vadd.f32 %v8405_v12, %v11286_v34 }
 0x647   :  { %v3273_v59 = vadd.f32 %v11298_v2, %v3234_v15  ;;  %v3235_v49 = vmul.f32 %v11294_v19, %v3196_v13  ;;  %9491 = vmatpush3.bf16.msra.mxu0 %v9762_v54 }
 0x648   :  { %v11329_v16 = vadd.f32 %v11298_v2, %v3237_v18  ;;  %9492 = vmatprep.subr.bf16.mxu0 %v9763_v9 }
 0x649   :  { %v3305_v25 = vpack.c.bf16 %v3273_v59, %v3272_v1  ;;  %v3274_v61 = vadd.f32 %v11298_v2, %v3235_v49  ;;  %v9769_v1 = vld [vmem:[%s11306_s27 + $0x50] sm:$0xff]  }
 0x64a   :  { %v8409_v35 = vpop.f32.mrb[152].mxu1  ;;  %v3308_v24 = vpack.c.bf16 %v11329_v16, %v3275_v4  ;;  %v9770_v49 = vld [vmem:[%s11306_s27 + $0x10] sm:$0xff]  }
 0x64b   :  { %v8410_v37 = vpop.f32.mrb[153].mxu1  ;;  %9455 = vmatmul.mubr.bf16.vlgmr.msra.gmra.mrb[196].mxu1 %v3305_v25  ;;  %v3306_v21 = vpack.c.bf16 %v3274_v61, %v3273_v59  ;;  %v3307_v32 = vpack.c.bf16 %v3275_v4, %v3274_v61  ;;  %9493 = vmatpush3.bf16.msra.mxu0 %v9763_v9  ;;  %v9772_v61 = vld [vmem:[%s11306_s27 + $0x58] sm:$0xff]  }
 0x64c   :  { %v8411_v47 = vadd.f32 %v8410_v37, %v8409_v35  ;;  %v8412_v3 = vpop.f32.mrb[154].mxu1  ;;  %8636 = vmatpush3.bf16.msra.mxu1 %v9765_v8  ;;  %9494 = vmatprep.subr.bf16.mxu0 %v9766_v11 }
 0x64d   :  { %v8413_v54 = vpop.f32.mrb[155].mxu1  ;;  %3581 = vmatprep.mubr.bf16.mxu0 %v3306_v21  ;;  %9458 = vmatprep.mubr.bf16.mxu1 %v3307_v32 }
 0x64e   :  { %v8414_v5 = vadd.f32 %v8413_v54, %v8412_v3  ;;  %3582 = vmatmul.mubr.bf16.gmra.mrb[172].mxu0 %v3305_v25  ;;  %v2944_v15 = vadd.f32 %v8411_v47, %v11286_v34  ;;  %8637 = vmatprep.subr.bf16.mxu1 %v9767_v38  ;;  %v2939_v25 = vadd.f32 %v8408_v41, %v11286_v34  ;;  %v9773_v38 = vld [vmem:[%s11306_s27 + $0x18] sm:$0xff]  }
 0x64f   :  { %v9416_v13 = vpop.f32.mrb[140].mxu0  ;;  %3589 = vmatprep.mubr.bf16.mxu0 %v3308_v24  ;;  %9495 = vmatpush3.bf16.msra.mxu0 %v9766_v11 }
 0x650   :  { %v3105_v18 = vadd.f32 %v9416_v13, %v2944_v15  ;;  %v3096_v9 = vpop.f32.mrb[141].mxu0  ;;  %v2947_v59 = vadd.f32 %v8414_v5, %v11286_v34  ;;  %8638 = vmatpush3.bf16.msra.mxu1 %v9768_v14  ;;  %9496 = vmatprep.subr.bf16.mxu0 %v9771_v45 }
 0x651   :  { %v3097_v4 = vadd.f32 %v3096_v9, %v2936_v29  ;;  %v9417_v8 = vpop.f32.mrb[142].mxu0  ;;  %8639 = vmatprep.subr.bf16.mxu1 %v9769_v1 }
 0x652   :  { %v3201_v35 = vmax.f32 %v3105_v18, 0.0  ;;  %v3108_v24 = vadd.f32 %v9417_v8, %v2947_v59  ;;  %v8415_v37 = vpop.f32.mrb[156].mxu1  ;;  %v3099_v12 = vpop.f32.mrb[143].mxu0 }
 0x653   :  { %v3199_v21 = vmax.f32 %v3097_v4, 0.0  ;;  %v3100_v47 = vadd.f32 %v3099_v12, %v2939_v25  ;;  %v8416_v3 = vpop.f32.mrb[157].mxu1  ;;  %9497 = vmatpush3.bf16.msra.mxu0 %v9771_v45 }
 0x654   :  { %v3240_v54 = vmul.f32 %v11294_v19, %v3201_v35  ;;  %v3202_v11 = vmax.f32 %v3108_v24, 0.0  ;;  %v8417_v14 = vadd.f32 %v8416_v3, %v8415_v37  ;;  %v8418_v5 = vpop.f32.mrb[158].mxu1  ;;  %8640 = vmatpush3.bf16.msra.mxu1 %v9770_v49 }
 0x655   :  { %v3238_v41 = vmul.f32 %v11294_v19, %v3199_v21  ;;  %v3200_v1 = vmax.f32 %v3100_v47, 0.0  ;;  %v8419_v15 = vpop.f32.mrb[159].mxu1  ;;  %8641 = vmatprep.subr.bf16.mxu1 %v9772_v61 }
 0x656   :  { %v3241_v13 = vmul.f32 %v11294_v19, %v3202_v11  ;;  %v8420_v29 = vadd.f32 %v8419_v15, %v8418_v5  ;;  %3590 = vmatmul.mubr.bf16.gmra.mrb[176].mxu0 %v3307_v32  ;;  %v3279_v59 = vadd.f32 %v11298_v2, %v3240_v54  ;;  %v2952_v3 = vadd.f32 %v8417_v14, %v11286_v34 }
 0x657   :  { %v3277_v18 = vadd.f32 %v11298_v2, %v3238_v41  ;;  %v3239_v9 = vmul.f32 %v11294_v19, %v3200_v1 }
 0x658   :  { %v3280_v4 = vadd.f32 %v11298_v2, %v3241_v13  ;;  %8642 = vmatpush3.bf16.msra.mxu1 %v9773_v38  ;;  %v2955_v1 = vadd.f32 %v8420_v29, %v11286_v34 }
 0x659   :  { %v3278_v45 = vadd.f32 %v11298_v2, %v3239_v9  ;;  %v3309_v49 = vpack.c.bf16 %v3277_v18, %v11329_v16 }
 0x65a   :  { %v8421_v8 = vpop.f32.mrb[160].mxu1  ;;  %v3312_v25 = vpack.c.bf16 %v3280_v4, %v3279_v59 }
 0x65b   :  { %v8422_v61 = vpop.f32.mrb[161].mxu1  ;;  %9459 = vmatmul.mubr.bf16.gmra.mrb[200].mxu1 %v3309_v49  ;;  %v3310_v35 = vpack.c.bf16 %v3278_v45, %v3277_v18  ;;  %v3311_v24 = vpack.c.bf16 %v3279_v59, %v3278_v45 }
 0x65c   :  { %v8423_v32 = vadd.f32 %v8422_v61, %v8421_v8  ;;  %v8424_v37 = vpop.f32.mrb[162].mxu1 }
 0x65d   :  { %v8425_v12 = vpop.f32.mrb[163].mxu1  ;;  %3597 = vmatprep.mubr.bf16.mxu0 %v3310_v35  ;;  %9462 = vmatprep.mubr.bf16.mxu1 %v3311_v24 }
 0x65e   :  { %v8426_v21 = vadd.f32 %v8425_v12, %v8424_v37  ;;  %3598 = vmatmul.mubr.bf16.gmra.mrb[180].mxu0 %v3309_v49  ;;  %v2960_v47 = vadd.f32 %v8423_v32, %v11286_v34 }
 0x65f   :  { %v9420_v38 = vpop.f32.mrb[144].mxu0  ;;  %3605 = vmatprep.mubr.bf16.mxu0 %v3312_v25 }
 0x660   :  { %v3121_v16 = vadd.f32 %v9420_v38, %v2960_v47  ;;  %v3112_v54 = vpop.f32.mrb[145].mxu0  ;;  %v2963_v11 = vadd.f32 %v8426_v21, %v11286_v34 }
 0x661   :  { %v3113_v5 = vadd.f32 %v3112_v54, %v2952_v3  ;;  %v9421_v41 = vpop.f32.mrb[146].mxu0 }
 0x662   :  { %v3205_v15 = vmax.f32 %v3121_v16, 0.0  ;;  %v3124_v13 = vadd.f32 %v9421_v41, %v2963_v11  ;;  %v8427_v18 = vpop.f32.mrb[164].mxu1  ;;  %v3115_v9 = vpop.f32.mrb[147].mxu0 }
 0x663   :  { %v3203_v59 = vmax.f32 %v3113_v5, 0.0  ;;  %v3116_v45 = vadd.f32 %v3115_v9, %v2955_v1  ;;  %v8428_v49 = vpop.f32.mrb[165].mxu1 }
 0x664   :  { %v3244_v8 = vmul.f32 %v11294_v19, %v3205_v15  ;;  %v3206_v25 = vmax.f32 %v3124_v13, 0.0  ;;  %v8429_v61 = vadd.f32 %v8428_v49, %v8427_v18  ;;  %v8430_v14 = vpop.f32.mrb[166].mxu1 }
 0x665   :  { %v3242_v35 = vmul.f32 %v11294_v19, %v3203_v59  ;;  %v3204_v32 = vmax.f32 %v3116_v45, 0.0  ;;  %v8431_v37 = vpop.f32.mrb[167].mxu1 }
 0x666   :  { %v3245_v12 = vmul.f32 %v11294_v19, %v3206_v25  ;;  %v8432_v21 = vadd.f32 %v8431_v37, %v8430_v14  ;;  %3606 = vmatmul.mubr.bf16.gmra.mrb[184].mxu0 %v3311_v24  ;;  %v3283_v38 = vadd.f32 %v11298_v2, %v3244_v8  ;;  %v2968_v49 = vadd.f32 %v8429_v61, %v11286_v34 }
 0x667   :  { %v3281_v29 = vadd.f32 %v11298_v2, %v3242_v35  ;;  %v3243_v47 = vmul.f32 %v11294_v19, %v3204_v32 }
 0x668   :  { %v3284_v3 = vadd.f32 %v11298_v2, %v3245_v12  ;;  %v2971_v32 = vadd.f32 %v8432_v21, %v11286_v34 }
 0x669   :  { %v3282_v16 = vadd.f32 %v11298_v2, %v3243_v47  ;;  %v3313_v54 = vpack.c.bf16 %v3281_v29, %v3280_v4 }
 0x66a   :  { %v8433_v11 = vpop.f32.mrb[168].mxu1  ;;  %v3316_v5 = vpack.c.bf16 %v3284_v3, %v3283_v38 }
 0x66b   :  { %v8434_v41 = vpop.f32.mrb[169].mxu1  ;;  %9463 = vmatmul.mubr.bf16.gmra.mrb[204].mxu1 %v3313_v54  ;;  %v3314_v1 = vpack.c.bf16 %v3282_v16, %v3281_v29  ;;  %v3315_v15 = vpack.c.bf16 %v3283_v38, %v3282_v16 }
 0x66c   :  { %v8435_v13 = vadd.f32 %v8434_v41, %v8433_v11  ;;  %v8436_v18 = vpop.f32.mrb[170].mxu1 }
 0x66d   :  { %v8437_v24 = vpop.f32.mrb[171].mxu1  ;;  %3613 = vmatprep.mubr.bf16.mxu0 %v3314_v1  ;;  %9466 = vmatprep.mubr.bf16.mxu1 %v3315_v15 }
 0x66e   :  { %v8438_v9 = vadd.f32 %v8437_v24, %v8436_v18  ;;  %3614 = vmatmul.mubr.bf16.gmra.mrb[188].mxu0 %v3313_v54  ;;  %v2976_v59 = vadd.f32 %v8435_v13, %v11286_v34 }
 0x66f   :  { %v9424_v45 = vpop.f32.mrb[148].mxu0  ;;  %3621 = vmatprep.mubr.bf16.mxu0 %v3316_v5 }
 0x670   :  { %v3137_v4 = vadd.f32 %v9424_v45, %v2976_v59  ;;  %v3128_v8 = vpop.f32.mrb[149].mxu0  ;;  %v2979_v25 = vadd.f32 %v8438_v9, %v11286_v34 }
 0x671   :  { %v3129_v14 = vadd.f32 %v3128_v8, %v2968_v49  ;;  %v9425_v35 = vpop.f32.mrb[150].mxu0 }
 0x672   :  { %v3209_v37 = vmax.f32 %v3137_v4, 0.0  ;;  %v3140_v12 = vadd.f32 %v9425_v35, %v2979_v25  ;;  %v8439_v29 = vpop.f32.mrb[172].mxu1  ;;  %v3131_v47 = vpop.f32.mrb[151].mxu0 }
 0x673   :  { %v3207_v38 = vmax.f32 %v3129_v14, 0.0  ;;  %v3132_v16 = vadd.f32 %v3131_v47, %v2971_v32  ;;  %v8440_v54 = vpop.f32.mrb[173].mxu1 }
 0x674   :  { %v3248_v11 = vmul.f32 %v11294_v19, %v3209_v37  ;;  %v3210_v5 = vmax.f32 %v3140_v12, 0.0  ;;  %v8441_v41 = vadd.f32 %v8440_v54, %v8439_v29  ;;  %v8442_v61 = vpop.f32.mrb[174].mxu1 }
 0x675   :  { %v3246_v1 = vmul.f32 %v11294_v19, %v3207_v38  ;;  %v3208_v13 = vmax.f32 %v3132_v16, 0.0  ;;  %v8443_v18 = vpop.f32.mrb[175].mxu1 }
 0x676   :  { %v3249_v24 = vmul.f32 %v11294_v19, %v3210_v5  ;;  %v8444_v9 = vadd.f32 %v8443_v18, %v8442_v61  ;;  %3622 = vmatmul.mubr.bf16.gmra.mrb[192].mxu0 %v3315_v15  ;;  %v3287_v45 = vadd.f32 %v11298_v2, %v3248_v11  ;;  %v2984_v54 = vadd.f32 %v8441_v41, %v11286_v34 }
 0x677   :  { %v3285_v21 = vadd.f32 %v11298_v2, %v3246_v1  ;;  %v3247_v59 = vmul.f32 %v11294_v19, %v3208_v13 }
 0x678   :  { %v3288_v49 = vadd.f32 %v11298_v2, %v3249_v24  ;;  %v2987_v13 = vadd.f32 %v8444_v9, %v11286_v34 }
 0x679   :  { %v3286_v4 = vadd.f32 %v11298_v2, %v3247_v59  ;;  %v3317_v8 = vpack.c.bf16 %v3285_v21, %v3284_v3 }
 0x67a   :  { %v8445_v25 = vpop.f32.mrb[176].mxu1  ;;  %v3320_v14 = vpack.c.bf16 %v3288_v49, %v3287_v45 }
 0x67b   :  { %v8446_v35 = vpop.f32.mrb[177].mxu1  ;;  %9467 = vmatmul.mubr.bf16.gmra.mrb[208].mxu1 %v3317_v8  ;;  %v3318_v32 = vpack.c.bf16 %v3286_v4, %v3285_v21  ;;  %v3319_v37 = vpack.c.bf16 %v3287_v45, %v3286_v4 }
 0x67c   :  { %v8447_v12 = vadd.f32 %v8446_v35, %v8445_v25  ;;  %v8448_v29 = vpop.f32.mrb[178].mxu1 }
 0x67d   :  { %v8449_v15 = vpop.f32.mrb[179].mxu1  ;;  %3629 = vmatprep.mubr.bf16.mxu0 %v3318_v32  ;;  %9470 = vmatprep.mubr.bf16.mxu1 %v3319_v37 }
 0x67e   :  { %v8450_v47 = vadd.f32 %v8449_v15, %v8448_v29  ;;  %3630 = vmatmul.mubr.bf16.gmra.mrb[196].mxu0 %v3317_v8  ;;  %v2992_v38 = vadd.f32 %v8447_v12, %v11286_v34 }
 0x67f   :  { %v9428_v16 = vpop.f32.mrb[152].mxu0  ;;  %3637 = vmatprep.mubr.bf16.mxu0 %v3320_v14 }
 0x680   :  { %v3153_v3 = vadd.f32 %v9428_v16, %v2992_v38  ;;  %v3144_v11 = vpop.f32.mrb[153].mxu0  ;;  %v2995_v5 = vadd.f32 %v8450_v47, %v11286_v34 }
 0x681   :  { %v3145_v61 = vadd.f32 %v3144_v11, %v2984_v54  ;;  %v9429_v1 = vpop.f32.mrb[154].mxu0 }
 0x682   :  { %v3213_v18 = vmax.f32 %v3153_v3, 0.0  ;;  %v3156_v24 = vadd.f32 %v9429_v1, %v2995_v5  ;;  %v8451_v21 = vpop.f32.mrb[180].mxu1  ;;  %v3147_v59 = vpop.f32.mrb[155].mxu0 }
 0x683   :  { %v3211_v45 = vmax.f32 %v3145_v61, 0.0  ;;  %v3148_v4 = vadd.f32 %v3147_v59, %v2987_v13  ;;  %v8452_v8 = vpop.f32.mrb[181].mxu1 }
 0x684   :  { %v3252_v25 = vmul.f32 %v11294_v19, %v3213_v18  ;;  %v3214_v14 = vmax.f32 %v3156_v24, 0.0  ;;  %v8453_v35 = vadd.f32 %v8452_v8, %v8451_v21  ;;  %v8454_v41 = vpop.f32.mrb[182].mxu1 }
 0x685   :  { %v3250_v32 = vmul.f32 %v11294_v19, %v3211_v45  ;;  %v3212_v12 = vmax.f32 %v3148_v4, 0.0  ;;  %v8455_v29 = vpop.f32.mrb[183].mxu1 }
 0x686   :  { %v3253_v15 = vmul.f32 %v11294_v19, %v3214_v14  ;;  %v8456_v47 = vadd.f32 %v8455_v29, %v8454_v41  ;;  %3638 = vmatmul.mubr.bf16.gmra.mrb[200].mxu0 %v3319_v37  ;;  %v3291_v16 = vadd.f32 %v11298_v2, %v3252_v25  ;;  %v3000_v5 = vadd.f32 %v8453_v35, %v11286_v34 }
 0x687   :  { %v3289_v9 = vadd.f32 %v11298_v2, %v3250_v32  ;;  %v3251_v38 = vmul.f32 %v11294_v19, %v3212_v12 }
 0x688   :  { %v3292_v54 = vadd.f32 %v11298_v2, %v3253_v15  ;;  %v3003_v59 = vadd.f32 %v8456_v47, %v11286_v34 }
 0x689   :  { %v3290_v3 = vadd.f32 %v11298_v2, %v3251_v38  ;;  %v9432_v11 = vpop.f32.mrb[156].mxu0  ;;  %v3321_v61 = vpack.c.bf16 %v3289_v9, %v3288_v49 }
 0x68a   :  { %v8457_v1 = vpop.f32.mrb[184].mxu1  ;;  %v3160_v13 = vpop.f32.mrb[157].mxu0  ;;  %v3324_v18 = vpack.c.bf16 %v3292_v54, %v3291_v16 }
 0x68b   :  { %v3161_v24 = vadd.f32 %v3160_v13, %v3000_v5  ;;  %v8458_v21 = vpop.f32.mrb[185].mxu1  ;;  %v9433_v37 = vpop.f32.mrb[158].mxu0  ;;  %9471 = vmatmul.mubr.bf16.gmra.mrb[212].mxu1 %v3321_v61  ;;  %v3322_v45 = vpack.c.bf16 %v3290_v3, %v3289_v9  ;;  %v3323_v4 = vpack.c.bf16 %v3291_v16, %v3290_v3 }
 0x68c   :  { %v8459_v8 = vadd.f32 %v8458_v21, %v8457_v1  ;;  %v8460_v25 = vpop.f32.mrb[186].mxu1  ;;  %v3163_v14 = vpop.f32.mrb[159].mxu0 }
 0x68d   :  { %v3215_v41 = vmax.f32 %v3161_v24, 0.0  ;;  %v3164_v32 = vadd.f32 %v3163_v14, %v3003_v59  ;;  %v8461_v12 = vpop.f32.mrb[187].mxu1  ;;  %3645 = vmatprep.mubr.bf16.mxu0 %v3322_v45  ;;  %9474 = vmatprep.mubr.bf16.mxu1 %v3323_v4 }
 0x68e   :  { %v3008_v49 = vadd.f32 %v8459_v8, %v11286_v34  ;;  %v8462_v35 = vadd.f32 %v8461_v12, %v8460_v25  ;;  %3646 = vmatmul.mubr.bf16.gmra.mrb[204].mxu0 %v3321_v61  ;;  %v9775_v12 = vld [vmem:[%s11306_s27 + $0x20] sm:$0xff]  }
 0x68f   :  { %v3254_v29 = vmul.f32 %v11294_v19, %v3215_v41  ;;  %v3216_v15 = vmax.f32 %v3164_v32, 0.0  ;;  %3653 = vmatprep.mubr.bf16.mxu0 %v3324_v18  ;;  %v9774_v32 = vld [vmem:[%s11306_s27 + $0x60] sm:$0xff]  }
 0x690   :  { %v3169_v38 = vadd.f32 %v9432_v11, %v3008_v49  ;;  %v3011_v47 = vadd.f32 %v8462_v35, %v11286_v34  ;;  %8643 = vmatprep.subr.bf16.mxu1 %v9774_v32 }
 0x691   :  { %v3293_v9 = vadd.f32 %v11298_v2, %v3254_v29  ;;  %v3255_v16 = vmul.f32 %v11294_v19, %v3216_v15  ;;  %8644 = vmatpush3.bf16.msra.mxu1 %v9775_v12 }
 0x692   :  { %v3217_v3 = vmax.f32 %v3169_v38, 0.0  ;;  %v3172_v5 = vadd.f32 %v9433_v37, %v3011_v47  ;;  %v8463_v1 = vpop.f32.mrb[188].mxu1  ;;  %v9436_v13 = vpop.f32.mrb[160].mxu0 }
 0x693   :  { %v3294_v24 = vadd.f32 %v11298_v2, %v3255_v16  ;;  %v8464_v61 = vpop.f32.mrb[189].mxu1  ;;  %v3176_v21 = vpop.f32.mrb[161].mxu0  ;;  %v3325_v59 = vpack.c.bf16 %v3293_v9, %v3292_v54 }
 0x694   :  { %v3256_v18 = vmul.f32 %v11294_v19, %v3217_v3  ;;  %v3218_v11 = vmax.f32 %v3172_v5, 0.0  ;;  %v8465_v45 = vadd.f32 %v8464_v61, %v8463_v1  ;;  %v8466_v8 = vpop.f32.mrb[190].mxu1  ;;  %v9437_v25 = vpop.f32.mrb[162].mxu0 }
 0x695   :  { %v8467_v14 = vpop.f32.mrb[191].mxu1  ;;  %9475 = vmatmul.mubr.bf16.gmra.mrb[216].mxu1 %v3325_v59  ;;  %v3179_v41 = vpop.f32.mrb[163].mxu0  ;;  %v3326_v37 = vpack.c.bf16 %v3294_v24, %v3293_v9  ;;  %v9776_v9 = vld [vmem:[%s11306_s27 + $0xb0] sm:$0xff]  }
 0x696   :  { %v3257_v49 = vmul.f32 %v11294_v19, %v3218_v11  ;;  %v3016_v35 = vadd.f32 %v8465_v45, %v11286_v34  ;;  %v8468_v29 = vadd.f32 %v8467_v14, %v8466_v8  ;;  %3654 = vmatmul.mubr.bf16.gmra.mrb[208].mxu0 %v3323_v4  ;;  %v3295_v54 = vadd.f32 %v11298_v2, %v3256_v18 }
 0x697   :  { %3661 = vmatprep.mubr.bf16.mxu0 %v3326_v37  ;;  %9498 = vmatprep.subr.bf16.mxu0 %v9776_v9 }
 0x698   :  { %v3177_v15 = vadd.f32 %v3176_v21, %v3016_v35  ;;  %v3019_v38 = vadd.f32 %v8468_v29, %v11286_v34  ;;  %v3327_v47 = vpack.c.bf16 %v3295_v54, %v3294_v24  ;;  %v3296_v16 = vadd.f32 %v11298_v2, %v3257_v49  ;;  %9499 = vmatpush3.bf16.msra.mxu0 %v9776_v9  ;;  %v9777_v24 = vld [vmem:[%s11306_s27 + $0x68] sm:$0xff]  }
 0x699   :  { %8645 = vmatprep.subr.bf16.mxu1 %v9777_v24 }
 0x69a   :  { %v3219_v3 = vmax.f32 %v3177_v15, 0.0  ;;  %v3180_v5 = vadd.f32 %v3179_v41, %v3019_v38  ;;  %v8469_v1 = vpop.f32.mrb[192].mxu1  ;;  %9478 = vmatprep.mubr.bf16.mxu1 %v3327_v47  ;;  %v3328_v61 = vpack.c.bf16 %v3296_v16, %v3295_v54 }
 0x69b   :  { %v8470_v11 = vpop.f32.mrb[193].mxu1 }
 0x69c   :  { %v3258_v4 = vmul.f32 %v11294_v19, %v3219_v3  ;;  %v3220_v18 = vmax.f32 %v3180_v5, 0.0  ;;  %v8471_v45 = vadd.f32 %v8470_v11, %v8469_v1  ;;  %v8472_v21 = vpop.f32.mrb[194].mxu1  ;;  %v9779_v1 = vld [vmem:[%s11306_s27 + $0x70] sm:$0xff]   ;;  %v9782_v11 = vld [vmem:[%s11306_s27 + $0xb8] sm:$0xff]  }
 0x69d   :  { %v8473_v8 = vpop.f32.mrb[195].mxu1  ;;  %9500 = vmatprep.subr.bf16.mxu0 %v9782_v11 }
 0x69e   :  { %v3297_v14 = vadd.f32 %v11298_v2, %v3258_v4  ;;  %v3259_v37 = vmul.f32 %v11294_v19, %v3220_v18  ;;  %v3024_v41 = vadd.f32 %v8471_v45, %v11286_v34  ;;  %v8474_v32 = vadd.f32 %v8473_v8, %v8472_v21  ;;  %3662 = vmatmul.mubr.bf16.gmra.mrb[212].mxu0 %v3325_v59  ;;  %v9778_v59 = vld [vmem:[%s11306_s27 + $0x28] sm:$0xff]  }
 0x69f   :  { %3669 = vmatprep.mubr.bf16.mxu0 %v3328_v61  ;;  %8646 = vmatpush3.bf16.msra.mxu1 %v9778_v59  ;;  %v9781_v61 = vld [vmem:[%s11306_s27 + $0x78] sm:$0xff]   ;;  %v11448_v59 = vld [vmem:[%s11434_s6] ss:$0 sm:$0xff] }
 0x6a0   :  { %v3298_v12 = vadd.f32 %v11298_v2, %v3259_v37  ;;  %v3185_v49 = vadd.f32 %v9436_v13, %v3024_v41  ;;  %v3027_v35 = vadd.f32 %v8474_v32, %v11286_v34  ;;  %v3329_v29 = vpack.c.bf16 %v3297_v14, %v3296_v16  ;;  %8647 = vmatprep.subr.bf16.mxu1 %v9779_v1 }
 0x6a1   :  { %9501 = vmatpush3.bf16.msra.mxu0 %v9782_v11 }
 0x6a2   :  { %v3221_v54 = vmax.f32 %v3185_v49, 0.0  ;;  %v3188_v15 = vadd.f32 %v9437_v25, %v3027_v35  ;;  %9479 = vmatmul.mubr.bf16.gmra.mrb[220].mxu1 %v3329_v29  ;;  %v3330_v38 = vpack.c.bf16 %v3298_v12, %v3297_v14  ;;  %v9780_v25 = vld [vmem:[%s11306_s27 + $0x30] sm:$0xff]  }
 0x6a3   :  { %8648 = vmatpush3.bf16.msra.mxu1 %v9780_v25 }
 0x6a4   :  { %v3260_v9 = vmul.f32 %v11294_v19, %v3221_v54  ;;  %v3222_v3 = vmax.f32 %v3188_v15, 0.0  ;;  %8649 = vmatprep.subr.bf16.mxu1 %v9781_v61 }
 0x6a6   :  { %v3261_v5 = vmul.f32 %v11294_v19, %v3222_v3  ;;  %3670 = vmatmul.mubr.bf16.gmra.mrb[216].mxu0 %v3327_v47  ;;  %v3299_v13 = vadd.f32 %v11298_v2, %v3260_v9  ;;  %v9783_v19 = vld [vmem:[%s11306_s27 + $0x38] sm:$0xff]  }
 0x6a7   :  { %3677 = vmatprep.mubr.bf16.mxu0 %v3330_v38  ;;  %8650 = vmatpush3.bf16.msra.mxu1 %v9783_v19 }
 0x6a8   :  { %v3331_v34 = vpack.c.bf16 %v3299_v13, %v3298_v12  ;;  %v3300_v16 = vadd.f32 %v11298_v2, %v3261_v5  ;;  %v11437_v12 = vld [vmem:[%s11429_s2] ss:$0 sm:$0xff] }
 0x6aa   :  { %9482 = vmatprep.mubr.bf16.mxu1 %v3331_v34  ;;  %v3333_v4 = vpack.c.bf16 %v11987_v57, %v3300_v16  ;;  %v3332_v18 = vpack.c.bf16 %v3300_v16, %v3299_v13 }
 0x6ac   :  { %9483 = vmatmul.mubr.bf16.gmra.mrb[224].mxu1 %v3333_v4 }
 0x6ae   :  { %3678 = vmatmul.mubr.bf16.gmra.mrb[220].mxu0 %v3329_v29 }
 0x6af   :  { %3685 = vmatprep.mubr.bf16.mxu0 %v3332_v18 }
 0x6b6   :  { %3686 = vmatmul.mubr.bf16.gmra.mrb[224].mxu0 %v3331_v34 }
 0x711   :  { %v8515_v2 = vpop.f32.mrb[164].mxu0 }
 0x712   :  { %v8516_v47 = vpop.f32.mrb[165].mxu0 }
 0x713   :  { %v8517_v45 = vadd.f32 %v8516_v47, %v8515_v2  ;;  %v8518_v21 = vpop.f32.mrb[166].mxu0 }
 0x714   :  { %v8519_v8 = vpop.f32.mrb[167].mxu0 }
 0x715   :  { %v8520_v24 = vadd.f32 %v8519_v8, %v8518_v21  ;;  %v3568_v15 = vadd.f32 %v8517_v45, %v11437_v12  ;;  %v11453_v21 = vld [vmem:[%s11442_s9] ss:$0 sm:$0xff] }
 0x717   :  { %v3571_v34 = vadd.f32 %v8520_v24, %v11437_v12 }
 0x719   :  { %v8521_v14 = vpop.f32.mrb[168].mxu0 }
 0x71a   :  { %v8522_v37 = vpop.f32.mrb[169].mxu0 }
 0x71b   :  { %v8523_v41 = vadd.f32 %v8522_v37, %v8521_v14  ;;  %v8524_v32 = vpop.f32.mrb[170].mxu0 }
 0x71c   :  { %v8525_v49 = vpop.f32.mrb[171].mxu0 }
 0x71d   :  { %v8526_v35 = vadd.f32 %v8525_v49, %v8524_v32  ;;  %v3576_v29 = vadd.f32 %v8523_v41, %v11437_v12 }
 0x71e   :  { %v9456_v54 = vpop.f32.mrb[196].mxu1 }
 0x71f   :  { %v3737_v38 = vadd.f32 %v9456_v54, %v3576_v29  ;;  %v3728_v9 = vpop.f32.mrb[197].mxu1  ;;  %v3579_v3 = vadd.f32 %v8526_v35, %v11437_v12 }
 0x720   :  { %v3729_v5 = vadd.f32 %v3728_v9, %v3568_v15  ;;  %v9457_v13 = vpop.f32.mrb[198].mxu1 }
 0x721   :  { %v3857_v16 = vmax.f32 %v3737_v38, 0.0  ;;  %v3740_v1 = vadd.f32 %v9457_v13, %v3579_v3  ;;  %v8527_v25 = vpop.f32.mrb[172].mxu0  ;;  %v3731_v61 = vpop.f32.mrb[199].mxu1 }
 0x722   :  { %v3855_v11 = vmax.f32 %v3729_v5, 0.0  ;;  %v3732_v4 = vadd.f32 %v3731_v61, %v3571_v34  ;;  %v8528_v18 = vpop.f32.mrb[173].mxu0 }
 0x723   :  { %v3896_v19 = vmul.f32 %v11448_v59, %v3857_v16  ;;  %v3858_v2 = vmax.f32 %v3740_v1, 0.0  ;;  %v8529_v47 = vadd.f32 %v8528_v18, %v8527_v25  ;;  %v8530_v45 = vpop.f32.mrb[174].mxu0  ;;  %v9784_v25 = vld [vmem:[%s11461_s13 + $0x140] sm:$0xff]  }
 0x724   :  { %v3894_v8 = vmul.f32 %v11448_v59, %v3855_v11  ;;  %v3856_v14 = vmax.f32 %v3732_v4, 0.0  ;;  %v8531_v37 = vpop.f32.mrb[175].mxu0  ;;  %v9785_v4 = vld [vmem:[%s11461_s13 + $0x100] sm:$0xff]   ;;  %8815 = vmatprep.subr.bf16.mxu1 %v9784_v25  ;;  %v9791_v25 = vld [vmem:[%s11461_s13 + $0x108] sm:$0xff]  }
 0x725   :  { %v3897_v24 = vmul.f32 %v11448_v59, %v3858_v2  ;;  %v8532_v41 = vadd.f32 %v8531_v37, %v8530_v45  ;;  %v3935_v49 = vadd.f32 %v11453_v21, %v3896_v19  ;;  %v3584_v19 = vadd.f32 %v8529_v47, %v11437_v12  ;;  %v9786_v2 = vld [vmem:[%s11461_s13 + $0x40] sm:$0xff]  }
 0x726   :  { %v3895_v32 = vmul.f32 %v11448_v59, %v3856_v14  ;;  %v3933_v35 = vadd.f32 %v11453_v21, %v3894_v8  ;;  %8771 = vmatprep.subr.bf16.mxu0 %v9786_v2 }
 0x727   :  { %v3936_v29 = vadd.f32 %v11453_v21, %v3897_v24 }
 0x728   :  { %v3934_v54 = vadd.f32 %v11453_v21, %v3895_v32  ;;  %v3965_v13 = vpack.c.bf16 %v3933_v35, %v11987_v57  ;;  %v3587_v32 = vadd.f32 %v8532_v41, %v11437_v12 }
 0x729   :  { %v8533_v15 = vpop.f32.mrb[176].mxu0  ;;  %v3968_v38 = vpack.c.bf16 %v3936_v29, %v3935_v49 }
 0x72a   :  { %v8534_v9 = vpop.f32.mrb[177].mxu0  ;;  %v3966_v3 = vpack.c.bf16 %v3934_v54, %v3933_v35  ;;  %v3967_v5 = vpack.c.bf16 %v3935_v49, %v3934_v54 }
 0x72b   :  { %v8535_v34 = vadd.f32 %v8534_v9, %v8533_v15  ;;  %v8536_v16 = vpop.f32.mrb[178].mxu0 }
 0x72c   :  { %v8537_v1 = vpop.f32.mrb[179].mxu0  ;;  %4229 = vmatprep.mubr.bf16.mxu1 %v3966_v3  ;;  %9502 = vmatprep.mubr.bf16.mxu0 %v3967_v5 }
 0x72d   :  { %v8538_v61 = vadd.f32 %v8537_v1, %v8536_v16  ;;  %4230 = vmatmul.mubr.bf16.vlgmr.msra.gmra.mrb[228].mxu1 %v3965_v13  ;;  %v3592_v11 = vadd.f32 %v8535_v34, %v11437_v12  ;;  %v9790_v1 = vld [vmem:[%s11461_s13 + $0x148] sm:$0xff]  }
 0x72e   :  { %v9460_v18 = vpop.f32.mrb[200].mxu1  ;;  %4237 = vmatprep.mubr.bf16.mxu1 %v3968_v38  ;;  %8816 = vmatpush3.bf16.msra.mxu1 %v9785_v4 }
 0x72f   :  { %v3753_v45 = vadd.f32 %v9460_v18, %v3592_v11  ;;  %v3744_v8 = vpop.f32.mrb[201].mxu1  ;;  %v3595_v14 = vadd.f32 %v8538_v61, %v11437_v12  ;;  %8817 = vmatprep.subr.bf16.mxu1 %v9790_v1 }
 0x730   :  { %v3745_v37 = vadd.f32 %v3744_v8, %v3584_v19  ;;  %v9461_v24 = vpop.f32.mrb[202].mxu1 }
 0x731   :  { %v3861_v49 = vmax.f32 %v3753_v45, 0.0  ;;  %v3756_v35 = vadd.f32 %v9461_v24, %v3595_v14  ;;  %v8539_v54 = vpop.f32.mrb[180].mxu0  ;;  %v3747_v15 = vpop.f32.mrb[203].mxu1  ;;  %v9787_v14 = vld [vmem:[%s11461_s13] sm:$0xff]  }
 0x732   :  { %v3859_v38 = vmax.f32 %v3745_v37, 0.0  ;;  %v3748_v47 = vadd.f32 %v3747_v15, %v3587_v32  ;;  %v8540_v9 = vpop.f32.mrb[181].mxu0  ;;  %8818 = vmatpush3.bf16.msra.mxu1 %v9791_v25  ;;  %v9788_v32 = vld [vmem:[%s11461_s13 + $0x48] sm:$0xff]  }
 0x733   :  { %v3900_v3 = vmul.f32 %v11448_v59, %v3861_v49  ;;  %v3862_v13 = vmax.f32 %v3756_v35, 0.0  ;;  %v8541_v34 = vadd.f32 %v8540_v9, %v8539_v54  ;;  %v8542_v16 = vpop.f32.mrb[182].mxu0  ;;  %v9796_v35 = vld [vmem:[%s11461_s13 + $0x150] sm:$0xff]  }
 0x734   :  { %v3898_v61 = vmul.f32 %v11448_v59, %v3859_v38  ;;  %v3860_v41 = vmax.f32 %v3748_v47, 0.0  ;;  %v8543_v11 = vpop.f32.mrb[183].mxu0  ;;  %v9797_v47 = vld [vmem:[%s11461_s13 + $0x110] sm:$0xff]   ;;  %8819 = vmatprep.subr.bf16.mxu1 %v9796_v35 }
 0x735   :  { %v3901_v4 = vmul.f32 %v11448_v59, %v3862_v13  ;;  %v8544_v18 = vadd.f32 %v8543_v11, %v8542_v16  ;;  %4238 = vmatmul.mubr.bf16.gmra.mrb[232].mxu1 %v3967_v5  ;;  %v3939_v45 = vadd.f32 %v11453_v21, %v3900_v3  ;;  %v9789_v13 = vld [vmem:[%s11461_s13 + $0x8] sm:$0xff]  }
 0x736   :  { %v3937_v19 = vadd.f32 %v11453_v21, %v3898_v61  ;;  %v3899_v2 = vmul.f32 %v11448_v59, %v3860_v41  ;;  %v3600_v41 = vadd.f32 %v8541_v34, %v11437_v12  ;;  %8820 = vmatpush3.bf16.msra.mxu1 %v9797_v47  ;;  %v9795_v34 = vld [vmem:[%s11461_s13 + $0x18] sm:$0xff]  }
 0x737   :  { %v11484_v8 = vadd.f32 %v11453_v21, %v3901_v4 }
 0x738   :  { %v3969_v37 = vpack.c.bf16 %v3937_v19, %v3936_v29  ;;  %v3938_v24 = vadd.f32 %v11453_v21, %v3899_v2  ;;  %v9792_v29 = vld [vmem:[%s11461_s13 + $0x50] sm:$0xff]  }
 0x739   :  { %v8545_v49 = vpop.f32.mrb[184].mxu0  ;;  %v3972_v5 = vpack.c.bf16 %v11484_v8, %v3939_v45  ;;  %v9793_v2 = vld [vmem:[%s11461_s13 + $0x10] sm:$0xff]  }
 0x73a   :  { %v8546_v54 = vpop.f32.mrb[185].mxu0  ;;  %9503 = vmatmul.mubr.bf16.vlgmr.msra.gmra.mrb[228].mxu0 %v3969_v37  ;;  %v3970_v15 = vpack.c.bf16 %v3938_v24, %v3937_v19  ;;  %v3971_v38 = vpack.c.bf16 %v3939_v45, %v3938_v24  ;;  %v9794_v24 = vld [vmem:[%s11461_s13 + $0x58] sm:$0xff]  }
 0x73b   :  { %v8547_v9 = vadd.f32 %v8546_v54, %v8545_v49  ;;  %v8548_v3 = vpop.f32.mrb[186].mxu0  ;;  %8772 = vmatpush3.bf16.msra.mxu0 %v9787_v14 }
 0x73c   :  { %v8549_v16 = vpop.f32.mrb[187].mxu0  ;;  %4245 = vmatprep.mubr.bf16.mxu1 %v3970_v15  ;;  %9506 = vmatprep.mubr.bf16.mxu0 %v3971_v38 }
 0x73d   :  { %v8550_v1 = vadd.f32 %v8549_v16, %v8548_v3  ;;  %4246 = vmatmul.mubr.bf16.gmra.mrb[236].mxu1 %v3969_v37  ;;  %v3608_v25 = vadd.f32 %v8547_v9, %v11437_v12  ;;  %8773 = vmatprep.subr.bf16.mxu0 %v9788_v32  ;;  %v3603_v37 = vadd.f32 %v8544_v18, %v11437_v12  ;;  %v9798_v9 = vld [vmem:[%s11461_s13 + $0x60] sm:$0xff]  }
 0x73e   :  { %v9464_v61 = vpop.f32.mrb[204].mxu1  ;;  %4253 = vmatprep.mubr.bf16.mxu1 %v3972_v5 }
 0x73f   :  { %v3769_v11 = vadd.f32 %v9464_v61, %v3608_v25  ;;  %v3760_v4 = vpop.f32.mrb[205].mxu1  ;;  %v3611_v19 = vadd.f32 %v8550_v1, %v11437_v12  ;;  %8774 = vmatpush3.bf16.msra.mxu0 %v9789_v13 }
 0x740   :  { %v3761_v45 = vadd.f32 %v3760_v4, %v3600_v41  ;;  %v9465_v14 = vpop.f32.mrb[206].mxu1  ;;  %8775 = vmatprep.subr.bf16.mxu0 %v9792_v29 }
 0x741   :  { %v3865_v32 = vmax.f32 %v3769_v11, 0.0  ;;  %v3772_v49 = vadd.f32 %v9465_v14, %v3611_v19  ;;  %v8551_v5 = vpop.f32.mrb[188].mxu0  ;;  %v3763_v35 = vpop.f32.mrb[207].mxu1  ;;  %v9799_v11 = vld [vmem:[%s11461_s13 + $0x20] sm:$0xff]  }
 0x742   :  { %v3863_v54 = vmax.f32 %v3761_v45, 0.0  ;;  %v3764_v15 = vadd.f32 %v3763_v35, %v3603_v37  ;;  %v8552_v47 = vpop.f32.mrb[189].mxu0 }
 0x743   :  { %v3904_v3 = vmul.f32 %v11448_v59, %v3865_v32  ;;  %v3866_v13 = vmax.f32 %v3772_v49, 0.0  ;;  %v8553_v16 = vadd.f32 %v8552_v47, %v8551_v5  ;;  %v8554_v1 = vpop.f32.mrb[190].mxu0  ;;  %8776 = vmatpush3.bf16.msra.mxu0 %v9793_v2 }
 0x744   :  { %v3902_v18 = vmul.f32 %v11448_v59, %v3863_v54  ;;  %v3864_v29 = vmax.f32 %v3764_v15, 0.0  ;;  %v8555_v25 = vpop.f32.mrb[191].mxu0  ;;  %8777 = vmatprep.subr.bf16.mxu0 %v9794_v24 }
 0x745   :  { %v3905_v61 = vmul.f32 %v11448_v59, %v3866_v13  ;;  %v8556_v41 = vadd.f32 %v8555_v25, %v8554_v1  ;;  %4254 = vmatmul.mubr.bf16.gmra.mrb[240].mxu1 %v3971_v38  ;;  %v3943_v45 = vadd.f32 %v11453_v21, %v3904_v3 }
 0x746   :  { %v3941_v4 = vadd.f32 %v11453_v21, %v3902_v18  ;;  %v3903_v19 = vmul.f32 %v11448_v59, %v3864_v29 }
 0x747   :  { %v3944_v14 = vadd.f32 %v11453_v21, %v3905_v61  ;;  %8778 = vmatpush3.bf16.msra.mxu0 %v9795_v34  ;;  %v3619_v25 = vadd.f32 %v8556_v41, %v11437_v12 }
 0x748   :  { %v3942_v2 = vadd.f32 %v11453_v21, %v3903_v19  ;;  %v3973_v37 = vpack.c.bf16 %v3941_v4, %v11484_v8  ;;  %8779 = vmatprep.subr.bf16.mxu0 %v9798_v9  ;;  %v3616_v8 = vadd.f32 %v8553_v16, %v11437_v12 }
 0x749   :  { %v8557_v24 = vpop.f32.mrb[192].mxu0  ;;  %v3976_v32 = vpack.c.bf16 %v3944_v14, %v3943_v45 }
 0x74a   :  { %v8558_v49 = vpop.f32.mrb[193].mxu0  ;;  %9507 = vmatmul.mubr.bf16.gmra.mrb[232].mxu0 %v3973_v37  ;;  %v3974_v38 = vpack.c.bf16 %v3942_v2, %v3941_v4  ;;  %v3975_v5 = vpack.c.bf16 %v3943_v45, %v3942_v2 }
 0x74b   :  { %v8559_v35 = vadd.f32 %v8558_v49, %v8557_v24  ;;  %v8560_v54 = vpop.f32.mrb[194].mxu0  ;;  %8780 = vmatpush3.bf16.msra.mxu0 %v9799_v11 }
 0x74c   :  { %v8561_v15 = vpop.f32.mrb[195].mxu0  ;;  %4261 = vmatprep.mubr.bf16.mxu1 %v3974_v38  ;;  %9510 = vmatprep.mubr.bf16.mxu0 %v3975_v5 }
 0x74d   :  { %v8562_v47 = vadd.f32 %v8561_v15, %v8560_v54  ;;  %4262 = vmatmul.mubr.bf16.gmra.mrb[244].mxu1 %v3973_v37  ;;  %v3624_v34 = vadd.f32 %v8559_v35, %v11437_v12 }
 0x74e   :  { %v9468_v3 = vpop.f32.mrb[208].mxu1  ;;  %4269 = vmatprep.mubr.bf16.mxu1 %v3976_v32 }
 0x74f   :  { %v3785_v9 = vadd.f32 %v9468_v3, %v3624_v34  ;;  %v3776_v13 = vpop.f32.mrb[209].mxu1  ;;  %v3627_v1 = vadd.f32 %v8562_v47, %v11437_v12 }
 0x750   :  { %v3777_v18 = vadd.f32 %v3776_v13, %v3616_v8  ;;  %v9469_v29 = vpop.f32.mrb[210].mxu1 }
 0x751   :  { %v3869_v61 = vmax.f32 %v3785_v9, 0.0  ;;  %v3788_v11 = vadd.f32 %v9469_v29, %v3627_v1  ;;  %v8563_v4 = vpop.f32.mrb[196].mxu0  ;;  %v3779_v19 = vpop.f32.mrb[211].mxu1 }
 0x752   :  { %v3867_v45 = vmax.f32 %v3777_v18, 0.0  ;;  %v3780_v2 = vadd.f32 %v3779_v19, %v3619_v25  ;;  %v8564_v37 = vpop.f32.mrb[197].mxu0 }
 0x753   :  { %v3908_v24 = vmul.f32 %v11448_v59, %v3869_v61  ;;  %v3870_v32 = vmax.f32 %v3788_v11, 0.0  ;;  %v8565_v49 = vadd.f32 %v8564_v37, %v8563_v4  ;;  %v8566_v16 = vpop.f32.mrb[198].mxu0 }
 0x754   :  { %v3906_v38 = vmul.f32 %v11448_v59, %v3867_v45  ;;  %v3868_v35 = vmax.f32 %v3780_v2, 0.0  ;;  %v8567_v54 = vpop.f32.mrb[199].mxu0 }
 0x755   :  { %v3909_v15 = vmul.f32 %v11448_v59, %v3870_v32  ;;  %v8568_v47 = vadd.f32 %v8567_v54, %v8566_v16  ;;  %4270 = vmatmul.mubr.bf16.gmra.mrb[248].mxu1 %v3975_v5  ;;  %v3947_v3 = vadd.f32 %v11453_v21, %v3908_v24  ;;  %v3632_v37 = vadd.f32 %v8565_v49, %v11437_v12 }
 0x756   :  { %v3945_v41 = vadd.f32 %v11453_v21, %v3906_v38  ;;  %v3907_v34 = vmul.f32 %v11448_v59, %v3868_v35 }
 0x757   :  { %v3948_v8 = vadd.f32 %v11453_v21, %v3909_v15  ;;  %v3635_v35 = vadd.f32 %v8568_v47, %v11437_v12 }
 0x758   :  { %v3946_v9 = vadd.f32 %v11453_v21, %v3907_v34  ;;  %v3977_v13 = vpack.c.bf16 %v3945_v41, %v3944_v14 }
 0x759   :  { %v8569_v1 = vpop.f32.mrb[200].mxu0  ;;  %v3980_v18 = vpack.c.bf16 %v3948_v8, %v3947_v3 }
 0x75a   :  { %v8570_v29 = vpop.f32.mrb[201].mxu0  ;;  %9511 = vmatmul.mubr.bf16.gmra.mrb[236].mxu0 %v3977_v13  ;;  %v3978_v25 = vpack.c.bf16 %v3946_v9, %v3945_v41  ;;  %v3979_v61 = vpack.c.bf16 %v3947_v3, %v3946_v9 }
 0x75b   :  { %v8571_v11 = vadd.f32 %v8570_v29, %v8569_v1  ;;  %v8572_v4 = vpop.f32.mrb[202].mxu0 }
 0x75c   :  { %v8573_v5 = vpop.f32.mrb[203].mxu0  ;;  %4277 = vmatprep.mubr.bf16.mxu1 %v3978_v25  ;;  %9514 = vmatprep.mubr.bf16.mxu0 %v3979_v61 }
 0x75d   :  { %v8574_v19 = vadd.f32 %v8573_v5, %v8572_v4  ;;  %4278 = vmatmul.mubr.bf16.gmra.mrb[252].mxu1 %v3977_v13  ;;  %v3640_v45 = vadd.f32 %v8571_v11, %v11437_v12 }
 0x75e   :  { %v9472_v2 = vpop.f32.mrb[212].mxu1  ;;  %4285 = vmatprep.mubr.bf16.mxu1 %v3980_v18 }
 0x75f   :  { %v3801_v14 = vadd.f32 %v9472_v2, %v3640_v45  ;;  %v3792_v24 = vpop.f32.mrb[213].mxu1  ;;  %v3643_v32 = vadd.f32 %v8574_v19, %v11437_v12 }
 0x760   :  { %v3793_v16 = vadd.f32 %v3792_v24, %v3632_v37  ;;  %v9473_v38 = vpop.f32.mrb[214].mxu1 }
 0x761   :  { %v3873_v54 = vmax.f32 %v3801_v14, 0.0  ;;  %v3804_v15 = vadd.f32 %v9473_v38, %v3643_v32  ;;  %v8575_v41 = vpop.f32.mrb[204].mxu0  ;;  %v3795_v34 = vpop.f32.mrb[215].mxu1 }
 0x762   :  { %v3871_v3 = vmax.f32 %v3793_v16, 0.0  ;;  %v3796_v9 = vadd.f32 %v3795_v34, %v3635_v35  ;;  %v8576_v13 = vpop.f32.mrb[205].mxu0 }
 0x763   :  { %v3912_v1 = vmul.f32 %v11448_v59, %v3873_v54  ;;  %v3874_v18 = vmax.f32 %v3804_v15, 0.0  ;;  %v8577_v29 = vadd.f32 %v8576_v13, %v8575_v41  ;;  %v8578_v49 = vpop.f32.mrb[206].mxu0 }
 0x764   :  { %v3910_v25 = vmul.f32 %v11448_v59, %v3871_v3  ;;  %v3872_v11 = vmax.f32 %v3796_v9, 0.0  ;;  %v8579_v4 = vpop.f32.mrb[207].mxu0 }
 0x765   :  { %v3913_v5 = vmul.f32 %v11448_v59, %v3874_v18  ;;  %v8580_v19 = vadd.f32 %v8579_v4, %v8578_v49  ;;  %4286 = vmatmul.mubr.bf16.gmra.mrb[0].mxu1 %v3979_v61  ;;  %v3951_v2 = vadd.f32 %v11453_v21, %v3912_v1  ;;  %v3648_v32 = vadd.f32 %v8577_v29, %v11437_v12 }
 0x766   :  { %v3949_v47 = vadd.f32 %v11453_v21, %v3910_v25  ;;  %v3911_v45 = vmul.f32 %v11448_v59, %v3872_v11 }
 0x767   :  { %v3952_v37 = vadd.f32 %v11453_v21, %v3913_v5  ;;  %v3651_v34 = vadd.f32 %v8580_v19, %v11437_v12 }
 0x768   :  { %v3950_v14 = vadd.f32 %v11453_v21, %v3911_v45  ;;  %v9476_v24 = vpop.f32.mrb[216].mxu1  ;;  %v3981_v16 = vpack.c.bf16 %v3949_v47, %v3948_v8 }
 0x769   :  { %v8581_v38 = vpop.f32.mrb[208].mxu0  ;;  %v3808_v35 = vpop.f32.mrb[217].mxu1  ;;  %v3984_v54 = vpack.c.bf16 %v3952_v37, %v3951_v2 }
 0x76a   :  { %v3809_v15 = vadd.f32 %v3808_v35, %v3648_v32  ;;  %v8582_v41 = vpop.f32.mrb[209].mxu0  ;;  %v9477_v61 = vpop.f32.mrb[218].mxu1  ;;  %9515 = vmatmul.mubr.bf16.gmra.mrb[240].mxu0 %v3981_v16  ;;  %v3982_v3 = vpack.c.bf16 %v3950_v14, %v3949_v47  ;;  %v3983_v9 = vpack.c.bf16 %v3951_v2, %v3950_v14 }
 0x76b   :  { %v8583_v13 = vadd.f32 %v8582_v41, %v8581_v38  ;;  %v8584_v1 = vpop.f32.mrb[210].mxu0  ;;  %v3811_v18 = vpop.f32.mrb[219].mxu1 }
 0x76c   :  { %v3875_v49 = vmax.f32 %v3809_v15, 0.0  ;;  %v3812_v25 = vadd.f32 %v3811_v18, %v3651_v34  ;;  %v8585_v11 = vpop.f32.mrb[211].mxu0  ;;  %4293 = vmatprep.mubr.bf16.mxu1 %v3982_v3  ;;  %9518 = vmatprep.mubr.bf16.mxu0 %v3983_v9 }
 0x76d   :  { %v3656_v8 = vadd.f32 %v8583_v13, %v11437_v12  ;;  %v8586_v29 = vadd.f32 %v8585_v11, %v8584_v1  ;;  %4294 = vmatmul.mubr.bf16.gmra.mrb[4].mxu1 %v3981_v16 }
 0x76e   :  { %v3914_v4 = vmul.f32 %v11448_v59, %v3875_v49  ;;  %v3876_v5 = vmax.f32 %v3812_v25, 0.0  ;;  %4301 = vmatprep.mubr.bf16.mxu1 %v3984_v54 }
 0x76f   :  { %v3817_v45 = vadd.f32 %v9476_v24, %v3656_v8  ;;  %v3659_v19 = vadd.f32 %v8586_v29, %v11437_v12 }
 0x770   :  { %v3953_v47 = vadd.f32 %v11453_v21, %v3914_v4  ;;  %v3915_v2 = vmul.f32 %v11448_v59, %v3876_v5 }
 0x771   :  { %v3877_v14 = vmax.f32 %v3817_v45, 0.0  ;;  %v3820_v32 = vadd.f32 %v9477_v61, %v3659_v19  ;;  %v8587_v38 = vpop.f32.mrb[212].mxu0 }
 0x772   :  { %v3954_v35 = vadd.f32 %v11453_v21, %v3915_v2  ;;  %v8588_v15 = vpop.f32.mrb[213].mxu0  ;;  %v3985_v41 = vpack.c.bf16 %v3953_v47, %v3952_v37 }
 0x773   :  { %v3916_v16 = vmul.f32 %v11448_v59, %v3877_v14  ;;  %v3878_v34 = vmax.f32 %v3820_v32, 0.0  ;;  %v8589_v3 = vadd.f32 %v8588_v15, %v8587_v38  ;;  %v8590_v13 = vpop.f32.mrb[214].mxu0 }
 0x774   :  { %v8591_v54 = vpop.f32.mrb[215].mxu0  ;;  %9519 = vmatmul.mubr.bf16.gmra.mrb[244].mxu0 %v3985_v41  ;;  %v3986_v24 = vpack.c.bf16 %v3954_v35, %v3953_v47 }
 0x775   :  { %v3917_v1 = vmul.f32 %v11448_v59, %v3878_v34  ;;  %v8592_v18 = vadd.f32 %v8591_v54, %v8590_v13  ;;  %v9480_v49 = vpop.f32.mrb[220].mxu1  ;;  %4302 = vmatmul.mubr.bf16.gmra.mrb[8].mxu1 %v3983_v9  ;;  %v3664_v61 = vadd.f32 %v8589_v3, %v11437_v12  ;;  %v3955_v25 = vadd.f32 %v11453_v21, %v3916_v16 }
 0x776   :  { %v3824_v11 = vpop.f32.mrb[221].mxu1  ;;  %4309 = vmatprep.mubr.bf16.mxu1 %v3986_v24 }
 0x777   :  { %v3825_v37 = vadd.f32 %v3824_v11, %v3664_v61  ;;  %v9481_v8 = vpop.f32.mrb[222].mxu1  ;;  %v3667_v29 = vadd.f32 %v8592_v18, %v11437_v12  ;;  %v3987_v4 = vpack.c.bf16 %v3955_v25, %v3954_v35  ;;  %v3956_v5 = vadd.f32 %v11453_v21, %v3917_v1 }
 0x778   :  { %v3827_v45 = vpop.f32.mrb[223].mxu1 }
 0x779   :  { %v3879_v19 = vmax.f32 %v3825_v37, 0.0  ;;  %v3828_v47 = vadd.f32 %v3827_v45, %v3667_v29  ;;  %v8593_v2 = vpop.f32.mrb[216].mxu0  ;;  %9522 = vmatprep.mubr.bf16.mxu0 %v3987_v4  ;;  %v3988_v14 = vpack.c.bf16 %v3956_v5, %v3955_v25 }
 0x77a   :  { %v8594_v9 = vpop.f32.mrb[217].mxu0 }
 0x77b   :  { %v3918_v32 = vmul.f32 %v11448_v59, %v3879_v19  ;;  %v3880_v38 = vmax.f32 %v3828_v47, 0.0  ;;  %v8595_v15 = vadd.f32 %v8594_v9, %v8593_v2  ;;  %v8596_v16 = vpop.f32.mrb[218].mxu0  ;;  %v9800_v2 = vld [vmem:[%s11461_s13 + $0x68] sm:$0xff]  }
 0x77c   :  { %v8597_v34 = vpop.f32.mrb[219].mxu0  ;;  %8781 = vmatprep.subr.bf16.mxu0 %v9800_v2 }
 0x77d   :  { %v3957_v3 = vadd.f32 %v11453_v21, %v3918_v32  ;;  %v3919_v13 = vmul.f32 %v11448_v59, %v3880_v38  ;;  %v3672_v35 = vadd.f32 %v8595_v15, %v11437_v12  ;;  %v8598_v54 = vadd.f32 %v8597_v34, %v8596_v16  ;;  %4310 = vmatmul.mubr.bf16.gmra.mrb[12].mxu1 %v3985_v41  ;;  %v10047_v15 = vld [vmem:[%s11429_s2] ss:$0 sm:$0xff] }
 0x77e   :  { %4317 = vmatprep.mubr.bf16.mxu1 %v3988_v14  ;;  %v10046_v14 = vld [vmem:[%s11434_s6] ss:$0 sm:$0xff] }
 0x77f   :  { %v3958_v24 = vadd.f32 %v11453_v21, %v3919_v13  ;;  %v3833_v1 = vadd.f32 %v9480_v49, %v3672_v35  ;;  %v3675_v18 = vadd.f32 %v8598_v54, %v11437_v12  ;;  %v9484_v61 = vpop.f32.mrb[224].mxu1  ;;  %v3989_v25 = vpack.c.bf16 %v3957_v3, %v3956_v5  ;;  %v9801_v21 = vld [vmem:[%s11461_s13 + $0x28] sm:$0xff]  }
 0x780   :  { %v3840_v11 = vpop.f32.mrb[225].mxu1  ;;  %8782 = vmatpush3.bf16.msra.mxu0 %v9801_v21 }
 0x781   :  { %v3881_v37 = vmax.f32 %v3833_v1, 0.0  ;;  %v3836_v29 = vadd.f32 %v9481_v8, %v3675_v18  ;;  %v8599_v59 = vpop.f32.mrb[220].mxu0  ;;  %v9485_v45 = vpop.f32.mrb[226].mxu1  ;;  %9523 = vmatmul.mubr.bf16.gmra.mrb[248].mxu0 %v3989_v25  ;;  %v3990_v41 = vpack.c.bf16 %v3958_v24, %v3957_v3  ;;  %v9802_v8 = vld [vmem:[%s11461_s13 + $0x158] sm:$0xff]   ;;  %v10048_v3 = vld [vmem:[%s11442_s9] ss:$0 sm:$0xff] }
 0x782   :  { %v8600_v19 = vpop.f32.mrb[221].mxu0  ;;  %v3843_v47 = vpop.f32.mrb[227].mxu1  ;;  %8821 = vmatprep.subr.bf16.mxu1 %v9802_v8 }
 0x783   :  { %v3920_v49 = vmul.f32 %v10046_v14, %v3881_v37  ;;  %v3882_v9 = vmax.f32 %v3836_v29, 0.0  ;;  %v8601_v12 = vadd.f32 %v8600_v19, %v8599_v59  ;;  %v8602_v32 = vpop.f32.mrb[222].mxu0  ;;  %v9803_v37 = vld [vmem:[%s11461_s13 + $0x118] sm:$0xff]  }
 0x784   :  { %v8603_v5 = vpop.f32.mrb[223].mxu0  ;;  %8822 = vmatpush3.bf16.msra.mxu1 %v9803_v37 }
 0x785   :  { %v3921_v38 = vmul.f32 %v10046_v14, %v3882_v9  ;;  %v3680_v16 = vadd.f32 %v10047_v15, %v8601_v12  ;;  %v8604_v34 = vadd.f32 %v8603_v5, %v8602_v32  ;;  %4318 = vmatmul.mubr.bf16.gmra.mrb[16].mxu1 %v3987_v4  ;;  %v3959_v13 = vadd.f32 %v10048_v3, %v3920_v49  ;;  %v9804_v4 = vld [vmem:[%s11461_s13 + $0x70] sm:$0xff]  }
 0x786   :  { %4325 = vmatprep.mubr.bf16.mxu1 %v3990_v41  ;;  %v9805_v12 = vld [vmem:[%s11461_s13 + $0x30] sm:$0xff]   ;;  %8783 = vmatprep.subr.bf16.mxu0 %v9804_v4  ;;  %v9809_v4 = vld [vmem:[%s11461_s13 + $0x120] sm:$0xff]  }
 0x787   :  { %v3841_v35 = vadd.f32 %v3840_v11, %v3680_v16  ;;  %v3683_v54 = vadd.f32 %v10047_v15, %v8604_v34  ;;  %v3991_v1 = vpack.c.bf16 %v3959_v13, %v3958_v24  ;;  %v3960_v18 = vadd.f32 %v10048_v3, %v3921_v38  ;;  %8784 = vmatpush3.bf16.msra.mxu0 %v9805_v12 }
 0x789   :  { %v3883_v29 = vmax.f32 %v3841_v35, 0.0  ;;  %v3844_v59 = vadd.f32 %v3843_v47, %v3683_v54  ;;  %v8605_v19 = vpop.f32.mrb[224].mxu0  ;;  %9526 = vmatprep.mubr.bf16.mxu0 %v3991_v1  ;;  %v3992_v2 = vpack.c.bf16 %v3960_v18, %v3959_v13 }
 0x78a   :  { %v8606_v9 = vpop.f32.mrb[225].mxu0 }
 0x78b   :  { %v3922_v49 = vmul.f32 %v10046_v14, %v3883_v29  ;;  %v3884_v32 = vmax.f32 %v3844_v59, 0.0  ;;  %v8607_v41 = vadd.f32 %v8606_v9, %v8605_v19  ;;  %v8608_v5 = vpop.f32.mrb[226].mxu0  ;;  %v9806_v9 = vld [vmem:[%s11461_s13 + $0x78] sm:$0xff]  }
 0x78c   :  { %v8609_v21 = vpop.f32.mrb[227].mxu0  ;;  %8785 = vmatprep.subr.bf16.mxu0 %v9806_v9 }
 0x78d   :  { %v3923_v11 = vmul.f32 %v10046_v14, %v3884_v32  ;;  %v3688_v24 = vadd.f32 %v10047_v15, %v8607_v41  ;;  %v8610_v38 = vadd.f32 %v8609_v21, %v8608_v5  ;;  %4326 = vmatmul.mubr.bf16.gmra.mrb[20].mxu1 %v3989_v25  ;;  %v3961_v8 = vadd.f32 %v10048_v3, %v3922_v49  ;;  %v9817_v49 = vld [vmem:[%s11461_s13 + $0x170] sm:$0xff]   ;;  %v9821_v41 = vld [vmem:[%s11461_s13 + $0x178] sm:$0xff]   ;;  %v9825_v21 = vld [vmem:[%s11461_s13 + $0x240] sm:$0xff]  }
 0x78e   :  { %4333 = vmatprep.mubr.bf16.mxu1 %v3992_v2  ;;  %v9819_v32 = vld [vmem:[%s11461_s13 + $0x130] sm:$0xff]   ;;  %v9823_v5 = vld [vmem:[%s11461_s13 + $0x138] sm:$0xff]  }
 0x78f   :  { %v3849_v47 = vadd.f32 %v9484_v61, %v3688_v24  ;;  %v3691_v16 = vadd.f32 %v10047_v15, %v8610_v38  ;;  %v3993_v34 = vpack.c.bf16 %v3961_v8, %v3960_v18  ;;  %v3962_v13 = vadd.f32 %v10048_v3, %v3923_v11  ;;  %v9807_v15 = vld [vmem:[%s11461_s13 + $0x38] sm:$0xff]   ;;  %v9808_v18 = vld [vmem:[%s11461_s13 + $0x160] sm:$0xff]  }
 0x790   :  { %8786 = vmatpush3.bf16.msra.mxu0 %v9807_v15  ;;  %8823 = vmatprep.subr.bf16.mxu1 %v9808_v18 }
 0x791   :  { %v3885_v35 = vmax.f32 %v3849_v47, 0.0  ;;  %v3852_v54 = vadd.f32 %v9485_v45, %v3691_v16  ;;  %9527 = vmatmul.mubr.bf16.gmra.mrb[252].mxu0 %v3993_v34  ;;  %v3994_v37 = vpack.c.bf16 %v3962_v13, %v3961_v8  ;;  %8824 = vmatpush3.bf16.msra.mxu1 %v9809_v4 }
 0x793   :  { %v3924_v29 = vmul.f32 %v10046_v14, %v3885_v35  ;;  %v3886_v59 = vmax.f32 %v3852_v54, 0.0 }
 0x795   :  { %v3925_v19 = vmul.f32 %v10046_v14, %v3886_v59  ;;  %4334 = vmatmul.mubr.bf16.gmra.mrb[24].mxu1 %v3991_v1  ;;  %v3963_v25 = vadd.f32 %v10048_v3, %v3924_v29  ;;  %v9810_v14 = vld [vmem:[%s11461_s13 + $0xc0] sm:$0xff]   ;;  %v9815_v1 = vld [vmem:[%s11461_s13 + $0x128] sm:$0xff]  }
 0x796   :  { %4341 = vmatprep.mubr.bf16.mxu1 %v3994_v37  ;;  %8793 = vmatprep.subr.bf16.mxu0 %v9810_v14 }
 0x797   :  { %v3964_v2 = vadd.f32 %v10048_v3, %v3925_v19  ;;  %v3995_v61 = vpack.c.bf16 %v3963_v25, %v3962_v13  ;;  %v9813_v3 = vld [vmem:[%s11461_s13 + $0x168] sm:$0xff]   ;;  %v11581_v13 = vld [vmem:[%s7521_s17] ss:$0 sm:$0xff] }
 0x798   :  { %8825 = vmatprep.subr.bf16.mxu1 %v9813_v3 }
 0x799   :  { %v3997_v12 = vpack.c.bf16 %v11987_v57, %v3964_v2  ;;  %9530 = vmatprep.mubr.bf16.mxu0 %v3995_v61  ;;  %v3996_v45 = vpack.c.bf16 %v3964_v2, %v3963_v25  ;;  %8826 = vmatpush3.bf16.msra.mxu1 %v9815_v1 }
 0x79a   :  { %8827 = vmatprep.subr.bf16.mxu1 %v9817_v49 }
 0x79b   :  { %9531 = vmatmul.mubr.bf16.gmra.mrb[0].mxu0 %v3997_v12 }
 0x79d   :  { %4342 = vmatmul.mubr.bf16.gmra.mrb[28].mxu1 %v3993_v34 }
 0x79e   :  { %4349 = vmatprep.mubr.bf16.mxu1 %v3996_v45  ;;  %8828 = vmatpush3.bf16.msra.mxu1 %v9819_v32 }
 0x79f   :  { %8829 = vmatprep.subr.bf16.mxu1 %v9821_v41 }
 0x7a2   :  { %8830 = vmatpush3.bf16.msra.mxu1 %v9823_v5 }
 0x7a3   :  { %8859 = vmatprep.subr.bf16.mxu1 %v9825_v21 }
 0x7a5   :  { %4350 = vmatmul.mubr.bf16.gmra.mrb[32].mxu1 %v3995_v61 }
 0x800   :  { %v8651_v11 = vpop.f32.mrb[228].mxu1 }
 0x801   :  { %v8652_v24 = vpop.f32.mrb[229].mxu1 }
 0x802   :  { %v8653_v38 = vadd.f32 %v8652_v24, %v8651_v11  ;;  %v8654_v8 = vpop.f32.mrb[230].mxu1 }
 0x803   :  { %v8655_v47 = vpop.f32.mrb[231].mxu1 }
 0x804   :  { %v8656_v16 = vadd.f32 %v8655_v47, %v8654_v8  ;;  %v4232_v2 = vadd.f32 %v8653_v38, %v11581_v13 }
 0x806   :  { %v4235_v12 = vadd.f32 %v8656_v16, %v11581_v13 }
 0x808   :  { %v8657_v34 = vpop.f32.mrb[232].mxu1 }
 0x809   :  { %v8658_v35 = vpop.f32.mrb[233].mxu1 }
 0x80a   :  { %v8659_v54 = vadd.f32 %v8658_v35, %v8657_v34  ;;  %v8660_v37 = vpop.f32.mrb[234].mxu1  ;;  %v9811_v35 = vld [vmem:[%s11461_s13 + $0x80] sm:$0xff]  }
 0x80b   :  { %v8661_v29 = vpop.f32.mrb[235].mxu1 }
 0x80c   :  { %v8662_v59 = vadd.f32 %v8661_v29, %v8660_v37  ;;  %v4240_v19 = vadd.f32 %v8659_v54, %v11581_v13  ;;  %v9812_v37 = vld [vmem:[%s11461_s13 + $0xc8] sm:$0xff]  }
 0x80d   :  { %v9504_v25 = vpop.f32.mrb[228].mxu0 }
 0x80e   :  { %v11585_v61 = vadd.f32 %v9504_v25, %v4240_v19  ;;  %v4392_v9 = vpop.f32.mrb[229].mxu0  ;;  %v4243_v15 = vadd.f32 %v8662_v59, %v11581_v13  ;;  %v9814_v25 = vld [vmem:[%s11461_s13 + $0x88] sm:$0xff]  }
 0x80f   :  { %v4393_v18 = vadd.f32 %v4392_v9, %v4232_v2  ;;  %v9505_v4 = vpop.f32.mrb[230].mxu0 }
 0x810   :  { %v4404_v45 = vadd.f32 %v9505_v4, %v4243_v15  ;;  %v8663_v14 = vpop.f32.mrb[236].mxu1  ;;  %v4395_v3 = vpop.f32.mrb[231].mxu0  ;;  %v9816_v15 = vld [vmem:[%s11461_s13 + $0xd0] sm:$0xff]  }
 0x811   :  { %v4519_v1 = vadd.f32 %v4393_v18, %v10949_v53  ;;  %v4396_v49 = vadd.f32 %v4395_v3, %v4235_v12  ;;  %v8664_v32 = vpop.f32.mrb[237].mxu1 }
 0x812   :  { %v4522_v41 = vadd.f32 %v4404_v45, %v10968_v63  ;;  %v8665_v5 = vadd.f32 %v8664_v32, %v8663_v14  ;;  %v8666_v21 = vpop.f32.mrb[238].mxu1  ;;  %v9818_v32 = vld [vmem:[%s11461_s13 + $0x90] sm:$0xff]  }
 0x813   :  { %v4520_v11 = vadd.f32 %v4396_v49, %v10962_v20  ;;  %v8667_v24 = vpop.f32.mrb[239].mxu1  ;;  %v4551_v38 = vmax.f32 %v4519_v1, 0.0 }
 0x814   :  { %v8668_v8 = vadd.f32 %v8667_v24, %v8666_v21  ;;  %v4554_v47 = vmax.f32 %v4522_v41, 0.0  ;;  %v4248_v4 = vadd.f32 %v8665_v5, %v11581_v13  ;;  %v9820_v5 = vld [vmem:[%s11461_s13 + $0xd8] sm:$0xff]  }
 0x815   :  { %v4552_v16 = vmax.f32 %v4520_v11, 0.0  ;;  %v4583_v54 = vpack.c.bf16 %v4551_v38, %v4551_v38 }
 0x816   :  { %v4586_v29 = vpack.c.bf16 %v4554_v47, %v4554_v47  ;;  %v4251_v49 = vadd.f32 %v8668_v8, %v11581_v13 }
 0x817   :  { %v4584_v34 = vpack.c.bf16 %v4552_v16, %v4552_v16 }
 0x818   :  { %v8669_v53 = vpop.f32.mrb[240].mxu1 }
 0x819   :  { %v8670_v59 = vpop.f32.mrb[241].mxu1  ;;  %6702 = vmatprep.mubr.bf16.mxu0 %v4584_v34 }
 0x81a   :  { %v8671_v63 = vadd.f32 %v8670_v59, %v8669_v53  ;;  %v8672_v19 = vpop.f32.mrb[242].mxu1  ;;  %6703 = vmatmul.mubr.bf16.vlgmr.msra.gmra.mrb[4].mxu0 %v4583_v54  ;;  %v9822_v54 = vld [vmem:[%s11461_s13 + $0x98] sm:$0xff]  }
 0x81b   :  { %8794 = vmatpush3.bf16.msra.mxu0 %v9811_v35  ;;  %v8673_v20 = vpop.f32.mrb[243].mxu1  ;;  %6742 = vmatprep.mubr.bf16.mxu0 %v4586_v29  ;;  %v9824_v29 = vld [vmem:[%s11461_s13 + $0xe0] sm:$0xff]  }
 0x81c   :  { %v8674_v2 = vadd.f32 %v8673_v20, %v8672_v19  ;;  %v4256_v9 = vadd.f32 %v8671_v63, %v11581_v13  ;;  %8795 = vmatprep.subr.bf16.mxu0 %v9812_v37  ;;  %v9826_v63 = vld [vmem:[%s11461_s13 + $0xa0] sm:$0xff]  }
 0x81d   :  { %v9508_v18 = vpop.f32.mrb[232].mxu0 }
 0x81e   :  { %v11598_v12 = vadd.f32 %v9508_v18, %v4256_v9  ;;  %v4408_v45 = vpop.f32.mrb[233].mxu0  ;;  %v4259_v14 = vadd.f32 %v8674_v2, %v11581_v13  ;;  %v9829_v2 = vld [vmem:[%s11461_s13 + $0x248] sm:$0xff]  }
 0x81f   :  { %v4409_v3 = vadd.f32 %v4408_v45, %v4248_v4  ;;  %8796 = vmatpush3.bf16.msra.mxu0 %v9814_v25  ;;  %v9509_v1 = vpop.f32.mrb[234].mxu0  ;;  %v9830_v45 = vld [vmem:[%s11461_s13 + $0xa8] sm:$0xff]  }
 0x820   :  { %v11603_v41 = vadd.f32 %v9509_v1, %v4259_v14  ;;  %v8675_v21 = vpop.f32.mrb[244].mxu1  ;;  %v4411_v11 = vpop.f32.mrb[235].mxu0  ;;  %8797 = vmatprep.subr.bf16.mxu0 %v9816_v15  ;;  %v9831_v14 = vld [vmem:[%s11461_s13 + $0x208] sm:$0xff]  }
 0x821   :  { %v4523_v24 = vadd.f32 %v4409_v3, %v11006_v27  ;;  %v4412_v38 = vadd.f32 %v4411_v11, %v4251_v49  ;;  %v8676_v47 = vpop.f32.mrb[245].mxu1  ;;  %v9827_v27 = vld [vmem:[%s11461_s13 + $0x200] sm:$0xff]   ;;  %v9832_v49 = vld [vmem:[%s11461_s13 + $0xf0] sm:$0xff]  }
 0x822   :  { %v8677_v16 = vadd.f32 %v8676_v47, %v8675_v21  ;;  %v8678_v34 = vpop.f32.mrb[246].mxu1 }
 0x823   :  { %v4524_v35 = vadd.f32 %v4412_v38, %v11019_v40  ;;  %8798 = vmatpush3.bf16.msra.mxu0 %v9818_v32  ;;  %v8679_v8 = vpop.f32.mrb[247].mxu1  ;;  %v4555_v53 = vmax.f32 %v4523_v24, 0.0  ;;  %v9828_v40 = vld [vmem:[%s11461_s13 + $0xe8] sm:$0xff]   ;;  %v9833_v32 = vld [vmem:[%s11461_s13 + $0x250] sm:$0xff]  }
 0x824   :  { %v8680_v37 = vadd.f32 %v8679_v8, %v8678_v34  ;;  %8799 = vmatprep.subr.bf16.mxu0 %v9820_v5  ;;  %v4264_v11 = vadd.f32 %v8677_v16, %v11581_v13  ;;  %v9834_v8 = vld [vmem:[%s11461_s13 + $0xb0] sm:$0xff]  }
 0x825   :  { %v4556_v59 = vmax.f32 %v4524_v35, 0.0  ;;  %v4587_v20 = vpack.c.bf16 %v4555_v53, %v4555_v53  ;;  %v4521_v53 = vadd.f32 %v11585_v61, %v10955_v62 }
 0x826   :  { %v4267_v35 = vadd.f32 %v8680_v37, %v11581_v13 }
 0x827   :  { %v4588_v19 = vpack.c.bf16 %v4556_v59, %v4556_v59  ;;  %8800 = vmatpush3.bf16.msra.mxu0 %v9822_v54  ;;  %v9835_v54 = vld [vmem:[%s11461_s13 + $0x210] sm:$0xff]  }
 0x828   :  { %v8681_v25 = vpop.f32.mrb[248].mxu1  ;;  %8801 = vmatprep.subr.bf16.mxu0 %v9824_v29 }
 0x829   :  { %v8682_v9 = vpop.f32.mrb[249].mxu1  ;;  %6782 = vmatprep.mubr.bf16.mxu1 %v4588_v19  ;;  %v9837_v19 = vld [vmem:[%s11461_s13 + $0x258] sm:$0xff]  }
 0x82a   :  { %v8683_v15 = vadd.f32 %v8682_v9, %v8681_v25  ;;  %v8684_v18 = vpop.f32.mrb[250].mxu1  ;;  %6783 = vmatmul.mubr.bf16.vlgmr.msra.gmra.mrb[36].mxu1 %v4587_v20  ;;  %v9839_v9 = vld [vmem:[%s11461_s13 + $0x218] sm:$0xff]  }
 0x82b   :  { %8802 = vmatpush3.bf16.msra.mxu0 %v9826_v63  ;;  %8860 = vmatpush3.bf16.msra.mxu1 %v9827_v27  ;;  %v8685_v4 = vpop.f32.mrb[251].mxu1  ;;  %v9836_v63 = vld [vmem:[%s11461_s13 + $0xf8] sm:$0xff]   ;;  %v4526_v27 = vadd.f32 %v11603_v41, %v11026_v55  ;;  %v9840_v55 = vld [vmem:[%s11461_s13 + $0x1c0] sm:$0xff]  }
 0x82c   :  { %v8686_v3 = vadd.f32 %v8685_v4, %v8684_v18  ;;  %v4272_v1 = vadd.f32 %v8683_v15, %v11581_v13  ;;  %8803 = vmatprep.subr.bf16.mxu0 %v9828_v40  ;;  %8861 = vmatprep.subr.bf16.mxu1 %v9829_v2  ;;  %v9838_v2 = vld [vmem:[%s11461_s13 + $0xb8] sm:$0xff]   ;;  %v4553_v15 = vmax.f32 %v4521_v53, 0.0  ;;  %v9841_v41 = vld [vmem:[%s11461_s13 + $0x260] sm:$0xff]  }
 0x82d   :  { %v9512_v21 = vpop.f32.mrb[236].mxu0  ;;  %v4558_v4 = vmax.f32 %v4526_v27, 0.0  ;;  %v9849_v27 = vld [vmem:[%s11461_s13 + $0x270] sm:$0xff]  }
 0x82e   :  { %v11620_v5 = vadd.f32 %v9512_v21, %v4272_v1  ;;  %v4424_v24 = vpop.f32.mrb[237].mxu0  ;;  %v4275_v38 = vadd.f32 %v8686_v3, %v11581_v13  ;;  %v4585_v3 = vpack.c.bf16 %v4553_v15, %v4553_v15 }
 0x82f   :  { %v11623_v47 = vadd.f32 %v4424_v24, %v4264_v11  ;;  %8804 = vmatpush3.bf16.msra.mxu0 %v9830_v45  ;;  %8862 = vmatpush3.bf16.msra.mxu1 %v9831_v14  ;;  %v9513_v34 = vpop.f32.mrb[238].mxu0  ;;  %v4590_v21 = vpack.c.bf16 %v4558_v4, %v4558_v4  ;;  %v9845_v24 = vld [vmem:[%s11461_s13 + $0x268] sm:$0xff]   ;;  %v9852_v4 = vld [vmem:[%s11461_s13 + $0x1d8] sm:$0xff]  }
 0x830   :  { %v11630_v16 = vadd.f32 %v9513_v34, %v4275_v38  ;;  %v8687_v29 = vpop.f32.mrb[252].mxu1  ;;  %v4427_v59 = vpop.f32.mrb[239].mxu0  ;;  %8805 = vmatprep.subr.bf16.mxu0 %v9832_v49  ;;  %8863 = vmatprep.subr.bf16.mxu1 %v9833_v32  ;;  %v9843_v49 = vld [vmem:[%s11461_s13 + $0x220] sm:$0xff]   ;;  %v9844_v32 = vld [vmem:[%s11461_s13 + $0x1c8] sm:$0xff]  }
 0x831   :  { %v4428_v37 = vadd.f32 %v4427_v59, %v4267_v35  ;;  %v8688_v20 = vpop.f32.mrb[253].mxu1  ;;  %v9848_v59 = vld [vmem:[%s11461_s13 + $0x1d0] sm:$0xff]  }
 0x832   :  { %v8689_v25 = vadd.f32 %v8688_v20, %v8687_v29  ;;  %v8690_v40 = vpop.f32.mrb[254].mxu1  ;;  %v9847_v29 = vld [vmem:[%s11461_s13 + $0x228] sm:$0xff]  }
 0x833   :  { %v4528_v62 = vadd.f32 %v4428_v37, %v11073_v52  ;;  %8806 = vmatpush3.bf16.msra.mxu0 %v9834_v8  ;;  %8864 = vmatpush3.bf16.msra.mxu1 %v9835_v54  ;;  %v8691_v61 = vpop.f32.mrb[255].mxu1  ;;  %v9842_v52 = vld [vmem:[%s11461_s13 + $0x180] sm:$0xff]   ;;  %v9846_v8 = vld [vmem:[%s11461_s13 + $0x188] sm:$0xff]  }
 0x834   :  { %v8692_v18 = vadd.f32 %v8691_v61, %v8690_v40  ;;  %8807 = vmatprep.subr.bf16.mxu0 %v9836_v63  ;;  %8865 = vmatprep.subr.bf16.mxu1 %v9837_v19  ;;  %v4280_v19 = vadd.f32 %v8689_v25, %v11581_v13 }
 0x835   :  { %v4560_v45 = vmax.f32 %v4528_v62, 0.0 }
 0x837   :  { %v4592_v14 = vpack.c.bf16 %v4560_v45, %v4560_v45  ;;  %8808 = vmatpush3.bf16.msra.mxu0 %v9838_v2  ;;  %8866 = vmatpush3.bf16.msra.mxu1 %v9839_v9  ;;  %v4283_v2 = vadd.f32 %v8692_v18, %v11581_v13  ;;  %v9850_v9 = vld [vmem:[%s11461_s13 + $0x190] sm:$0xff]   ;;  %v4527_v45 = vadd.f32 %v11623_v47, %v11059_v23  ;;  %v9853_v18 = vld [vmem:[%s11461_s13 + $0x278] sm:$0xff]  }
 0x838   :  { %v8693_v1 = vpop.f32.mrb[0].mxu1  ;;  %8837 = vmatprep.subr.bf16.mxu0 %v9840_v55  ;;  %8867 = vmatprep.subr.bf16.mxu1 %v9841_v41  ;;  %v9851_v41 = vld [vmem:[%s11461_s13 + $0x230] sm:$0xff]  }
 0x839   :  { %v8694_v11 = vpop.f32.mrb[1].mxu1  ;;  %6862 = vmatprep.mubr.bf16.mxu1 %v4592_v14  ;;  %v4559_v23 = vmax.f32 %v4527_v45, 0.0  ;;  %v9862_v45 = vld [vmem:[%s11461_s13 + $0x1a8] sm:$0xff]  }
 0x83a   :  { %v8695_v38 = vadd.f32 %v8694_v11, %v8693_v1  ;;  %6743 = vmatmul.mubr.bf16.vlgmr.msra.gmra.mrb[8].mxu0 %v4585_v3  ;;  %v8696_v34 = vpop.f32.mrb[2].mxu1 }
 0x83b   :  { %8838 = vmatpush3.bf16.msra.mxu0 %v9842_v52  ;;  %6822 = vmatprep.mubr.bf16.mxu0 %v4590_v21  ;;  %v8697_v35 = vpop.f32.mrb[3].mxu1  ;;  %v9854_v21 = vld [vmem:[%s11461_s13 + $0x198] sm:$0xff]  }
 0x83c   :  { %8868 = vmatpush3.bf16.msra.mxu1 %v9843_v49  ;;  %v8698_v54 = vadd.f32 %v8697_v35, %v8696_v34  ;;  %v4288_v53 = vadd.f32 %v8695_v38, %v11581_v13  ;;  %8839 = vmatprep.subr.bf16.mxu0 %v9844_v32  ;;  %v9856_v38 = vld [vmem:[%s11461_s13 + $0x1e0] sm:$0xff]  }
 0x83d   :  { %v9516_v63 = vpop.f32.mrb[240].mxu0  ;;  %8869 = vmatprep.subr.bf16.mxu1 %v9845_v24  ;;  %v9855_v24 = vld [vmem:[%s11461_s13 + $0x238] sm:$0xff]   ;;  %v9857_v34 = vld [vmem:[%s11461_s13 + $0x340] sm:$0xff]  }
 0x83e   :  { %v11651_v37 = vadd.f32 %v9516_v63, %v4288_v53  ;;  %v4440_v20 = vpop.f32.mrb[241].mxu0  ;;  %v4291_v40 = vadd.f32 %v8698_v54, %v11581_v13  ;;  %v4591_v63 = vpack.c.bf16 %v4559_v23, %v4559_v23  ;;  %v9867_v23 = vld [vmem:[%s11461_s13 + $0x310] sm:$0xff]  }
 0x83f   :  { %v11654_v62 = vadd.f32 %v4440_v20, %v4280_v19  ;;  %8840 = vmatpush3.bf16.msra.mxu0 %v9846_v8  ;;  %v9517_v61 = vpop.f32.mrb[242].mxu0  ;;  %v9858_v8 = vld [vmem:[%s11461_s13 + $0x1a0] sm:$0xff]  }
 0x840   :  { %8870 = vmatpush3.bf16.msra.mxu1 %v9847_v29  ;;  %v11658_v15 = vadd.f32 %v9517_v61, %v4291_v40  ;;  %v8699_v25 = vpop.f32.mrb[4].mxu1  ;;  %v4443_v55 = vpop.f32.mrb[243].mxu0  ;;  %8841 = vmatprep.subr.bf16.mxu0 %v9848_v59  ;;  %v9859_v59 = vld [vmem:[%s11461_s13 + $0x300] sm:$0xff]   ;;  %v9860_v61 = vld [vmem:[%s11461_s13 + $0x1e8] sm:$0xff]  }
 0x841   :  { %v4444_v14 = vadd.f32 %v4443_v55, %v4283_v2  ;;  %v8700_v52 = vpop.f32.mrb[5].mxu1  ;;  %8871 = vmatprep.subr.bf16.mxu1 %v9849_v27  ;;  %v9861_v2 = vld [vmem:[%s11461_s13 + $0x348] sm:$0xff]  }
 0x842   :  { %v8701_v3 = vadd.f32 %v8700_v52, %v8699_v25  ;;  %v8702_v1 = vpop.f32.mrb[6].mxu1 }
 0x843   :  { %v4532_v49 = vadd.f32 %v4444_v14, %v11115_v48  ;;  %8842 = vmatpush3.bf16.msra.mxu0 %v9850_v9  ;;  %v8703_v32 = vpop.f32.mrb[7].mxu1 }
 0x844   :  { %8872 = vmatpush3.bf16.msra.mxu1 %v9851_v41  ;;  %v8704_v11 = vadd.f32 %v8703_v32, %v8702_v1  ;;  %8843 = vmatprep.subr.bf16.mxu0 %v9852_v4  ;;  %v4296_v48 = vadd.f32 %v8701_v3, %v11581_v13  ;;  %v9864_v3 = vld [vmem:[%s11461_s13 + $0x1f0] sm:$0xff]  }
 0x845   :  { %v4564_v47 = vmax.f32 %v4532_v49, 0.0  ;;  %8873 = vmatprep.subr.bf16.mxu1 %v9853_v18  ;;  %v9863_v18 = vld [vmem:[%s11461_s13 + $0x308] sm:$0xff]   ;;  %v9865_v1 = vld [vmem:[%s11461_s13 + $0x350] sm:$0xff]  }
 0x846   :  { %v4299_v40 = vadd.f32 %v8704_v11, %v11581_v13  ;;  %v4525_v11 = vadd.f32 %v11598_v12, %v11012_v51  ;;  %v9870_v12 = vld [vmem:[%s11461_s13 + $0x1b8] sm:$0xff]  }
 0x847   :  { %8844 = vmatpush3.bf16.msra.mxu0 %v9854_v21  ;;  %v9520_v35 = vpop.f32.mrb[244].mxu0  ;;  %v4596_v54 = vpack.c.bf16 %v4564_v47, %v4564_v47  ;;  %v9866_v21 = vld [vmem:[%s11461_s13 + $0x1b0] sm:$0xff]   ;;  %v9868_v47 = vld [vmem:[%s11461_s13 + $0x1f8] sm:$0xff]  }
 0x848   :  { %8874 = vmatpush3.bf16.msra.mxu1 %v9855_v24  ;;  %v8705_v53 = vpop.f32.mrb[8].mxu1  ;;  %v4456_v29 = vpop.f32.mrb[245].mxu0  ;;  %8845 = vmatprep.subr.bf16.mxu0 %v9856_v38 }
 0x849   :  { %v11673_v19 = vadd.f32 %v4456_v29, %v4296_v48  ;;  %v8706_v27 = vpop.f32.mrb[9].mxu1  ;;  %v9521_v20 = vpop.f32.mrb[246].mxu0  ;;  %8903 = vmatprep.subr.bf16.mxu1 %v9857_v34  ;;  %v4530_v34 = vadd.f32 %v11630_v16, %v11079_v36  ;;  %v9869_v48 = vld [vmem:[%s11461_s13 + $0x358] sm:$0xff]   ;;  %v9872_v36 = vld [vmem:[%s11461_s13 + $0x2c0] sm:$0xff]  }
 0x84a   :  { %v8707_v9 = vadd.f32 %v8706_v27, %v8705_v53  ;;  %v8708_v25 = vpop.f32.mrb[10].mxu1  ;;  %v4459_v55 = vpop.f32.mrb[247].mxu0  ;;  %v4557_v53 = vmax.f32 %v4525_v11, 0.0  ;;  %v9871_v27 = vld [vmem:[%s11461_s13 + $0x318] sm:$0xff]  }
 0x84b   :  { %6863 = vmatmul.mubr.bf16.vlgmr.msra.gmra.mrb[40].mxu1 %v4591_v63  ;;  %v11678_v41 = vadd.f32 %v4459_v55, %v4299_v40  ;;  %8846 = vmatpush3.bf16.msra.mxu0 %v9858_v8  ;;  %v8709_v4 = vpop.f32.mrb[11].mxu1  ;;  %v4562_v16 = vmax.f32 %v4530_v34, 0.0  ;;  %v9873_v40 = vld [vmem:[%s11461_s13 + $0x360] sm:$0xff]  }
 0x84c   :  { %v4304_v14 = vadd.f32 %v8707_v9, %v11581_v13  ;;  %8904 = vmatpush3.bf16.msra.mxu1 %v9859_v59  ;;  %6942 = vmatprep.mubr.bf16.mxu1 %v4596_v54  ;;  %v8710_v52 = vadd.f32 %v8709_v4, %v8708_v25  ;;  %v9874_v55 = vld [vmem:[%s11461_s13 + $0x280] sm:$0xff]   ;;  %v4589_v4 = vpack.c.bf16 %v4557_v53, %v4557_v53 }
 0x84d   :  { %8847 = vmatprep.subr.bf16.mxu0 %v9860_v61  ;;  %8905 = vmatprep.subr.bf16.mxu1 %v9861_v2 }
 0x84e   :  { %v11685_v49 = vadd.f32 %v9520_v35, %v4304_v14  ;;  %v4307_v32 = vadd.f32 %v8710_v52, %v11581_v13  ;;  %v9875_v52 = vld [vmem:[%s11461_s13 + $0x320] sm:$0xff]  }
 0x84f   :  { %8848 = vmatpush3.bf16.msra.mxu0 %v9862_v45 }
 0x850   :  { %v11691_v24 = vadd.f32 %v9521_v20, %v4307_v32  ;;  %8906 = vmatpush3.bf16.msra.mxu1 %v9863_v18  ;;  %v8711_v38 = vpop.f32.mrb[12].mxu1  ;;  %8849 = vmatprep.subr.bf16.mxu0 %v9864_v3  ;;  %v9876_v18 = vld [vmem:[%s11461_s13 + $0x2c8] sm:$0xff]   ;;  %v4594_v3 = vpack.c.bf16 %v4562_v16, %v4562_v16 }
 0x851   :  { %v8712_v35 = vpop.f32.mrb[13].mxu1  ;;  %8907 = vmatprep.subr.bf16.mxu1 %v9865_v1  ;;  %v9877_v32 = vld [vmem:[%s11461_s13 + $0x368] sm:$0xff]  }
 0x852   :  { %v8713_v8 = vadd.f32 %v8712_v35, %v8711_v38  ;;  %v8714_v54 = vpop.f32.mrb[14].mxu1  ;;  %v9879_v35 = vld [vmem:[%s11461_s13 + $0x328] sm:$0xff]  }
 0x853   :  { %8850 = vmatpush3.bf16.msra.mxu0 %v9866_v21  ;;  %v8715_v51 = vpop.f32.mrb[15].mxu1 }
 0x854   :  { %8908 = vmatpush3.bf16.msra.mxu1 %v9867_v23  ;;  %v8716_v29 = vadd.f32 %v8715_v51, %v8714_v54  ;;  %v9524_v59 = vpop.f32.mrb[248].mxu0  ;;  %v4312_v63 = vadd.f32 %v8713_v8, %v11581_v13  ;;  %8851 = vmatprep.subr.bf16.mxu0 %v9868_v47  ;;  %v9878_v23 = vld [vmem:[%s11461_s13 + $0x288] sm:$0xff]   ;;  %v9881_v8 = vld [vmem:[%s11461_s13 + $0x370] sm:$0xff]  }
 0x855   :  { %v4472_v20 = vpop.f32.mrb[249].mxu0  ;;  %8909 = vmatprep.subr.bf16.mxu1 %v9869_v48  ;;  %v9880_v48 = vld [vmem:[%s11461_s13 + $0x2d0] sm:$0xff]  }
 0x856   :  { %v11703_v61 = vadd.f32 %v4472_v20, %v4312_v63  ;;  %v9525_v2 = vpop.f32.mrb[250].mxu0  ;;  %v4315_v9 = vadd.f32 %v8716_v29, %v11581_v13  ;;  %v9883_v63 = vld [vmem:[%s11461_s13 + $0x330] sm:$0xff]   ;;  %v4536_v20 = vadd.f32 %v11678_v41, %v11151_v6  ;;  %v9889_v6 = vld [vmem:[%s11461_s13 + $0x440] sm:$0xff]  }
 0x857   :  { %8852 = vmatpush3.bf16.msra.mxu0 %v9870_v12  ;;  %v4475_v25 = vpop.f32.mrb[251].mxu0  ;;  %v9882_v12 = vld [vmem:[%s11461_s13 + $0x290] sm:$0xff]  }
 0x858   :  { %8910 = vmatpush3.bf16.msra.mxu1 %v9871_v27  ;;  %v11707_v45 = vadd.f32 %v4475_v25, %v4315_v9  ;;  %v8717_v14 = vpop.f32.mrb[16].mxu1  ;;  %8881 = vmatprep.subr.bf16.mxu0 %v9872_v36  ;;  %v9884_v27 = vld [vmem:[%s11461_s13 + $0x2d8] sm:$0xff]   ;;  %v4531_v36 = vadd.f32 %v11654_v62, %v11102_v60  ;;  %v9888_v62 = vld [vmem:[%s11461_s13 + $0x2e0] sm:$0xff]   ;;  %v4568_v41 = vmax.f32 %v4536_v20, 0.0  ;;  %v9896_v20 = vld [vmem:[%s11461_s13 + $0x2f0] sm:$0xff]  }
 0x859   :  { %v8718_v1 = vpop.f32.mrb[17].mxu1  ;;  %8911 = vmatprep.subr.bf16.mxu1 %v9873_v40  ;;  %v9886_v25 = vld [vmem:[%s11461_s13 + $0x298] sm:$0xff]  }
 0x85a   :  { %v8719_v21 = vadd.f32 %v8718_v1, %v8717_v14  ;;  %6823 = vmatmul.mubr.bf16.vlgmr.msra.gmra.mrb[12].mxu0 %v4589_v4  ;;  %v8720_v11 = vpop.f32.mrb[18].mxu1  ;;  %v9887_v60 = vld [vmem:[%s11461_s13 + $0x338] sm:$0xff]  }
 0x85b   :  { %8882 = vmatpush3.bf16.msra.mxu0 %v9874_v55  ;;  %6902 = vmatprep.mubr.bf16.mxu0 %v4594_v3  ;;  %v8721_v38 = vpop.f32.mrb[19].mxu1 }
 0x85c   :  { %v4320_v47 = vadd.f32 %v8719_v21, %v11581_v13  ;;  %8912 = vmatpush3.bf16.msra.mxu1 %v9875_v52  ;;  %v8722_v34 = vadd.f32 %v8721_v38, %v8720_v11  ;;  %8883 = vmatprep.subr.bf16.mxu0 %v9876_v18  ;;  %v4563_v52 = vmax.f32 %v4531_v36, 0.0  ;;  %v9890_v11 = vld [vmem:[%s11461_s13 + $0x2a0] sm:$0xff]  }
 0x85d   :  { %8913 = vmatprep.subr.bf16.mxu1 %v9877_v32 }
 0x85e   :  { %v11717_v54 = vadd.f32 %v9524_v59, %v4320_v47  ;;  %v4323_v51 = vadd.f32 %v8722_v34, %v11581_v13  ;;  %v9885_v59 = vld [vmem:[%s11461_s13 + $0x378] sm:$0xff]   ;;  %v9891_v47 = vld [vmem:[%s11461_s13 + $0x400] sm:$0xff]   ;;  %v4595_v34 = vpack.c.bf16 %v4563_v52, %v4563_v52 }
 0x85f   :  { %8884 = vmatpush3.bf16.msra.mxu0 %v9878_v23 }
 0x860   :  { %v11721_v53 = vadd.f32 %v9525_v2, %v4323_v51  ;;  %8914 = vmatpush3.bf16.msra.mxu1 %v9879_v35  ;;  %v8723_v29 = vpop.f32.mrb[20].mxu1  ;;  %8885 = vmatprep.subr.bf16.mxu0 %v9880_v48  ;;  %v9892_v48 = vld [vmem:[%s11461_s13 + $0x2e8] sm:$0xff]   ;;  %v4600_v51 = vpack.c.bf16 %v4568_v41, %v4568_v41  ;;  %v4534_v41 = vadd.f32 %v11658_v15, %v11121_v50  ;;  %v9903_v50 = vld [vmem:[%s11461_s13 + $0x418] sm:$0xff]   ;;  %v9904_v15 = vld [vmem:[%s11461_s13 + $0x3c0] sm:$0xff]  }
 0x861   :  { %v8724_v16 = vpop.f32.mrb[21].mxu1  ;;  %8915 = vmatprep.subr.bf16.mxu1 %v9881_v8  ;;  %v9893_v8 = vld [vmem:[%s11461_s13 + $0x448] sm:$0xff]  }
 0x862   :  { %v8725_v40 = vadd.f32 %v8724_v16, %v8723_v29  ;;  %v8726_v2 = vpop.f32.mrb[22].mxu1 }
 0x863   :  { %8886 = vmatpush3.bf16.msra.mxu0 %v9882_v12  ;;  %v8727_v9 = vpop.f32.mrb[23].mxu1 }
 0x864   :  { %8916 = vmatpush3.bf16.msra.mxu1 %v9883_v63  ;;  %v8728_v55 = vadd.f32 %v8727_v9, %v8726_v2  ;;  %v9528_v4 = vpop.f32.mrb[252].mxu0  ;;  %v4328_v14 = vadd.f32 %v8725_v40, %v11581_v13  ;;  %8887 = vmatprep.subr.bf16.mxu0 %v9884_v27  ;;  %v9894_v27 = vld [vmem:[%s11461_s13 + $0x2a8] sm:$0xff]   ;;  %v9897_v40 = vld [vmem:[%s11461_s13 + $0x450] sm:$0xff]  }
 0x865   :  { %v4488_v18 = vpop.f32.mrb[253].mxu0  ;;  %8917 = vmatprep.subr.bf16.mxu1 %v9885_v59  ;;  %v9895_v59 = vld [vmem:[%s11461_s13 + $0x408] sm:$0xff]  }
 0x866   :  { %v11735_v3 = vadd.f32 %v4488_v18, %v4328_v14  ;;  %v9529_v1 = vpop.f32.mrb[254].mxu0  ;;  %v4331_v32 = vadd.f32 %v8728_v55, %v11581_v13  ;;  %v9898_v14 = vld [vmem:[%s11461_s13 + $0x2b0] sm:$0xff]  }
 0x867   :  { %8888 = vmatpush3.bf16.msra.mxu0 %v9886_v25  ;;  %v4491_v21 = vpop.f32.mrb[255].mxu0 }
 0x868   :  { %8918 = vmatpush3.bf16.msra.mxu1 %v9887_v60  ;;  %v11739_v38 = vadd.f32 %v4491_v21, %v4331_v32  ;;  %v8729_v23 = vpop.f32.mrb[24].mxu1  ;;  %8889 = vmatprep.subr.bf16.mxu0 %v9888_v62  ;;  %v4529_v60 = vadd.f32 %v11620_v5, %v11066_v56 }
 0x869   :  { %v8730_v35 = vpop.f32.mrb[25].mxu1  ;;  %8947 = vmatprep.subr.bf16.mxu1 %v9889_v6  ;;  %v9899_v6 = vld [vmem:[%s11461_s13 + $0x410] sm:$0xff]  }
 0x86a   :  { %v8731_v12 = vadd.f32 %v8730_v35, %v8729_v23  ;;  %v8732_v29 = vpop.f32.mrb[26].mxu1  ;;  %v9902_v23 = vld [vmem:[%s11461_s13 + $0x2b8] sm:$0xff]  }
 0x86b   :  { %6943 = vmatmul.mubr.bf16.vlgmr.msra.gmra.mrb[44].mxu1 %v4595_v34  ;;  %8890 = vmatpush3.bf16.msra.mxu0 %v9890_v11  ;;  %v8733_v63 = vpop.f32.mrb[27].mxu1  ;;  %v9901_v11 = vld [vmem:[%s11461_s13 + $0x458] sm:$0xff]  }
 0x86c   :  { %v4336_v36 = vadd.f32 %v8731_v12, %v11581_v13  ;;  %8948 = vmatpush3.bf16.msra.mxu1 %v9891_v47  ;;  %7022 = vmatprep.mubr.bf16.mxu1 %v4600_v51  ;;  %v8734_v16 = vadd.f32 %v8733_v63, %v8732_v29  ;;  %v4561_v47 = vmax.f32 %v4529_v60, 0.0  ;;  %v9906_v29 = vld [vmem:[%s11461_s13 + $0x380] sm:$0xff]  }
 0x86d   :  { %8891 = vmatprep.subr.bf16.mxu0 %v9892_v48  ;;  %8949 = vmatprep.subr.bf16.mxu1 %v9893_v8  ;;  %v4566_v48 = vmax.f32 %v4534_v41, 0.0  ;;  %v9905_v8 = vld [vmem:[%s11461_s13 + $0x460] sm:$0xff]   ;;  %v9911_v41 = vld [vmem:[%s11461_s13 + $0x428] sm:$0xff]  }
 0x86e   :  { %v11749_v2 = vadd.f32 %v9528_v4, %v4336_v36  ;;  %v4339_v9 = vadd.f32 %v8734_v16, %v11581_v13  ;;  %v9532_v25 = vpop.f32.mrb[0].mxu0  ;;  %v9900_v4 = vld [vmem:[%s11461_s13 + $0x2f8] sm:$0xff]   ;;  %v4593_v63 = vpack.c.bf16 %v4561_v47, %v4561_v47  ;;  %v9907_v16 = vld [vmem:[%s11461_s13 + $0x420] sm:$0xff]  }
 0x86f   :  { %8892 = vmatpush3.bf16.msra.mxu0 %v9894_v27  ;;  %v4504_v55 = vpop.f32.mrb[1].mxu0  ;;  %v9916_v47 = vld [vmem:[%s11461_s13 + $0x3d8] sm:$0xff]  }
 0x870   :  { %v11755_v62 = vadd.f32 %v9529_v1, %v4339_v9  ;;  %8950 = vmatpush3.bf16.msra.mxu1 %v9895_v59  ;;  %v8735_v52 = vpop.f32.mrb[28].mxu1  ;;  %v9533_v18 = vpop.f32.mrb[2].mxu0  ;;  %8893 = vmatprep.subr.bf16.mxu0 %v9896_v20  ;;  %v9908_v59 = vld [vmem:[%s11461_s13 + $0x3c8] sm:$0xff]   ;;  %v4598_v20 = vpack.c.bf16 %v4566_v48, %v4566_v48  ;;  %v9921_v48 = vld [vmem:[%s11461_s13 + $0x540] sm:$0xff]  }
 0x871   :  { %v8736_v32 = vpop.f32.mrb[29].mxu1  ;;  %v4507_v21 = vpop.f32.mrb[3].mxu0  ;;  %8951 = vmatprep.subr.bf16.mxu1 %v9897_v40  ;;  %v9909_v9 = vld [vmem:[%s11461_s13 + $0x468] sm:$0xff]  }
 0x872   :  { %v8737_v56 = vadd.f32 %v8736_v32, %v8735_v52  ;;  %v8738_v5 = vpop.f32.mrb[30].mxu1  ;;  %v9910_v52 = vld [vmem:[%s11461_s13 + $0x388] sm:$0xff]   ;;  %v9912_v32 = vld [vmem:[%s11461_s13 + $0x3d0] sm:$0xff]  }
 0x873   :  { %8894 = vmatpush3.bf16.msra.mxu0 %v9898_v14  ;;  %v8739_v1 = vpop.f32.mrb[31].mxu1 }
 0x874   :  { %v4344_v34 = vadd.f32 %v8737_v56, %v11581_v13  ;;  %8952 = vmatpush3.bf16.msra.mxu1 %v9899_v6  ;;  %v8740_v35 = vadd.f32 %v8739_v1, %v8738_v5  ;;  %8895 = vmatprep.subr.bf16.mxu0 %v9900_v4  ;;  %v9914_v5 = vld [vmem:[%s11461_s13 + $0x390] sm:$0xff]  }
 0x875   :  { %8953 = vmatprep.subr.bf16.mxu1 %v9901_v11 }
 0x876   :  { %v11767_v51 = vadd.f32 %v4504_v55, %v4344_v34  ;;  %v4347_v12 = vadd.f32 %v8740_v35, %v11581_v13  ;;  %v4535_v34 = vadd.f32 %v11673_v19, %v11142_v0  ;;  %v9918_v35 = vld [vmem:[%s11461_s13 + $0x398] sm:$0xff]   ;;  %v9922_v0 = vld [vmem:[%s11461_s13 + $0x3a0] sm:$0xff]  }
 0x877   :  { %8896 = vmatpush3.bf16.msra.mxu0 %v9902_v23  ;;  %v9915_v23 = vld [vmem:[%s11461_s13 + $0x430] sm:$0xff]  }
 0x878   :  { %v11771_v27 = vadd.f32 %v4507_v21, %v4347_v12  ;;  %8954 = vmatpush3.bf16.msra.mxu1 %v9903_v50  ;;  %v8741_v36 = vpop.f32.mrb[32].mxu1  ;;  %8925 = vmatprep.subr.bf16.mxu0 %v9904_v15  ;;  %v9913_v21 = vld [vmem:[%s11461_s13 + $0x470] sm:$0xff]   ;;  %v9920_v50 = vld [vmem:[%s11461_s13 + $0x3e0] sm:$0xff]   ;;  %v4567_v15 = vmax.f32 %v4535_v34, 0.0  ;;  %v9925_v12 = vld [vmem:[%s11461_s13 + $0x548] sm:$0xff]  }
 0x879   :  { %v8742_v40 = vpop.f32.mrb[33].mxu1  ;;  %8955 = vmatprep.subr.bf16.mxu1 %v9905_v8  ;;  %v9944_v34 = vld [vmem:[%s11461_s13 + $0x4d0] sm:$0xff]  }
 0x87a   :  { %v8743_v55 = vadd.f32 %v8742_v40, %v8741_v36  ;;  %6903 = vmatmul.mubr.bf16.vlgmr.msra.gmra.mrb[16].mxu0 %v4593_v63  ;;  %v8744_v14 = vpop.f32.mrb[34].mxu1  ;;  %v4599_v19 = vpack.c.bf16 %v4567_v15, %v4567_v15  ;;  %v9926_v63 = vld [vmem:[%s11461_s13 + $0x3a8] sm:$0xff]   ;;  %v4533_v40 = vadd.f32 %v11651_v37, %v11108_v31  ;;  %v9935_v31 = vld [vmem:[%s11461_s13 + $0x518] sm:$0xff]   ;;  %v9936_v37 = vld [vmem:[%s11461_s13 + $0x4c0] sm:$0xff]  }
 0x87b   :  { %8926 = vmatpush3.bf16.msra.mxu0 %v9906_v29  ;;  %6982 = vmatprep.mubr.bf16.mxu0 %v4598_v20  ;;  %v8745_v60 = vpop.f32.mrb[35].mxu1  ;;  %v9927_v36 = vld [vmem:[%s11461_s13 + $0x508] sm:$0xff]   ;;  %v9930_v20 = vld [vmem:[%s11461_s13 + $0x3b0] sm:$0xff]   ;;  %v9949_v15 = vld [vmem:[%s11461_s13 + $0x578] sm:$0xff]  }
 0x87c   :  { %v4352_v6 = vadd.f32 %v8743_v55, %v11581_v13  ;;  %8956 = vmatpush3.bf16.msra.mxu1 %v9907_v16  ;;  %v8746_v4 = vadd.f32 %v8745_v60, %v8744_v14  ;;  %8927 = vmatprep.subr.bf16.mxu0 %v9908_v59  ;;  %v9928_v16 = vld [vmem:[%s11461_s13 + $0x3f0] sm:$0xff]   ;;  %v9932_v55 = vld [vmem:[%s11461_s13 + $0x3f8] sm:$0xff]   ;;  %v4538_v60 = vadd.f32 %v11691_v24, %v11156_v26  ;;  %v9939_v26 = vld [vmem:[%s11461_s13 + $0x520] sm:$0xff]  }
 0x87d   :  { %8957 = vmatprep.subr.bf16.mxu1 %v9909_v9  ;;  %v9929_v59 = vld [vmem:[%s11461_s13 + $0x550] sm:$0xff]   ;;  %v9933_v14 = vld [vmem:[%s11461_s13 + $0x558] sm:$0xff]   ;;  %v9940_v24 = vld [vmem:[%s11461_s13 + $0x4c8] sm:$0xff]  }
 0x87e   :  { %v11781_v11 = vadd.f32 %v9532_v25, %v4352_v6  ;;  %v4355_v56 = vadd.f32 %v8746_v4, %v11581_v13  ;;  %v9917_v25 = vld [vmem:[%s11461_s13 + $0x478] sm:$0xff]   ;;  %v4540_v13 = vadd.f32 %v11707_v45, %v11187_v43  ;;  %v9923_v43 = vld [vmem:[%s11461_s13 + $0x500] sm:$0xff]   ;;  %v9924_v45 = vld [vmem:[%s11461_s13 + $0x3e8] sm:$0xff]   ;;  %v4565_v6 = vmax.f32 %v4533_v40, 0.0 }
 0x87f   :  { %8928 = vmatpush3.bf16.msra.mxu0 %v9910_v52  ;;  %v9931_v9 = vld [vmem:[%s11461_s13 + $0x510] sm:$0xff]   ;;  %v9934_v52 = vld [vmem:[%s11461_s13 + $0x3b8] sm:$0xff]   ;;  %v9937_v4 = vld [vmem:[%s11461_s13 + $0x560] sm:$0xff]  }
 0x880   :  { %v11785_v1 = vadd.f32 %v9533_v18, %v4355_v56  ;;  %8958 = vmatpush3.bf16.msra.mxu1 %v9911_v41  ;;  %8929 = vmatprep.subr.bf16.mxu0 %v9912_v32  ;;  %v9919_v18 = vld [vmem:[%s11461_s13 + $0x438] sm:$0xff]   ;;  %v4572_v8 = vmax.f32 %v4540_v13, 0.0  ;;  %v4570_v41 = vmax.f32 %v4538_v60, 0.0  ;;  %v9938_v32 = vld [vmem:[%s11461_s13 + $0x480] sm:$0xff]   ;;  %v9946_v13 = vld [vmem:[%s11461_s13 + $0x490] sm:$0xff]  }
 0x881   :  { %8959 = vmatprep.subr.bf16.mxu1 %v9913_v21  ;;  %v4597_v21 = vpack.c.bf16 %v4565_v6, %v4565_v6  ;;  %v9962_v40 = vld [vmem:[%s11461_s13 + $0x4b0] sm:$0xff]   ;;  %v9965_v60 = vld [vmem:[%s11461_s13 + $0x658] sm:$0xff]  }
 0x882   :  { %v4604_v29 = vpack.c.bf16 %v4572_v8, %v4572_v8  ;;  %v4602_v56 = vpack.c.bf16 %v4570_v41, %v4570_v41  ;;  %v9950_v8 = vld [vmem:[%s11461_s13 + $0x498] sm:$0xff]   ;;  %v9970_v41 = vld [vmem:[%s11461_s13 + $0x580] sm:$0xff]  }
 0x883   :  { %8930 = vmatpush3.bf16.msra.mxu0 %v9914_v5  ;;  %v9941_v5 = vld [vmem:[%s11461_s13 + $0x568] sm:$0xff]   ;;  %v9966_v6 = vld [vmem:[%s11461_s13 + $0x4b8] sm:$0xff]  }
 0x884   :  { %8960 = vmatpush3.bf16.msra.mxu1 %v9915_v23  ;;  %8931 = vmatprep.subr.bf16.mxu0 %v9916_v47  ;;  %v9942_v23 = vld [vmem:[%s11461_s13 + $0x488] sm:$0xff]  }
 0x885   :  { %8961 = vmatprep.subr.bf16.mxu1 %v9917_v25  ;;  %v9943_v47 = vld [vmem:[%s11461_s13 + $0x528] sm:$0xff]   ;;  %v9945_v25 = vld [vmem:[%s11461_s13 + $0x570] sm:$0xff]  }
 0x887   :  { %8932 = vmatpush3.bf16.msra.mxu0 %v9918_v35  ;;  %v9947_v35 = vld [vmem:[%s11461_s13 + $0x530] sm:$0xff]  }
 0x888   :  { %8962 = vmatpush3.bf16.msra.mxu1 %v9919_v18  ;;  %8933 = vmatprep.subr.bf16.mxu0 %v9920_v50  ;;  %v9948_v18 = vld [vmem:[%s11461_s13 + $0x4d8] sm:$0xff]   ;;  %v4539_v50 = vadd.f32 %v11703_v61, %v11177_v7  ;;  %v9954_v7 = vld [vmem:[%s11461_s13 + $0x4a0] sm:$0xff]  }
 0x889   :  { %8991 = vmatprep.subr.bf16.mxu1 %v9921_v48  ;;  %v4544_v48 = vadd.f32 %v11739_v38, %v11227_v44  ;;  %v9955_v44 = vld [vmem:[%s11461_s13 + $0x600] sm:$0xff]   ;;  %v9956_v38 = vld [vmem:[%s11461_s13 + $0x4e8] sm:$0xff]  }
 0x88b   :  { %7023 = vmatmul.mubr.bf16.vlgmr.msra.gmra.mrb[48].mxu1 %v4599_v19  ;;  %8934 = vmatpush3.bf16.msra.mxu0 %v9922_v0  ;;  %v9951_v0 = vld [vmem:[%s11461_s13 + $0x538] sm:$0xff]   ;;  %v4571_v19 = vmax.f32 %v4539_v50, 0.0 }
 0x88c   :  { %8992 = vmatpush3.bf16.msra.mxu1 %v9923_v43  ;;  %7102 = vmatprep.mubr.bf16.mxu1 %v4604_v29  ;;  %v9952_v43 = vld [vmem:[%s11461_s13 + $0x4e0] sm:$0xff]   ;;  %v9957_v29 = vld [vmem:[%s11461_s13 + $0x648] sm:$0xff]   ;;  %v9982_v50 = vld [vmem:[%s11461_s13 + $0x598] sm:$0xff]  }
 0x88d   :  { %8935 = vmatprep.subr.bf16.mxu0 %v9924_v45  ;;  %8993 = vmatprep.subr.bf16.mxu1 %v9925_v12  ;;  %v9953_v45 = vld [vmem:[%s11461_s13 + $0x640] sm:$0xff]   ;;  %v4576_v12 = vmax.f32 %v4544_v48, 0.0  ;;  %v4603_v61 = vpack.c.bf16 %v4571_v19, %v4571_v19  ;;  %v9989_v19 = vld [vmem:[%s11461_s13 + $0x748] sm:$0xff]  }
 0x88e   :  { %v9984_v48 = vld [vmem:[%s11461_s13 + $0x5e0] sm:$0xff]  }
 0x88f   :  { %8936 = vmatpush3.bf16.msra.mxu0 %v9926_v63  ;;  %v4608_v63 = vpack.c.bf16 %v4576_v12, %v4576_v12  ;;  %v9990_v12 = vld [vmem:[%s11461_s13 + $0x5a8] sm:$0xff]  }
 0x890   :  { %8994 = vmatpush3.bf16.msra.mxu1 %v9927_v36  ;;  %8937 = vmatprep.subr.bf16.mxu0 %v9928_v16  ;;  %v9958_v36 = vld [vmem:[%s11461_s13 + $0x4a8] sm:$0xff]  }
 0x891   :  { %8995 = vmatprep.subr.bf16.mxu1 %v9929_v59  ;;  %v9959_v16 = vld [vmem:[%s11461_s13 + $0x608] sm:$0xff]   ;;  %v9960_v59 = vld [vmem:[%s11461_s13 + $0x4f0] sm:$0xff]  }
 0x893   :  { %8938 = vmatpush3.bf16.msra.mxu0 %v9930_v20  ;;  %v9961_v20 = vld [vmem:[%s11461_s13 + $0x650] sm:$0xff]  }
 0x894   :  { %8996 = vmatpush3.bf16.msra.mxu1 %v9931_v9  ;;  %8939 = vmatprep.subr.bf16.mxu0 %v9932_v55  ;;  %v4537_v9 = vadd.f32 %v11685_v49, %v11146_v39  ;;  %v9963_v55 = vld [vmem:[%s11461_s13 + $0x610] sm:$0xff]   ;;  %v9967_v39 = vld [vmem:[%s11461_s13 + $0x618] sm:$0xff]   ;;  %v9968_v49 = vld [vmem:[%s11461_s13 + $0x5c0] sm:$0xff]  }
 0x895   :  { %8997 = vmatprep.subr.bf16.mxu1 %v9933_v14  ;;  %v9964_v14 = vld [vmem:[%s11461_s13 + $0x4f8] sm:$0xff]  }
 0x897   :  { %8940 = vmatpush3.bf16.msra.mxu0 %v9934_v52  ;;  %v4542_v52 = vadd.f32 %v11721_v53, %v11192_v22  ;;  %v9971_v22 = vld [vmem:[%s11461_s13 + $0x620] sm:$0xff]   ;;  %v9972_v53 = vld [vmem:[%s11461_s13 + $0x5c8] sm:$0xff]  }
 0x898   :  { %8998 = vmatpush3.bf16.msra.mxu1 %v9935_v31  ;;  %8969 = vmatprep.subr.bf16.mxu0 %v9936_v37  ;;  %v4569_v31 = vmax.f32 %v4537_v9, 0.0  ;;  %v9969_v37 = vld [vmem:[%s11461_s13 + $0x660] sm:$0xff]  }
 0x899   :  { %8999 = vmatprep.subr.bf16.mxu1 %v9937_v4  ;;  %v4574_v4 = vmax.f32 %v4542_v52, 0.0  ;;  %v10001_v9 = vld [vmem:[%s11461_s13 + $0x760] sm:$0xff]  }
 0x89a   :  { %6983 = vmatmul.mubr.bf16.vlgmr.msra.gmra.mrb[20].mxu0 %v4597_v21 }
 0x89b   :  { %8970 = vmatpush3.bf16.msra.mxu0 %v9938_v32  ;;  %7062 = vmatprep.mubr.bf16.mxu0 %v4602_v56  ;;  %v4601_v32 = vpack.c.bf16 %v4569_v31, %v4569_v31  ;;  %v4606_v21 = vpack.c.bf16 %v4574_v4, %v4574_v4  ;;  %v9975_v56 = vld [vmem:[%s11461_s13 + $0x628] sm:$0xff]   ;;  %v10010_v4 = vld [vmem:[%s11461_s13 + $0x690] sm:$0xff]  }
 0x89c   :  { %9000 = vmatpush3.bf16.msra.mxu1 %v9939_v26  ;;  %8971 = vmatprep.subr.bf16.mxu0 %v9940_v24  ;;  %v9973_v26 = vld [vmem:[%s11461_s13 + $0x668] sm:$0xff]  }
 0x89d   :  { %9001 = vmatprep.subr.bf16.mxu1 %v9941_v5  ;;  %v9974_v24 = vld [vmem:[%s11461_s13 + $0x588] sm:$0xff]   ;;  %v9976_v5 = vld [vmem:[%s11461_s13 + $0x5d0] sm:$0xff]  }
 0x89e   :  { %v10006_v31 = vld [vmem:[%s11461_s13 + $0x688] sm:$0xff]  }
 0x89f   :  { %8972 = vmatpush3.bf16.msra.mxu0 %v9942_v23  ;;  %v9977_v23 = vld [vmem:[%s11461_s13 + $0x670] sm:$0xff]  }
 0x8a0   :  { %9002 = vmatpush3.bf16.msra.mxu1 %v9943_v47  ;;  %8973 = vmatprep.subr.bf16.mxu0 %v9944_v34  ;;  %v9978_v47 = vld [vmem:[%s11461_s13 + $0x590] sm:$0xff]  }
 0x8a1   :  { %9003 = vmatprep.subr.bf16.mxu1 %v9945_v25  ;;  %v9979_v34 = vld [vmem:[%s11461_s13 + $0x630] sm:$0xff]   ;;  %v9980_v25 = vld [vmem:[%s11461_s13 + $0x5d8] sm:$0xff]  }
 0x8a3   :  { %8974 = vmatpush3.bf16.msra.mxu0 %v9946_v13  ;;  %v4543_v13 = vadd.f32 %v11735_v3, %v11216_v46  ;;  %v9986_v46 = vld [vmem:[%s11461_s13 + $0x5a0] sm:$0xff]  }
 0x8a4   :  { %9004 = vmatpush3.bf16.msra.mxu1 %v9947_v35  ;;  %8975 = vmatprep.subr.bf16.mxu0 %v9948_v18  ;;  %v9981_v35 = vld [vmem:[%s11461_s13 + $0x678] sm:$0xff]   ;;  %v4548_v18 = vadd.f32 %v11771_v27, %v11257_v30  ;;  %v9987_v30 = vld [vmem:[%s11461_s13 + $0x700] sm:$0xff]   ;;  %v9988_v27 = vld [vmem:[%s11461_s13 + $0x5e8] sm:$0xff]  }
 0x8a5   :  { %9005 = vmatprep.subr.bf16.mxu1 %v9949_v15  ;;  %v9983_v15 = vld [vmem:[%s11461_s13 + $0x638] sm:$0xff]  }
 0x8a7   :  { %8976 = vmatpush3.bf16.msra.mxu0 %v9950_v8  ;;  %v4575_v8 = vmax.f32 %v4543_v13, 0.0 }
 0x8a8   :  { %9006 = vmatpush3.bf16.msra.mxu1 %v9951_v0  ;;  %8977 = vmatprep.subr.bf16.mxu0 %v9952_v43  ;;  %v9985_v0 = vld [vmem:[%s11461_s13 + $0x740] sm:$0xff]   ;;  %v4580_v43 = vmax.f32 %v4548_v18, 0.0 }
 0x8a9   :  { %9035 = vmatprep.subr.bf16.mxu1 %v9953_v45  ;;  %v4607_v3 = vpack.c.bf16 %v4575_v8, %v4575_v8  ;;  %v10022_v8 = vld [vmem:[%s11461_s13 + $0x6f8] sm:$0xff]  }
 0x8aa   :  { %v4612_v45 = vpack.c.bf16 %v4580_v43, %v4580_v43  ;;  %v10023_v43 = vld [vmem:[%s11461_s13 + $0x6b8] sm:$0xff]  }
 0x8ab   :  { %7103 = vmatmul.mubr.bf16.vlgmr.msra.gmra.mrb[52].mxu1 %v4603_v61  ;;  %8978 = vmatpush3.bf16.msra.mxu0 %v9954_v7  ;;  %v9991_v7 = vld [vmem:[%s11461_s13 + $0x708] sm:$0xff]   ;;  %v9993_v61 = vld [vmem:[%s11461_s13 + $0x750] sm:$0xff]  }
 0x8ac   :  { %9036 = vmatpush3.bf16.msra.mxu1 %v9955_v44  ;;  %7182 = vmatprep.mubr.bf16.mxu1 %v4608_v63  ;;  %v9992_v44 = vld [vmem:[%s11461_s13 + $0x5f0] sm:$0xff]  }
 0x8ad   :  { %8979 = vmatprep.subr.bf16.mxu0 %v9956_v38  ;;  %9037 = vmatprep.subr.bf16.mxu1 %v9957_v29  ;;  %v9994_v38 = vld [vmem:[%s11461_s13 + $0x5b0] sm:$0xff]   ;;  %v4541_v29 = vadd.f32 %v11717_v54, %v11181_v28  ;;  %v9999_v28 = vld [vmem:[%s11461_s13 + $0x718] sm:$0xff]   ;;  %v10000_v54 = vld [vmem:[%s11461_s13 + $0x6c0] sm:$0xff]  }
 0x8ae   :  { %v9995_v63 = vld [vmem:[%s11461_s13 + $0x710] sm:$0xff]  }
 0x8af   :  { %8980 = vmatpush3.bf16.msra.mxu0 %v9958_v36  ;;  %v9996_v36 = vld [vmem:[%s11461_s13 + $0x5f8] sm:$0xff]  }
 0x8b0   :  { %9038 = vmatpush3.bf16.msra.mxu1 %v9959_v16  ;;  %8981 = vmatprep.subr.bf16.mxu0 %v9960_v59  ;;  %v9997_v16 = vld [vmem:[%s11461_s13 + $0x758] sm:$0xff]   ;;  %v4546_v59 = vadd.f32 %v11755_v62, %v11233_v17  ;;  %v10003_v17 = vld [vmem:[%s11461_s13 + $0x720] sm:$0xff]   ;;  %v10004_v62 = vld [vmem:[%s11461_s13 + $0x6c8] sm:$0xff]  }
 0x8b1   :  { %9039 = vmatprep.subr.bf16.mxu1 %v9961_v20  ;;  %v9998_v20 = vld [vmem:[%s11461_s13 + $0x5b8] sm:$0xff]  }
 0x8b3   :  { %8982 = vmatpush3.bf16.msra.mxu0 %v9962_v40  ;;  %v4573_v40 = vmax.f32 %v4541_v29, 0.0  ;;  %v10030_v29 = vld [vmem:[%s11461_s13 + $0x7d8] sm:$0xff]  }
 0x8b4   :  { %9040 = vmatpush3.bf16.msra.mxu1 %v9963_v55  ;;  %8983 = vmatprep.subr.bf16.mxu0 %v9964_v14  ;;  %v4578_v55 = vmax.f32 %v4546_v59, 0.0  ;;  %v10002_v14 = vld [vmem:[%s11461_s13 + $0x680] sm:$0xff]   ;;  %v10034_v59 = vld [vmem:[%s11461_s13 + $0x7e8] sm:$0xff]  }
 0x8b5   :  { %9041 = vmatprep.subr.bf16.mxu1 %v9965_v60  ;;  %v4605_v60 = vpack.c.bf16 %v4573_v40, %v4573_v40  ;;  %v7737_v40 = vld [vmem:[%s7523_s21] ss:$0 sm:$0xff] }
 0x8b6   :  { %v4610_v52 = vpack.c.bf16 %v4578_v55, %v4578_v55 }
 0x8b7   :  { %8984 = vmatpush3.bf16.msra.mxu0 %v9966_v6  ;;  %v10005_v6 = vld [vmem:[%s11461_s13 + $0x768] sm:$0xff]  }
 0x8b8   :  { %9042 = vmatpush3.bf16.msra.mxu1 %v9967_v39  ;;  %9013 = vmatprep.subr.bf16.mxu0 %v9968_v49  ;;  %v10007_v39 = vld [vmem:[%s11461_s13 + $0x728] sm:$0xff]   ;;  %v10008_v49 = vld [vmem:[%s11461_s13 + $0x6d0] sm:$0xff]  }
 0x8b9   :  { %9043 = vmatprep.subr.bf16.mxu1 %v9969_v37  ;;  %v10009_v37 = vld [vmem:[%s11461_s13 + $0x770] sm:$0xff]  }
 0x8ba   :  { %7063 = vmatmul.mubr.bf16.vlgmr.msra.gmra.mrb[24].mxu0 %v4601_v32  ;;  %v10012_v32 = vld [vmem:[%s11461_s13 + $0x6d8] sm:$0xff]  }
 0x8bb   :  { %9014 = vmatpush3.bf16.msra.mxu0 %v9970_v41  ;;  %7142 = vmatprep.mubr.bf16.mxu0 %v4606_v21  ;;  %v10011_v41 = vld [vmem:[%s11461_s13 + $0x730] sm:$0xff]   ;;  %v10014_v21 = vld [vmem:[%s11461_s13 + $0x698] sm:$0xff]  }
 0x8bc   :  { %9044 = vmatpush3.bf16.msra.mxu1 %v9971_v22  ;;  %9015 = vmatprep.subr.bf16.mxu0 %v9972_v53  ;;  %v4547_v22 = vadd.f32 %v11767_v51, %v11250_v58  ;;  %v10013_v53 = vld [vmem:[%s11461_s13 + $0x778] sm:$0xff]   ;;  %v11997_v58 = vmov 0.0|0.0   ;;  %v10019_v51 = vld [vmem:[%s11461_s13 + $0x6a8] sm:$0xff]  }
 0x8bd   :  { %9045 = vmatprep.subr.bf16.mxu1 %v9973_v26  ;;  %v10015_v26 = vld [vmem:[%s11461_s13 + $0x738] sm:$0xff]  }
 0x8bf   :  { %9016 = vmatpush3.bf16.msra.mxu0 %v9974_v24  ;;  %v10016_v24 = vld [vmem:[%s11461_s13 + $0x6e0] sm:$0xff]  }
 0x8c0   :  { %9046 = vmatpush3.bf16.msra.mxu1 %v9975_v56  ;;  %9017 = vmatprep.subr.bf16.mxu0 %v9976_v5  ;;  %v4579_v56 = vmax.f32 %v4547_v22, 0.0  ;;  %v10017_v5 = vld [vmem:[%s11461_s13 + $0x6a0] sm:$0xff]  }
 0x8c1   :  { %9047 = vmatprep.subr.bf16.mxu1 %v9977_v23  ;;  %v10018_v23 = vld [vmem:[%s11461_s13 + $0x6e8] sm:$0xff]  }
 0x8c3   :  { %9018 = vmatpush3.bf16.msra.mxu0 %v9978_v47  ;;  %v4611_v47 = vpack.c.bf16 %v4579_v56, %v4579_v56 }
 0x8c4   :  { %9048 = vmatpush3.bf16.msra.mxu1 %v9979_v34  ;;  %9019 = vmatprep.subr.bf16.mxu0 %v9980_v25  ;;  %v10020_v34 = vld [vmem:[%s11461_s13 + $0x6f0] sm:$0xff]  }
 0x8c5   :  { %9049 = vmatprep.subr.bf16.mxu1 %v9981_v35 }
 0x8c7   :  { %9020 = vmatpush3.bf16.msra.mxu0 %v9982_v50  ;;  %v10021_v50 = vld [vmem:[%s11461_s13 + $0x6b0] sm:$0xff]  }
 0x8c8   :  { %9050 = vmatpush3.bf16.msra.mxu1 %v9983_v15  ;;  %9021 = vmatprep.subr.bf16.mxu0 %v9984_v48  ;;  %v4545_v15 = vadd.f32 %v11749_v2, %v11220_v10  ;;  %v10026_v10 = vld [vmem:[%s11461_s13 + $0x7c8] sm:$0xff]  }
 0x8c9   :  { %9079 = vmatprep.subr.bf16.mxu1 %v9985_v0  ;;  %v4550_v0 = vadd.f32 %v11785_v1, %v11266_v42  ;;  %v10027_v42 = vld [vmem:[%s11461_s13 + $0x788] sm:$0xff]   ;;  %v10028_v1 = vld [vmem:[%s11461_s13 + $0x7d0] sm:$0xff]  }
 0x8cb   :  { %7183 = vmatmul.mubr.bf16.vlgmr.msra.gmra.mrb[56].mxu1 %v4607_v3  ;;  %9022 = vmatpush3.bf16.msra.mxu0 %v9986_v46  ;;  %v4577_v46 = vmax.f32 %v4545_v15, 0.0  ;;  %v4582_v3 = vmax.f32 %v4550_v0, 0.0 }
 0x8cc   :  { %9080 = vmatpush3.bf16.msra.mxu1 %v9987_v30  ;;  %7262 = vmatprep.mubr.bf16.mxu1 %v4612_v45  ;;  %v10024_v30 = vld [vmem:[%s11461_s13 + $0x7c0] sm:$0xff]  }
 0x8cd   :  { %9023 = vmatprep.subr.bf16.mxu0 %v9988_v27  ;;  %9081 = vmatprep.subr.bf16.mxu1 %v9989_v19  ;;  %v10025_v27 = vld [vmem:[%s11461_s13 + $0x780] sm:$0xff]   ;;  %v4609_v19 = vpack.c.bf16 %v4577_v46, %v4577_v46  ;;  %v4614_v2 = vpack.c.bf16 %v4582_v3, %v4582_v3  ;;  %v7312_v46 = vld [vmem:[%s7524_s25 + $0x8] sm:$0xff] }
 0x8cf   :  { %9024 = vmatpush3.bf16.msra.mxu0 %v9990_v12 }
 0x8d0   :  { %9082 = vmatpush3.bf16.msra.mxu1 %v9991_v7  ;;  %9025 = vmatprep.subr.bf16.mxu0 %v9992_v44 }
 0x8d1   :  { %9083 = vmatprep.subr.bf16.mxu1 %v9993_v61  ;;  %v10029_v61 = vld [vmem:[%s11461_s13 + $0x790] sm:$0xff]  }
 0x8d3   :  { %9026 = vmatpush3.bf16.msra.mxu0 %v9994_v38 }
 0x8d4   :  { %9084 = vmatpush3.bf16.msra.mxu1 %v9995_v63  ;;  %9027 = vmatprep.subr.bf16.mxu0 %v9996_v36  ;;  %v10031_v63 = vld [vmem:[%s11461_s13 + $0x798] sm:$0xff]   ;;  %v10032_v36 = vld [vmem:[%s11461_s13 + $0x7e0] sm:$0xff]  }
 0x8d5   :  { %9085 = vmatprep.subr.bf16.mxu1 %v9997_v16  ;;  %v10033_v16 = vld [vmem:[%s11461_s13 + $0x7a0] sm:$0xff]  }
 0x8d7   :  { %9028 = vmatpush3.bf16.msra.mxu0 %v9998_v20  ;;  %v10035_v20 = vld [vmem:[%s11461_s13 + $0x7a8] sm:$0xff]  }
 0x8d8   :  { %9086 = vmatpush3.bf16.msra.mxu1 %v9999_v28  ;;  %9057 = vmatprep.subr.bf16.mxu0 %v10000_v54  ;;  %v10036_v28 = vld [vmem:[%s11461_s13 + $0x7f0] sm:$0xff]  }
 0x8d9   :  { %9087 = vmatprep.subr.bf16.mxu1 %v10001_v9 }
 0x8da   :  { %7143 = vmatmul.mubr.bf16.vlgmr.msra.gmra.mrb[28].mxu0 %v4605_v60 }
 0x8db   :  { %9058 = vmatpush3.bf16.msra.mxu0 %v10002_v14  ;;  %7222 = vmatprep.mubr.bf16.mxu0 %v4610_v52 }
 0x8dc   :  { %9088 = vmatpush3.bf16.msra.mxu1 %v10003_v17  ;;  %9059 = vmatprep.subr.bf16.mxu0 %v10004_v62  ;;  %v10037_v17 = vld [vmem:[%s11461_s13 + $0x7b0] sm:$0xff]   ;;  %v4549_v62 = vadd.f32 %v11781_v11, %v11263_v33 }
 0x8dd   :  { %9089 = vmatprep.subr.bf16.mxu1 %v10005_v6  ;;  %v10038_v6 = vld [vmem:[%s11461_s13 + $0x7f8] sm:$0xff]  }
 0x8df   :  { %9060 = vmatpush3.bf16.msra.mxu0 %v10006_v31 }
 0x8e0   :  { %9090 = vmatpush3.bf16.msra.mxu1 %v10007_v39  ;;  %9061 = vmatprep.subr.bf16.mxu0 %v10008_v49  ;;  %v10039_v39 = vld [vmem:[%s11461_s13 + $0x7b8] sm:$0xff]  }
 0x8e1   :  { %9091 = vmatprep.subr.bf16.mxu1 %v10009_v37  ;;  %v4581_v37 = vmax.f32 %v4549_v62, 0.0 }
 0x8e3   :  { %9062 = vmatpush3.bf16.msra.mxu0 %v10010_v4  ;;  %v4613_v4 = vpack.c.bf16 %v4581_v37, %v4581_v37 }
 0x8e4   :  { %9092 = vmatpush3.bf16.msra.mxu1 %v10011_v41  ;;  %9063 = vmatprep.subr.bf16.mxu0 %v10012_v32 }
 0x8e5   :  { %9093 = vmatprep.subr.bf16.mxu1 %v10013_v53 }
 0x8e7   :  { %9064 = vmatpush3.bf16.msra.mxu0 %v10014_v21 }
 0x8e8   :  { %9094 = vmatpush3.bf16.msra.mxu1 %v10015_v26  ;;  %9065 = vmatprep.subr.bf16.mxu0 %v10016_v24 }
 0x8e9   :  { %9604 = vmatprep.subr.bf16.mxu1 %v11997_v58 }
 0x8eb   :  { %7263 = vmatmul.mubr.bf16.vlgmr.msra.gmra.mrb[60].mxu1 %v4611_v47  ;;  %9066 = vmatpush3.bf16.msra.mxu0 %v10017_v5 }
 0x8ec   :  { %9067 = vmatprep.subr.bf16.mxu0 %v10018_v23  ;;  %9550 = vmatprep.mubr.msk.f32.mxu1 %vm10051_vm0, %v11987_v57 }
 0x8ed   :  { %v8787_v25 = vpop.f32.mrb[4].mxu0 }
 0x8ee   :  { %v8788_v13 = vpop.f32.mrb[5].mxu0 }
 0x8ef   :  { %v8789_v35 = vadd.f32 %v8788_v13, %v8787_v25  ;;  %9068 = vmatpush3.bf16.msra.mxu0 %v10019_v51  ;;  %v8790_v18 = vpop.f32.mrb[6].mxu0 }
 0x8f0   :  { %v8791_v48 = vpop.f32.mrb[7].mxu0  ;;  %9069 = vmatprep.subr.bf16.mxu0 %v10020_v34 }
 0x8f1   :  { %v6705_v55 = vadd.f32 %v8789_v35, %v7737_v40  ;;  %v7318_v40 = vld [vmem:[%s7524_s25 + $0x38] sm:$0xff] }
 0x8f3   :  { %9070 = vmatpush3.bf16.msra.mxu0 %v10021_v50 }
 0x8f4   :  { %9071 = vmatprep.subr.bf16.mxu0 %v10022_v8 }
 0x8f7   :  { %9072 = vmatpush3.bf16.msra.mxu0 %v10023_v43  ;;  %v7311_v43 = vld [vmem:[%s7524_s25] sm:$0xff] }
 0x8f8   :  { %9101 = vmatprep.subr.bf16.mxu0 %v10024_v30  ;;  %v7313_v30 = vld [vmem:[%s7524_s25 + $0x10] sm:$0xff]  ;;  %v9605_v3 = vpack.c.bf16 %v7312_v46, %v7311_v43 }
 0x8fa   :  { %7223 = vmatmul.mubr.bf16.vlgmr.msra.gmra.mrb[32].mxu0 %v4609_v19  ;;  %9606 = vmatpush3.bf16.msra.mxu1 %v9605_v3  ;;  %v7402_v3 = vld [vmem:[%s7526_s29 + $0x8] sm:$0xff] }
 0x8fb   :  { %9102 = vmatpush3.bf16.msra.mxu0 %v10025_v27  ;;  %7302 = vmatprep.mubr.bf16.mxu0 %v4614_v2  ;;  %v7314_v27 = vld [vmem:[%s7524_s25 + $0x18] sm:$0xff] }
 0x8fc   :  { %9103 = vmatprep.subr.bf16.mxu0 %v10026_v10  ;;  %v9608_v19 = vpack.c.bf16 %v7314_v27, %v7313_v30  ;;  %9607 = vmatprep.subr.bf16.mxu1 %v11997_v58  ;;  %v7401_v30 = vld [vmem:[%s7526_s29] sm:$0xff] }
 0x8fd   :  { %v8831_v45 = vpop.f32.mrb[36].mxu1 }
 0x8fe   :  { %v8832_v12 = vpop.f32.mrb[37].mxu1  ;;  %9609 = vmatpush3.bf16.msra.mxu1 %v9608_v19 }
 0x8ff   :  { %v8833_v7 = vadd.f32 %v8832_v12, %v8831_v45  ;;  %9104 = vmatpush3.bf16.msra.mxu0 %v10027_v42  ;;  %v8834_v44 = vpop.f32.mrb[38].mxu1  ;;  %9610 = vmatprep.subr.bf16.mxu1 %v11997_v58 }
 0x900   :  { %v8835_v38 = vpop.f32.mrb[39].mxu1  ;;  %9105 = vmatprep.subr.bf16.mxu0 %v10028_v1 }
 0x903   :  { %9106 = vmatpush3.bf16.msra.mxu0 %v10029_v61 }
 0x904   :  { %9107 = vmatprep.subr.bf16.mxu0 %v10030_v29  ;;  %v7315_v29 = vld [vmem:[%s7524_s25 + $0x20] sm:$0xff] }
 0x907   :  { %9108 = vmatpush3.bf16.msra.mxu0 %v10031_v63  ;;  %v7316_v63 = vld [vmem:[%s7524_s25 + $0x28] sm:$0xff] }
 0x908   :  { %9109 = vmatprep.subr.bf16.mxu0 %v10032_v36 }
 0x90b   :  { %9110 = vmatpush3.bf16.msra.mxu0 %v10033_v16  ;;  %v9611_v16 = vpack.c.bf16 %v7316_v63, %v7315_v29 }
 0x90c   :  { %9111 = vmatprep.subr.bf16.mxu0 %v10034_v59 }
 0x90d   :  { %v8809_v54 = vpop.f32.mrb[8].mxu0  ;;  %9612 = vmatpush3.bf16.msra.mxu1 %v9611_v16 }
 0x90e   :  { %v8810_v9 = vpop.f32.mrb[9].mxu0  ;;  %9613 = vmatprep.subr.bf16.mxu1 %v11997_v58 }
 0x90f   :  { %v8811_v14 = vadd.f32 %v8810_v9, %v8809_v54  ;;  %v8812_v60 = vpop.f32.mrb[10].mxu0  ;;  %9112 = vmatpush3.bf16.msra.mxu0 %v10035_v20  ;;  %v7317_v20 = vld [vmem:[%s7524_s25 + $0x30] sm:$0xff] }
 0x910   :  { %v8813_v52 = vpop.f32.mrb[11].mxu0  ;;  %9113 = vmatprep.subr.bf16.mxu0 %v10036_v28  ;;  %v9614_v28 = vpack.c.bf16 %v7318_v40, %v7317_v20 }
 0x911   :  { %v6745_v31 = vadd.f32 %v8811_v14, %v6705_v55 }
 0x912   :  { %9615 = vmatpush3.bf16.msra.mxu1 %v9614_v28 }
 0x913   :  { %9114 = vmatpush3.bf16.msra.mxu0 %v10037_v17  ;;  %v6785_v49 = vadd.f32 %v8833_v7, %v6745_v31  ;;  %9616 = vmatprep.subr.bf16.mxu1 %v11997_v58 }
 0x914   :  { %9115 = vmatprep.subr.bf16.mxu0 %v10038_v6 }
 0x917   :  { %9116 = vmatpush3.bf16.msra.mxu0 %v10039_v39 }
 0x91a   :  { %7303 = vmatmul.mubr.bf16.vlgmr.msra.gmra.mrb[36].mxu0 %v4613_v4 }
 0x91e   :  { %v8875_v41 = vpop.f32.mrb[40].mxu1 }
 0x91f   :  { %v8876_v32 = vpop.f32.mrb[41].mxu1 }
 0x920   :  { %v8877_v22 = vadd.f32 %v8876_v32, %v8875_v41  ;;  %v8878_v53 = vpop.f32.mrb[42].mxu1 }
 0x921   :  { %v8879_v21 = vpop.f32.mrb[43].mxu1 }
 0x92d   :  { %v8853_v26 = vpop.f32.mrb[12].mxu0 }
 0x92e   :  { %v8854_v24 = vpop.f32.mrb[13].mxu0 }
 0x92f   :  { %v8855_v33 = vadd.f32 %v8854_v24, %v8853_v26  ;;  %v8856_v11 = vpop.f32.mrb[14].mxu0 }
 0x930   :  { %v8857_v56 = vpop.f32.mrb[15].mxu0 }
 0x931   :  { %v6825_v5 = vadd.f32 %v8855_v33, %v6785_v49 }
 0x933   :  { %v6865_v23 = vadd.f32 %v8877_v22, %v6825_v5 }
 0x93e   :  { %v8919_v47 = vpop.f32.mrb[44].mxu1 }
 0x93f   :  { %v8920_v51 = vpop.f32.mrb[45].mxu1 }
 0x940   :  { %v8921_v34 = vadd.f32 %v8920_v51, %v8919_v47  ;;  %v8922_v25 = vpop.f32.mrb[46].mxu1 }
 0x941   :  { %v8923_v13 = vpop.f32.mrb[47].mxu1 }
 0x94d   :  { %v8897_v35 = vpop.f32.mrb[16].mxu0 }
 0x94e   :  { %v8898_v18 = vpop.f32.mrb[17].mxu0 }
 0x94f   :  { %v8899_v50 = vadd.f32 %v8898_v18, %v8897_v35  ;;  %v8900_v15 = vpop.f32.mrb[18].mxu0 }
 0x950   :  { %v8901_v48 = vpop.f32.mrb[19].mxu0 }
 0x951   :  { %v6905_v8 = vadd.f32 %v8899_v50, %v6865_v23 }
 0x953   :  { %v6945_v0 = vadd.f32 %v8921_v34, %v6905_v8 }
 0x95e   :  { %v8963_v10 = vpop.f32.mrb[48].mxu1 }
 0x95f   :  { %v8964_v2 = vpop.f32.mrb[49].mxu1 }
 0x960   :  { %v8965_v42 = vadd.f32 %v8964_v2, %v8963_v10  ;;  %v8966_v1 = vpop.f32.mrb[50].mxu1  ;;  %v9617_v10 = vpack.c.bf16 %v7402_v3, %v7401_v30 }
 0x961   :  { %v8967_v45 = vpop.f32.mrb[51].mxu1  ;;  %v7404_v1 = vld [vmem:[%s7526_s29 + $0x18] sm:$0xff] }
 0x96d   :  { %v8941_v12 = vpop.f32.mrb[20].mxu0 }
 0x96e   :  { %v8942_v7 = vpop.f32.mrb[21].mxu0 }
 0x96f   :  { %v8943_v44 = vadd.f32 %v8942_v7, %v8941_v12  ;;  %v8944_v61 = vpop.f32.mrb[22].mxu0  ;;  %v7994_v12 = vld [vmem:[%s7525_s4] ss:$0 sm:$0xff] }
 0x970   :  { %v8945_v38 = vpop.f32.mrb[23].mxu0 }
 0x971   :  { %v6985_v36 = vadd.f32 %v8943_v44, %v6945_v0 }
 0x973   :  { %v7025_v59 = vadd.f32 %v8965_v42, %v6985_v36  ;;  %v7403_v42 = vld [vmem:[%s7526_s29 + $0x10] sm:$0xff] }
 0x974   :  { %v9620_v45 = vpack.c.bf16 %v7404_v1, %v7403_v42 }
 0x97e   :  { %v9007_v54 = vpop.f32.mrb[52].mxu1 }
 0x97f   :  { %v9008_v9 = vpop.f32.mrb[53].mxu1 }
 0x980   :  { %v9009_v55 = vadd.f32 %v9008_v9, %v9007_v54  ;;  %v9010_v14 = vpop.f32.mrb[54].mxu1 }
 0x981   :  { %v9011_v60 = vpop.f32.mrb[55].mxu1 }
 0x98d   :  { %v8985_v17 = vpop.f32.mrb[24].mxu0 }
 0x98e   :  { %v8986_v62 = vpop.f32.mrb[25].mxu0 }
 0x98f   :  { %v8987_v52 = vadd.f32 %v8986_v62, %v8985_v17  ;;  %v8988_v6 = vpop.f32.mrb[26].mxu0 }
 0x990   :  { %v8989_v31 = vpop.f32.mrb[27].mxu0 }
 0x991   :  { %v7065_v39 = vadd.f32 %v8987_v52, %v7025_v59 }
 0x993   :  { %v7105_v49 = vadd.f32 %v9009_v55, %v7065_v39 }
 0x99e   :  { %v9051_v37 = vpop.f32.mrb[56].mxu1 }
 0x99f   :  { %v9052_v4 = vpop.f32.mrb[57].mxu1 }
 0x9a0   :  { %v9053_v41 = vadd.f32 %v9052_v4, %v9051_v37  ;;  %v9054_v32 = vpop.f32.mrb[58].mxu1 }
 0x9a1   :  { %v9055_v22 = vpop.f32.mrb[59].mxu1 }
 0x9ad   :  { %v9029_v53 = vpop.f32.mrb[28].mxu0 }
 0x9ae   :  { %v9030_v21 = vpop.f32.mrb[29].mxu0 }
 0x9af   :  { %v9031_v26 = vadd.f32 %v9030_v21, %v9029_v53  ;;  %v9032_v24 = vpop.f32.mrb[30].mxu0 }
 0x9b0   :  { %v9033_v33 = vpop.f32.mrb[31].mxu0 }
 0x9b1   :  { %v7145_v11 = vadd.f32 %v9031_v26, %v7105_v49 }
 0x9b3   :  { %v7185_v56 = vadd.f32 %v9053_v41, %v7145_v11 }
 0x9be   :  { %v9095_v5 = vpop.f32.mrb[60].mxu1 }
 0x9bf   :  { %v9096_v23 = vpop.f32.mrb[61].mxu1 }
 0x9c0   :  { %v9097_v47 = vadd.f32 %v9096_v23, %v9095_v5  ;;  %v9098_v51 = vpop.f32.mrb[62].mxu1 }
 0x9c1   :  { %v9099_v34 = vpop.f32.mrb[63].mxu1 }
 0x9cd   :  { %v9073_v25 = vpop.f32.mrb[32].mxu0 }
 0x9ce   :  { %v9074_v13 = vpop.f32.mrb[33].mxu0 }
 0x9cf   :  { %v9075_v35 = vadd.f32 %v9074_v13, %v9073_v25  ;;  %v9076_v18 = vpop.f32.mrb[34].mxu0 }
 0x9d0   :  { %v9077_v50 = vpop.f32.mrb[35].mxu0 }
 0x9d1   :  { %v7225_v15 = vadd.f32 %v9075_v35, %v7185_v56 }
 0x9d3   :  { %v7265_v48 = vadd.f32 %v9097_v47, %v7225_v15 }
 0x9ed   :  { %v9117_v8 = vpop.f32.mrb[36].mxu0 }
 0x9ee   :  { %v9118_v0 = vpop.f32.mrb[37].mxu0 }
 0x9ef   :  { %v9119_v43 = vadd.f32 %v9118_v0, %v9117_v8  ;;  %v9120_v46 = vpop.f32.mrb[38].mxu0 }
 0x9f0   :  { %v9121_v27 = vpop.f32.mrb[39].mxu0 }
 0x9f1   :  { %v7305_v19 = vadd.f32 %v9119_v43, %v7265_v48 }
 0x9f3   :  { %v7310_v2 = vmax.f32 %v7305_v19, 0.0 }
 0x9f5   :  { %9551 = vmatmul.mubr.msk.f32.vlgmr.msra.gmra.mrb[64].mxu1 %vm7326_vm7, %v7310_v2 }
 0x9f6   :  { %9618 = vmatpush3.bf16.msra.mxu1 %v9617_v10  ;;  %9561 = vmatprep.mubr.msk.f32.mxu1 %vm10051_vm0, %v11987_v57  ;;  %v7996_v57 = vld [vmem:[%s7527_s8] ss:$0 sm:$0xff] }
 0x9f7   :  { %9619 = vmatprep.subr.bf16.mxu1 %v11997_v58 }
 0x9fa   :  { %9621 = vmatpush3.bf16.msra.mxu1 %v9620_v45 }
 0xac8   :  { %v7396_v7 = vpop.f32.mrb[64].mxu1 }
 0xac9   :  { %v7397_v44 = vadd.f32 %v7994_v12, %v7396_v7  ;;  %v9552_v61 = vpop.f32.mrb[65].mxu1 }
 0xacb   :  { %v7400_v38 = vmax.f32 %v7397_v44, 0.0 }
 0xacd   :  { %9562 = vmatmul.mubr.msk.f32.vlgmr.msra.gmra.mrb[66].mxu1 %vm499_vm4, %v7400_v38 }
 0xba0   :  { %v7481_v58 = vpop.f32.mrb[66].mxu1 }
 0xba1   :  { %v7482_v29 = vadd.f32 %v7996_v57, %v7481_v58  ;;  %v9563_v63 = vpop.f32.mrb[67].mxu1 }
 0xba3   :  { %7485 = vst [vmem:[%s7528_s11] sm:$0xff] %v7482_v29 }

</bundles_post_ra>
